<compile_context>
chip_gen: v5e
topology: v5e:2x2
jax: 0.10.0
libtpu: 0.0.40
codegen_flags: <defaults>
</compile_context>

<pallas_src>
import functools

import jax
import jax.numpy as jnp
from jax.experimental import pallas as pl
from jax.experimental.pallas import tpu as pltpu

EPS = 1e-6                      # HF TimesformerConfig.layer_norm_eps
BF16 = jnp.bfloat16             # MXU operand / activation storage dtype (f32 accumulation)

_TM = 512                              # row tile for every linear
_TN = 512                              # col tile (K-tiled fallback only)
_WEIGHT_RESIDENT_BYTES = 8 * 1024 * 1024   # keep whole (K, N) weight in VMEM below this
_TILE_BYTES = 4 * 1024 * 1024              # per-operand tile budget (bf16)
_ATTN_BLOCK_BYTES = 4 * 1024 * 1024        # QKV bytes per attention grid step
_VMEM_LIMIT = 48 * 1024 * 1024             # <= v7x 64 MiB physical, headroom for Mosaic scratch


def _row_tile(M, pref=_TM):
    return pref if M >= pref else M


def _col_tile(N, pref=_TN):
    return pref if N >= pref else N


def _k_tile(K, tm):
    # Full K when the (tm, K) bf16 x-tile is small enough (collapses the K grid axis);
    # otherwise a tile that divides K exactly (K padding would corrupt the dot).
    if tm * K * 2 <= _TILE_BYTES:
        return K
    for cand in (2048, 1536, 1024, 768, 512, 256, 128):
        if K >= cand and K % cand == 0:
            return cand
    return K


# ---------------------------------- LayerNorm --------------------------------------- #
# Standalone LN kernel is only used by the K-tiled fallback path; the common path fuses
# LN into the following linear's prologue.

def _layernorm_kernel(x_ref, g_ref, b_ref, o_ref, *, eps):
    x = x_ref[...].astype(jnp.float32)
    mean = jnp.mean(x, axis=-1, keepdims=True)
    xc = x - mean
    var = jnp.mean(xc * xc, axis=-1, keepdims=True)
    o_ref[...] = (xc * jax.lax.rsqrt(var + eps) * g_ref[...].astype(jnp.float32)
                  + b_ref[...].astype(jnp.float32)).astype(o_ref.dtype)


def layernorm(x, gamma, beta, eps=EPS):
    M, D = x.shape
    tm = _row_tile(M)
    return pl.pallas_call(
        functools.partial(_layernorm_kernel, eps=eps),
        out_shape=jax.ShapeDtypeStruct((M, D), BF16),
        grid=(pl.cdiv(M, tm),),
        in_specs=[pl.BlockSpec((tm, D), lambda i: (i, 0)),
                  pl.BlockSpec((1, D), lambda i: (0, 0)),
                  pl.BlockSpec((1, D), lambda i: (0, 0))],
        out_specs=pl.BlockSpec((tm, D), lambda i: (i, 0)),
        compiler_params=pltpu.CompilerParams(
            dimension_semantics=("parallel",),
            vmem_limit_bytes=_VMEM_LIMIT),
    )(x.astype(BF16), gamma, beta)


# --------------------------- fused linear matmul kernels ---------------------------- #

def _linear_ws_kernel(*refs, act, has_residual, fuse_ln, eps):
    """Weight-stationary: full (K, N) weight resident; optional fused LN prologue,
    bias/GELU/residual epilogue.  One output row-block per grid step."""
    it = iter(refs)
    x_ref = next(it)
    w_ref = next(it)
    b_ref = next(it)
    g_ref = beta_ref = r_ref = None
    if fuse_ln:
        g_ref = next(it)
        beta_ref = next(it)
    if has_residual:
        r_ref = next(it)
    o_ref = next(it)

    x = x_ref[...]
    if fuse_ln:
        xf = x.astype(jnp.float32)
        mean = jnp.mean(xf, axis=-1, keepdims=True)
        xc = xf - mean
        var = jnp.mean(xc * xc, axis=-1, keepdims=True)
        xn = xc * jax.lax.rsqrt(var + eps)
        x = (xn * g_ref[...].astype(jnp.float32)
             + beta_ref[...].astype(jnp.float32)).astype(BF16)

    y = jnp.dot(x, w_ref[...], preferred_element_type=jnp.float32)
    y = y + b_ref[...].astype(jnp.float32)
    if act == "gelu":
        # TODO(synk): exact erf GELU (HF uses erf); tanh approx differs by ~1e-3.
        y = jax.nn.gelu(y, approximate=True)
    if has_residual:
        y = y + r_ref[...].astype(jnp.float32)
    o_ref[...] = y.astype(o_ref.dtype)


def _linear_ktiled_kernel(*refs, act, has_residual):
    """Fallback K-tiled accumulator matmul (weights too large to keep resident)."""
    if has_residual:
        x_ref, w_ref, b_ref, r_ref, o_ref, acc_ref = refs
    else:
        x_ref, w_ref, b_ref, o_ref, acc_ref = refs
        r_ref = None
    kk = pl.program_id(2)

    @pl.when(kk == 0)
    def _():
        acc_ref[...] = jnp.zeros_like(acc_ref)

    acc_ref[...] += jnp.dot(x_ref[...], w_ref[...],
                            preferred_element_type=jnp.float32)

    @pl.when(kk == pl.num_programs(2) - 1)
    def _():
        y = acc_ref[...] + b_ref[...].astype(jnp.float32)
        if act == "gelu":
            y = jax.nn.gelu(y, approximate=True)
        if r_ref is not None:
            y = y + r_ref[...].astype(jnp.float32)
        o_ref[...] = y.astype(o_ref.dtype)


def linear(x, w, b, *, ln=None, residual=None, act=None):
    """y = act(LN(x) @ w + b) [+ residual].  bf16 MXU operands, f32 accumulation.

    Partial M/N row-blocks rely on Pallas OOB-padded reads producing garbage only in
    padded output rows/cols that are discarded on writeback (K is never padded)."""
    M, K = x.shape
    N = w.shape[1]
    x = x.astype(BF16)
    w = w.astype(BF16)
    tm = _row_tile(M)

    weight_fits = (K * N * 2 <= _WEIGHT_RESIDENT_BYTES
                   and tm * K * 2 <= _TILE_BYTES
                   and tm * N * 2 <= _TILE_BYTES)

    if weight_fits:
        in_specs = [
            pl.BlockSpec((tm, K), lambda i: (i, 0)),
            pl.BlockSpec((K, N), lambda i: (0, 0)),       # constant index -> resident weight
            pl.BlockSpec((1, N), lambda i: (0, 0)),
        ]
        args = [x, w, b]
        if ln is not None:
            in_specs += [pl.BlockSpec((1, K), lambda i: (0, 0)),
                         pl.BlockSpec((1, K), lambda i: (0, 0))]
            args += [ln[0], ln[1]]
        if residual is not None:
            in_specs.append(pl.BlockSpec((tm, N), lambda i: (i, 0)))
            args.append(residual.astype(BF16))
        kernel = functools.partial(_linear_ws_kernel, act=act,
                                   has_residual=residual is not None,
                                   fuse_ln=ln is not None, eps=EPS)
        return pl.pallas_call(
            kernel,
            out_shape=jax.ShapeDtypeStruct((M, N), BF16),
            grid=(pl.cdiv(M, tm),),
            in_specs=in_specs,
            out_specs=pl.BlockSpec((tm, N), lambda i: (i, 0)),
            compiler_params=pltpu.CompilerParams(
                dimension_semantics=("parallel",),
                vmem_limit_bytes=_VMEM_LIMIT),
        )(*args)

    # --- fallback: 3-D grid, K-tiled accumulator (LN applied as its own kernel) ---
    if ln is not None:
        x = layernorm(x, ln[0], ln[1])
    tn = _col_tile(N)
    tk = _k_tile(K, tm)
    in_specs = [
        pl.BlockSpec((tm, tk), lambda i, j, k: (i, k)),
        pl.BlockSpec((tk, tn), lambda i, j, k: (k, j)),
        pl.BlockSpec((1, tn), lambda i, j, k: (0, j)),
    ]
    args = [x, w, b]
    if residual is not None:
        in_specs.append(pl.BlockSpec((tm, tn), lambda i, j, k: (i, j)))
        args.append(residual.astype(BF16))
    kernel = functools.partial(_linear_ktiled_kernel, act=act,
                               has_residual=residual is not None)
    return pl.pallas_call(
        kernel,
        out_shape=jax.ShapeDtypeStruct((M, N), BF16),
        grid=(pl.cdiv(M, tm), pl.cdiv(N, tn), pl.cdiv(K, tk)),
        in_specs=in_specs,
        out_specs=pl.BlockSpec((tm, tn), lambda i, j, k: (i, j)),
        scratch_shapes=[pltpu.VMEM((tm, tn), jnp.float32)],
        compiler_params=pltpu.CompilerParams(
            dimension_semantics=("parallel", "parallel", "arbitrary"),
            vmem_limit_bytes=_VMEM_LIMIT),
    )(*args)


# ----------------------------------- attention -------------------------------------- #

def _attention_kernel(qkv_ref, o_ref, *, num_heads, s_real):
    """softmax(q k^T) v for a block of (batch*frame) rows and ALL heads.

    qkv_ref: (bb, S_pad, 3D) fused-QKV (HF column order [q | k | v]); the 1/sqrt(Dh)
    scale is already folded into the Q weights.  Heads are processed in 128-lane groups
    and each group is stored with one lane-dense write (no 64-lane masked stores).
    """
    bb, S_pad, D3 = qkv_ref.shape
    D = D3 // 3
    Dh = D // num_heads

    mask = None
    if s_real < S_pad:                      # padded key positions -> fully masked out
        key_ids = jax.lax.broadcasted_iota(jnp.int32, (1, 1, S_pad), 2)
        mask = key_ids >= s_real

    hpg = max(1, min(num_heads, 128 // max(Dh, 1)))    # heads per 128-lane store group
    while num_heads % hpg:
        hpg -= 1

    for g0 in range(0, num_heads, hpg):                 # static loops over heads
        ctxs = []
        for h in range(g0, g0 + hpg):
            q = qkv_ref[:, :, pl.ds(h * Dh, Dh)]                    # (bb, S, Dh) bf16
            k = qkv_ref[:, :, pl.ds(D + h * Dh, Dh)]
            v = qkv_ref[:, :, pl.ds(2 * D + h * Dh, Dh)]
            s = jnp.einsum("bqd,bkd->bqk", q, k,
                           preferred_element_type=jnp.float32)      # (bb, S, S) f32
            if mask is not None:
                s = jnp.where(mask, jnp.float32(-1e30), s)
            s = s - jnp.max(s, axis=-1, keepdims=True)
            p = jnp.exp(s)
            p = p * pl.reciprocal(jnp.sum(p, axis=-1, keepdims=True), approx=True)
            ctxs.append(jnp.einsum("bqk,bkd->bqd", p.astype(BF16), v,
                                   preferred_element_type=jnp.float32))
        blk = ctxs[0] if hpg == 1 else jnp.concatenate(ctxs, axis=-1)
        o_ref[:, :, pl.ds(g0 * Dh, hpg * Dh)] = blk.astype(o_ref.dtype)


def attention_core(qkv, num_heads):
    """Batched multi-head attention core.  qkv: (Bp, S, 3D) -> ctx (Bp, S, D),
    lane-dense with heads concatenated, already in the layout the output proj consumes."""
    Bp, S, D3 = qkv.shape
    D = D3 // 3
    S_pad = max(8, ((S + 7) // 8) * 8)            # sublane-aligned sequence
    if S_pad != S:
        qkv = jnp.pad(qkv, ((0, 0), (0, S_pad - S), (0, 0)))
    row_bytes = S_pad * D3 * 2
    bb = max(1, min(Bp, _ATTN_BLOCK_BYTES // row_bytes))   # rows per grid step

    out = pl.pallas_call(
        functools.partial(_attention_kernel, num_heads=num_heads, s_real=S),
        out_shape=jax.ShapeDtypeStruct((Bp, S_pad, D), BF16),
        grid=(pl.cdiv(Bp, bb),),
        in_specs=[pl.BlockSpec((bb, S_pad, D3), lambda i: (i, 0, 0))],
        out_specs=pl.BlockSpec((bb, S_pad, D), lambda i: (i, 0, 0)),
        compiler_params=pltpu.CompilerParams(
            dimension_semantics=("parallel",),
            vmem_limit_bytes=_VMEM_LIMIT),
    )(qkv.astype(BF16))
    return out[:, :S, :] if S_pad != S else out


# ------------------------------ model building blocks ------------------------------- #

def multi_head_attention(x, ln_g, ln_b, p, num_heads):
    """HF TimesformerAttention with its preceding LayerNorm fused into the QKV matmul."""
    Bp, S, D = x.shape
    qkv = linear(x.reshape(Bp * S, D), p["qkv_w"], p["qkv_b"], ln=(ln_g, ln_b))
    ctx = attention_core(qkv.reshape(Bp, S, 3 * D), num_heads)
    out = linear(ctx.reshape(Bp * S, D), p["proj_w"], p["proj_b"])
    return out.reshape(Bp, S, D)


def timesformer_layer(hidden, p, *, B, T, HP, WP, D, num_heads):
    """Divided space-time attention block (HF TimesformerLayer, eval mode).
    TODO(synk): carry the residual stream in f32 (HF keeps f32; bf16 drifts slightly)."""
    N = HP * WP

    # ---- temporal attention (temporal LN fused into its QKV matmul) ----
    temporal = hidden[:, 1:, :].reshape(B * N, T, D)
    t_attn = multi_head_attention(temporal, p["t_ln_g"], p["t_ln_b"],
                                  p["t_attn"], num_heads)
    # temporal_dense + residual fused (token order (b, n, t) matches both sides)
    temporal_embedding = linear(
        t_attn.reshape(-1, D), p["t_dense_w"], p["t_dense_b"],
        residual=hidden[:, 1:, :].reshape(-1, D)).reshape(B, N * T, D)

    # ---- spatial attention (layernorm_before fused into its QKV matmul) ----
    init_cls = hidden[:, 0:1, :]                                          # (B, 1, D)
    cls_rep = jnp.repeat(init_cls, T, axis=1).reshape(B * T, 1, D)
    spatial = (temporal_embedding.reshape(B, HP, WP, T, D)
               .transpose(0, 3, 1, 2, 4)
               .reshape(B * T, N, D))
    spatial = jnp.concatenate([cls_rep, spatial], axis=1)                 # (B*T, 1+N, D)
    s_attn = multi_head_attention(spatial, p["ln_before_g"], p["ln_before_b"],
                                  p["s_attn"], num_heads)

    cls_tok = jnp.mean(s_attn[:, 0, :].reshape(B, T, D).astype(jnp.float32),
                       axis=1, keepdims=True).astype(BF16)                # (B, 1, D)
    res_sp = (s_attn[:, 1:, :].reshape(B, T, HP, WP, D)
              .transpose(0, 2, 3, 1, 4)
              .reshape(B, N * T, D))
    hidden = (jnp.concatenate([init_cls, temporal_embedding], axis=1)
              + jnp.concatenate([cls_tok, res_sp], axis=1))               # (B, 1+N*T, D)

    # ---- MLP: LN (fused into fc1) -> fc1+GELU -> fc2+residual ----
    S_total = 1 + N * T
    x2 = hidden.reshape(B * S_total, D)
    h = linear(x2, p["fc1_w"], p["fc1_b"],
               ln=(p["ln_after_g"], p["ln_after_b"]), act="gelu")
    out = linear(h, p["fc2_w"], p["fc2_b"], residual=x2)
    return out.reshape(B, S_total, D)


def timesformer_embeddings(pixel_values, p, *, patch, D):
    """Patch-embedding conv (as im2col matmul) + cls token + pos/time embeddings."""
    B, T, C, H, W = pixel_values.shape
    HP, WP = H // patch, W // patch
    N = HP * WP
    # im2col (pure layout plumbing, left in XLA); (C, ph, pw) flattening order matches
    # Conv2d(C, D, kernel=P, stride=P) weight flattening exactly.
    patches = (pixel_values.reshape(B * T, C, HP, patch, WP, patch)
               .transpose(0, 2, 4, 1, 3, 5)
               .reshape(B * T * N, C * patch * patch))
    emb = linear(patches, p["patch_w"], p["patch_b"]).reshape(B * T, N, D)
    cls = jnp.broadcast_to(p["cls_token"], (B * T, 1, D))
    emb = jnp.concatenate([cls, emb], axis=1) + p["pos_emb"]              # (B*T, 1+N, D)
    # time embeddings (exactly mirrors the HF indexing, incl. cls token extraction)
    cls_tokens = emb[:B, 0:1, :]
    emb = emb[:, 1:, :].reshape(B, T, N, D).transpose(0, 2, 1, 3).reshape(B * N, T, D)
    emb = emb + p["time_emb"]
    emb = emb.reshape(B, N * T, D)
    return jnp.concatenate([cls_tokens, emb], axis=1)                     # (B, 1+N*T, D)


def timesformer_forward(pixel_values, params, cfg):
    """Returns the classification logits (the `.logits` field of the HF output)."""
    B, T, C, H, W = pixel_values.shape
    HP, WP = H // cfg["patch"], W // cfg["patch"]
    D = cfg["hidden"]
    hidden = timesformer_embeddings(pixel_values, params["emb"], patch=cfg["patch"], D=D)
    for lp in params["layers"]:
        hidden = timesformer_layer(hidden, lp, B=B, T=T, HP=HP, WP=WP, D=D,
                                   num_heads=cfg["heads"])
    # Final LayerNorm is per-token and only the CLS token feeds the classifier,
    # so compute it on the (B, D) CLS rows only, in plain f32 JAX (tiny).
    cls = hidden[:, 0, :].astype(jnp.float32)
    mean = jnp.mean(cls, axis=-1, keepdims=True)
    xc = cls - mean
    var = jnp.mean(xc * xc, axis=-1, keepdims=True)
    cls = xc * jax.lax.rsqrt(var + EPS) * params["final_ln_g"] + params["final_ln_b"]
    # tiny (B, D) @ (D, n_classes=5) head: plain JAX (5-wide lanes would be masked stores)
    logits = cls @ params["cls_w"] + params["cls_b"]
    return logits


# --------------------------------- parameter init ------------------------------------ #

def init_params(key, cfg):
    D, I = cfg["hidden"], cfg["inter"]
    C, P, T = cfg["channels"], cfg["patch"], cfg["frames"]
    N = (cfg["image"] // P) ** 2
    n_classes = cfg["n_classes"]
    num_heads = cfg["heads"]

    keys = iter(jax.random.split(key, 256))

    def normal(shape, dtype=BF16, scale=0.02):
        return (scale * jax.random.normal(next(keys), shape, dtype=jnp.float32)).astype(dtype)

    def ones(shape):
        return jnp.ones(shape, jnp.float32)

    def zeros(shape):
        return jnp.zeros(shape, jnp.float32)

    emb = dict(
        patch_w=normal((C * P * P, D)),
        patch_b=normal((1, D), dtype=jnp.float32),
        cls_token=normal((1, 1, D)),
        pos_emb=normal((1, 1 + N, D)),
        time_emb=normal((1, T, D)),
    )

    qk_scale = (D // num_heads) ** -0.5

    def attn_params():
        qkv_w = normal((D, 3 * D), dtype=jnp.float32)
        qkv_b = normal((1, 3 * D), dtype=jnp.float32)
        # Offline transform of the frozen HF weights: fold 1/sqrt(Dh) into the Q slice
        # of the fused QKV projection (zero runtime cost in the attention kernel).
        qkv_w = qkv_w.at[:, :D].multiply(qk_scale)
        qkv_b = qkv_b.at[:, :D].multiply(qk_scale)
        return dict(
            qkv_w=qkv_w.astype(BF16),
            qkv_b=qkv_b,
            proj_w=normal((D, D)),
            proj_b=normal((1, D), dtype=jnp.float32),
        )

    layers = []
    for _ in range(cfg["layers"]):
        layers.append(dict(
            t_ln_g=ones((1, D)), t_ln_b=zeros((1, D)),
            t_attn=attn_params(),
            t_dense_w=normal((D, D)), t_dense_b=normal((1, D), dtype=jnp.float32),
            ln_before_g=ones((1, D)), ln_before_b=zeros((1, D)),
            s_attn=attn_params(),
            ln_after_g=ones((1, D)), ln_after_b=zeros((1, D)),
            fc1_w=normal((D, I)), fc1_b=normal((1, I), dtype=jnp.float32),
            fc2_w=normal((I, D)), fc2_b=normal((1, D), dtype=jnp.float32),
        ))

    return dict(
        emb=emb,
        layers=layers,
        final_ln_g=ones((1, D)), final_ln_b=zeros((1, D)),
        cls_w=normal((D, n_classes), dtype=jnp.float32),
        cls_b=zeros((1, n_classes)),
    )


# -------------------------------------- main ----------------------------------------- #

if __name__ == "__main__":
    cfg = dict(image=16, patch=8, channels=3, frames=2, hidden=32, heads=4,
               inter=64, layers=2, n_classes=5)

    key = jax.random.PRNGKey(0)
    k_x, k_p = jax.random.split(key)
    x = jax.random.normal(
        k_x, (2, cfg["frames"], cfg["channels"], cfg["image"], cfg["image"]),
        dtype=jnp.float32)
    params = init_params(k_p, cfg)

    fwd = jax.jit(functools.partial(timesformer_forward, cfg=cfg))
    logits = fwd(x, params)
    jax.block_until_ready(logits)

    assert logits.shape == (2, cfg["n_classes"])
    assert bool(jnp.all(jnp.isfinite(logits)))
    print("KERNEL_OK")
</pallas_src>

<mosaic_0001>
module attributes {stable_mosaic.version = 11 : i64} {
  func.func @_linear_ws_kernel(%arg0: i32, %arg1: memref<16x192xbf16, #tpu.memory_space<vmem>>, %arg2: memref<192x32xbf16, #tpu.memory_space<vmem>>, %arg3: memref<1x32xf32, #tpu.memory_space<vmem>>, %arg4: memref<16x32xbf16, #tpu.memory_space<vmem>>) attributes {dimension_semantics = [#tpu.dimension_semantics<parallel>], iteration_bounds = array<i64: 1>, scalar_prefetch = 0 : i64, scratch_operands = 0 : i64, tpu.core_type = #tpu.core_type<tc>, window_params = [{transform_indices = @transform_0, window_bounds = array<i64: 16, 192>}, {pipeline_mode = #tpu.pipeline_mode<synchronous>, transform_indices = @transform_1, window_bounds = array<i64: 192, 32>}, {pipeline_mode = #tpu.pipeline_mode<synchronous>, transform_indices = @transform_2, window_bounds = array<i64: 1, 32>}, {transform_indices = @transform_3, window_bounds = array<i64: 16, 32>}]} {
    %c0 = arith.constant 0 : index
    %c0_0 = arith.constant 0 : index
    %0 = vector.load %arg1[%c0, %c0_0] : memref<16x192xbf16, #tpu.memory_space<vmem>>, vector<16x192xbf16>
    %c0_1 = arith.constant 0 : index
    %c0_2 = arith.constant 0 : index
    %1 = vector.load %arg2[%c0_1, %c0_2] : memref<192x32xbf16, #tpu.memory_space<vmem>>, vector<192x32xbf16>
    %cst = arith.constant dense<0.000000e+00> : vector<16x32xf32>
    %2 = tpu.matmul %0, %1, %cst {dimension_numbers = #tpu.dot_dimension_numbers<[1], [0], [0], [1], [0, 0, 1, 1], [], []>} : vector<16x192xbf16>, vector<192x32xbf16>, vector<16x32xf32> -> vector<16x32xf32>
    %c0_3 = arith.constant 0 : index
    %c0_4 = arith.constant 0 : index
    %3 = vector.load %arg3[%c0_3, %c0_4] : memref<1x32xf32, #tpu.memory_space<vmem>>, vector<1x32xf32>
    %4 = vector.broadcast %3 : vector<1x32xf32> to vector<16x32xf32>
    %5 = arith.addf %2, %4 : vector<16x32xf32>
    %6 = arith.truncf %5 : vector<16x32xf32> to vector<16x32xbf16>
    %c0_5 = arith.constant 0 : index
    %c0_6 = arith.constant 0 : index
    %7 = vector.load %arg4[%c0_5, %c0_6] : memref<16x32xbf16, #tpu.memory_space<vmem>>, vector<16x32xbf16>
    tpu.vector_store %arg4[%c0_5, %c0_6], %6 {strides = array<i32>} : memref<16x32xbf16, #tpu.memory_space<vmem>>, vector<16x32xbf16>,
    return
  }
  func.func @transform_0(%arg0: i32) -> (i32, i32) {
    %c0_i32 = arith.constant 0 : i32
    %c0_i32_0 = arith.constant 0 : i32
    return %arg0, %c0_i32 : i32, i32
  }
  func.func @transform_1(%arg0: i32) -> (i32, i32) {
    %c0_i32 = arith.constant 0 : i32
    %c0_i32_0 = arith.constant 0 : i32
    %c0_i32_1 = arith.constant 0 : i32
    return %c0_i32, %c0_i32_0 : i32, i32
  }
  func.func @transform_2(%arg0: i32) -> (i32, i32) {
    %c0_i32 = arith.constant 0 : i32
    %c0_i32_0 = arith.constant 0 : i32
    %c0_i32_1 = arith.constant 0 : i32
    return %c0_i32, %c0_i32_0 : i32, i32
  }
  func.func @transform_3(%arg0: i32) -> (i32, i32) {
    %c0_i32 = arith.constant 0 : i32
    %c0_i32_0 = arith.constant 0 : i32
    return %arg0, %c0_i32 : i32, i32
  }
}

module attributes {stable_mosaic.version = 11 : i64} {
  func.func @_linear_ws_kernel(%arg0: i32, %arg1: memref<16x32xbf16, #tpu.memory_space<vmem>>, %arg2: memref<32x96xbf16, #tpu.memory_space<vmem>>, %arg3: memref<1x96xf32, #tpu.memory_space<vmem>>, %arg4: memref<1x32xf32, #tpu.memory_space<vmem>>, %arg5: memref<1x32xf32, #tpu.memory_space<vmem>>, %arg6: memref<16x96xbf16, #tpu.memory_space<vmem>>) attributes {dimension_semantics = [#tpu.dimension_semantics<parallel>], iteration_bounds = array<i64: 1>, scalar_prefetch = 0 : i64, scratch_operands = 0 : i64, tpu.core_type = #tpu.core_type<tc>, window_params = [{transform_indices = @transform_0, window_bounds = array<i64: 16, 32>}, {pipeline_mode = #tpu.pipeline_mode<synchronous>, transform_indices = @transform_1, window_bounds = array<i64: 32, 96>}, {pipeline_mode = #tpu.pipeline_mode<synchronous>, transform_indices = @transform_2, window_bounds = array<i64: 1, 96>}, {pipeline_mode = #tpu.pipeline_mode<synchronous>, transform_indices = @transform_3, window_bounds = array<i64: 1, 32>}, {pipeline_mode = #tpu.pipeline_mode<synchronous>, transform_indices = @transform_4, window_bounds = array<i64: 1, 32>}, {transform_indices = @transform_5, window_bounds = array<i64: 16, 96>}]} {
    %c0 = arith.constant 0 : index
    %c0_0 = arith.constant 0 : index
    %0 = vector.load %arg1[%c0, %c0_0] : memref<16x32xbf16, #tpu.memory_space<vmem>>, vector<16x32xbf16>
    %1 = arith.extf %0 : vector<16x32xbf16> to vector<16x32xf32>
    %cst = arith.constant dense<0.000000e+00> : vector<16xf32>
    %2 = vector.multi_reduction <add>, %1, %cst [1] : vector<16x32xf32> to vector<16xf32>
    %3 = vector.shape_cast %2 : vector<16xf32> to vector<16x1xf32>
    %cst_1 = arith.constant 3.200000e+01 : f32
    %4 = vector.broadcast %cst_1 : f32 to vector<16x1xf32>
    %5 = arith.divf %3, %4 : vector<16x1xf32>
    %6 = vector.broadcast %5 : vector<16x1xf32> to vector<16x32xf32>
    %7 = arith.subf %1, %6 : vector<16x32xf32>
    %8 = arith.mulf %7, %7 : vector<16x32xf32>
    %cst_2 = arith.constant dense<0.000000e+00> : vector<16xf32>
    %9 = vector.multi_reduction <add>, %8, %cst_2 [1] : vector<16x32xf32> to vector<16xf32>
    %10 = vector.shape_cast %9 : vector<16xf32> to vector<16x1xf32>
    %cst_3 = arith.constant 3.200000e+01 : f32
    %11 = vector.broadcast %cst_3 : f32 to vector<16x1xf32>
    %12 = arith.divf %10, %11 : vector<16x1xf32>
    %cst_4 = arith.constant 9.99999997E-7 : f32
    %13 = vector.broadcast %cst_4 : f32 to vector<16x1xf32>
    %14 = arith.addf %12, %13 : vector<16x1xf32>
    %15 = math.rsqrt %14 : vector<16x1xf32>
    %16 = vector.broadcast %15 : vector<16x1xf32> to vector<16x32xf32>
    %17 = arith.mulf %7, %16 : vector<16x32xf32>
    %c0_5 = arith.constant 0 : index
    %c0_6 = arith.constant 0 : index
    %18 = vector.load %arg4[%c0_5, %c0_6] : memref<1x32xf32, #tpu.memory_space<vmem>>, vector<1x32xf32>
    %19 = vector.broadcast %18 : vector<1x32xf32> to vector<16x32xf32>
    %20 = arith.mulf %17, %19 : vector<16x32xf32>
    %c0_7 = arith.constant 0 : index
    %c0_8 = arith.constant 0 : index
    %21 = vector.load %arg5[%c0_7, %c0_8] : memref<1x32xf32, #tpu.memory_space<vmem>>, vector<1x32xf32>
    %22 = vector.broadcast %21 : vector<1x32xf32> to vector<16x32xf32>
    %23 = arith.addf %20, %22 : vector<16x32xf32>
    %24 = arith.truncf %23 : vector<16x32xf32> to vector<16x32xbf16>
    %c0_9 = arith.constant 0 : index
    %c0_10 = arith.constant 0 : index
    %25 = vector.load %arg2[%c0_9, %c0_10] : memref<32x96xbf16, #tpu.memory_space<vmem>>, vector<32x96xbf16>
    %cst_11 = arith.constant dense<0.000000e+00> : vector<16x96xf32>
    %26 = tpu.matmul %24, %25, %cst_11 {dimension_numbers = #tpu.dot_dimension_numbers<[1], [0], [0], [1], [0, 0, 1, 1], [], []>} : vector<16x32xbf16>, vector<32x96xbf16>, vector<16x96xf32> -> vector<16x96xf32>
    %c0_12 = arith.constant 0 : index
    %c0_13 = arith.constant 0 : index
    %27 = vector.load %arg3[%c0_12, %c0_13] : memref<1x96xf32, #tpu.memory_space<vmem>>, vector<1x96xf32>
    %28 = vector.broadcast %27 : vector<1x96xf32> to vector<16x96xf32>
    %29 = arith.addf %26, %28 : vector<16x96xf32>
    %30 = arith.truncf %29 : vector<16x96xf32> to vector<16x96xbf16>
    %c0_14 = arith.constant 0 : index
    %c0_15 = arith.constant 0 : index
    %31 = vector.load %arg6[%c0_14, %c0_15] : memref<16x96xbf16, #tpu.memory_space<vmem>>, vector<16x96xbf16>
    tpu.vector_store %arg6[%c0_14, %c0_15], %30 {strides = array<i32>} : memref<16x96xbf16, #tpu.memory_space<vmem>>, vector<16x96xbf16>,
    return
  }
  func.func @transform_0(%arg0: i32) -> (i32, i32) {
    %c0_i32 = arith.constant 0 : i32
    %c0_i32_0 = arith.constant 0 : i32
    return %arg0, %c0_i32 : i32, i32
  }
  func.func @transform_1(%arg0: i32) -> (i32, i32) {
    %c0_i32 = arith.constant 0 : i32
    %c0_i32_0 = arith.constant 0 : i32
    %c0_i32_1 = arith.constant 0 : i32
    return %c0_i32, %c0_i32_0 : i32, i32
  }
  func.func @transform_2(%arg0: i32) -> (i32, i32) {
    %c0_i32 = arith.constant 0 : i32
    %c0_i32_0 = arith.constant 0 : i32
    %c0_i32_1 = arith.constant 0 : i32
    return %c0_i32, %c0_i32_0 : i32, i32
  }
  func.func @transform_3(%arg0: i32) -> (i32, i32) {
    %c0_i32 = arith.constant 0 : i32
    %c0_i32_0 = arith.constant 0 : i32
    %c0_i32_1 = arith.constant 0 : i32
    return %c0_i32, %c0_i32_0 : i32, i32
  }
  func.func @transform_4(%arg0: i32) -> (i32, i32) {
    %c0_i32 = arith.constant 0 : i32
    %c0_i32_0 = arith.constant 0 : i32
    %c0_i32_1 = arith.constant 0 : i32
    return %c0_i32, %c0_i32_0 : i32, i32
  }
  func.func @transform_5(%arg0: i32) -> (i32, i32) {
    %c0_i32 = arith.constant 0 : i32
    %c0_i32_0 = arith.constant 0 : i32
    return %arg0, %c0_i32 : i32, i32
  }
}

module attributes {stable_mosaic.version = 11 : i64} {
  func.func @_attention_kernel(%arg0: i32, %arg1: memref<8x8x96xbf16, #tpu.memory_space<vmem>>, %arg2: memref<8x8x32xbf16, #tpu.memory_space<vmem>>) attributes {dimension_semantics = [#tpu.dimension_semantics<parallel>], iteration_bounds = array<i64: 1>, scalar_prefetch = 0 : i64, scratch_operands = 0 : i64, tpu.core_type = #tpu.core_type<tc>, window_params = [{transform_indices = @transform_0, window_bounds = array<i64: 8, 8, 96>}, {transform_indices = @transform_1, window_bounds = array<i64: 8, 8, 32>}]} {
    %0 = tpu.iota {dimensions = array<i32: 2>} : vector<1x1x8xi32>
    %c2_i32 = arith.constant 2 : i32
    %1 = vector.broadcast %c2_i32 : i32 to vector<1x1x8xi32>
    %2 = arith.cmpi sge, %0, %1 : vector<1x1x8xi32>
    %c0 = arith.constant 0 : index
    %c0_0 = arith.constant 0 : index
    %c0_1 = arith.constant 0 : index
    %3 = vector.load %arg1[%c0, %c0_0, %c0_1] : memref<8x8x96xbf16, #tpu.memory_space<vmem>>, vector<8x8x8xbf16>
    %c0_2 = arith.constant 0 : index
    %c0_3 = arith.constant 0 : index
    %c32 = arith.constant 32 : index
    %4 = vector.load %arg1[%c0_2, %c0_3, %c32] : memref<8x8x96xbf16, #tpu.memory_space<vmem>>, vector<8x8x8xbf16>
    %c0_4 = arith.constant 0 : index
    %c0_5 = arith.constant 0 : index
    %c64 = arith.constant 64 : index
    %5 = vector.load %arg1[%c0_4, %c0_5, %c64] : memref<8x8x96xbf16, #tpu.memory_space<vmem>>, vector<8x8x8xbf16>
    "tpu.trace_start"() <{level = 10 : i32, message = "bqd,bkd->bqk"}> : () -> ()
    %cst = arith.constant dense<0.000000e+00> : vector<8x8x8xf32>
    %6 = tpu.matmul %3, %4, %cst {dimension_numbers = #tpu.dot_dimension_numbers<[2], [2], [1], [1], [0, 0, 0, 1, 1, 1], [0], [0]>} : vector<8x8x8xbf16>, vector<8x8x8xbf16>, vector<8x8x8xf32> -> vector<8x8x8xf32>
    %cst_6 = arith.constant -1.000000e+30 : f32
    "tpu.trace_stop"() : () -> ()
    %7 = vector.shape_cast %2 : vector<1x1x8xi1> to vector<1x1x8xi1>
    %8 = vector.broadcast %7 : vector<1x1x8xi1> to vector<8x8x8xi1>
    %9 = vector.broadcast %cst_6 : f32 to vector<8x8x8xf32>
    %10 = arith.select %8, %9, %6 : vector<8x8x8xi1>, vector<8x8x8xf32>
    %cst_7 = arith.constant dense<0xFF800000> : vector<8x8xf32>
    %11 = vector.multi_reduction <maximumf>, %10, %cst_7 [2] : vector<8x8x8xf32> to vector<8x8xf32>
    %12 = vector.shape_cast %11 : vector<8x8xf32> to vector<8x8x1xf32>
    %13 = vector.broadcast %12 : vector<8x8x1xf32> to vector<8x8x8xf32>
    %14 = arith.subf %10, %13 : vector<8x8x8xf32>
    %15 = math.exp %14 : vector<8x8x8xf32>
    %cst_8 = arith.constant dense<0.000000e+00> : vector<8x8xf32>
    %16 = vector.multi_reduction <add>, %15, %cst_8 [2] : vector<8x8x8xf32> to vector<8x8xf32>
    %17 = vector.shape_cast %16 : vector<8x8xf32> to vector<8x8x1xf32>
    %18 = tpu.reciprocal %17 {approx = true} : vector<8x8x1xf32> -> vector<8x8x1xf32>
    %19 = vector.broadcast %18 : vector<8x8x1xf32> to vector<8x8x8xf32>
    %20 = arith.mulf %15, %19 : vector<8x8x8xf32>
    %21 = arith.truncf %20 : vector<8x8x8xf32> to vector<8x8x8xbf16>
    "tpu.trace_start"() <{level = 10 : i32, message = "bqk,bkd->bqd"}> : () -> ()
    %cst_9 = arith.constant dense<0.000000e+00> : vector<8x8x8xf32>
    %22 = tpu.matmul %21, %5, %cst_9 {dimension_numbers = #tpu.dot_dimension_numbers<[2], [1], [1], [2], [0, 0, 0, 1, 1, 2], [0], [0]>} : vector<8x8x8xbf16>, vector<8x8x8xbf16>, vector<8x8x8xf32> -> vector<8x8x8xf32>
    "tpu.trace_stop"() : () -> ()
    %c0_10 = arith.constant 0 : index
    %c0_11 = arith.constant 0 : index
    %c8 = arith.constant 8 : index
    %23 = vector.load %arg1[%c0_10, %c0_11, %c8] : memref<8x8x96xbf16, #tpu.memory_space<vmem>>, vector<8x8x8xbf16>
    %c0_12 = arith.constant 0 : index
    %c0_13 = arith.constant 0 : index
    %c40 = arith.constant 40 : index
    %24 = vector.load %arg1[%c0_12, %c0_13, %c40] : memref<8x8x96xbf16, #tpu.memory_space<vmem>>, vector<8x8x8xbf16>
    %c0_14 = arith.constant 0 : index
    %c0_15 = arith.constant 0 : index
    %c72 = arith.constant 72 : index
    %25 = vector.load %arg1[%c0_14, %c0_15, %c72] : memref<8x8x96xbf16, #tpu.memory_space<vmem>>, vector<8x8x8xbf16>
    "tpu.trace_start"() <{level = 10 : i32, message = "bqd,bkd->bqk"}> : () -> ()
    %cst_16 = arith.constant dense<0.000000e+00> : vector<8x8x8xf32>
    %26 = tpu.matmul %23, %24, %cst_16 {dimension_numbers = #tpu.dot_dimension_numbers<[2], [2], [1], [1], [0, 0, 0, 1, 1, 1], [0], [0]>} : vector<8x8x8xbf16>, vector<8x8x8xbf16>, vector<8x8x8xf32> -> vector<8x8x8xf32>
    %cst_17 = arith.constant -1.000000e+30 : f32
    "tpu.trace_stop"() : () -> ()
    %27 = vector.shape_cast %2 : vector<1x1x8xi1> to vector<1x1x8xi1>
    %28 = vector.broadcast %27 : vector<1x1x8xi1> to vector<8x8x8xi1>
    %29 = vector.broadcast %cst_17 : f32 to vector<8x8x8xf32>
    %30 = arith.select %28, %29, %26 : vector<8x8x8xi1>, vector<8x8x8xf32>
    %cst_18 = arith.constant dense<0xFF800000> : vector<8x8xf32>
    %31 = vector.multi_reduction <maximumf>, %30, %cst_18 [2] : vector<8x8x8xf32> to vector<8x8xf32>
    %32 = vector.shape_cast %31 : vector<8x8xf32> to vector<8x8x1xf32>
    %33 = vector.broadcast %32 : vector<8x8x1xf32> to vector<8x8x8xf32>
    %34 = arith.subf %30, %33 : vector<8x8x8xf32>
    %35 = math.exp %34 : vector<8x8x8xf32>
    %cst_19 = arith.constant dense<0.000000e+00> : vector<8x8xf32>
    %36 = vector.multi_reduction <add>, %35, %cst_19 [2] : vector<8x8x8xf32> to vector<8x8xf32>
    %37 = vector.shape_cast %36 : vector<8x8xf32> to vector<8x8x1xf32>
    %38 = tpu.reciprocal %37 {approx = true} : vector<8x8x1xf32> -> vector<8x8x1xf32>
    %39 = vector.broadcast %38 : vector<8x8x1xf32> to vector<8x8x8xf32>
    %40 = arith.mulf %35, %39 : vector<8x8x8xf32>
    %41 = arith.truncf %40 : vector<8x8x8xf32> to vector<8x8x8xbf16>
    "tpu.trace_start"() <{level = 10 : i32, message = "bqk,bkd->bqd"}> : () -> ()
    %cst_20 = arith.constant dense<0.000000e+00> : vector<8x8x8xf32>
    %42 = tpu.matmul %41, %25, %cst_20 {dimension_numbers = #tpu.dot_dimension_numbers<[2], [1], [1], [2], [0, 0, 0, 1, 1, 2], [0], [0]>} : vector<8x8x8xbf16>, vector<8x8x8xbf16>, vector<8x8x8xf32> -> vector<8x8x8xf32>
    "tpu.trace_stop"() : () -> ()
    %c0_21 = arith.constant 0 : index
    %c0_22 = arith.constant 0 : index
    %c16 = arith.constant 16 : index
    %43 = vector.load %arg1[%c0_21, %c0_22, %c16] : memref<8x8x96xbf16, #tpu.memory_space<vmem>>, vector<8x8x8xbf16>
    %c0_23 = arith.constant 0 : index
    %c0_24 = arith.constant 0 : index
    %c48 = arith.constant 48 : index
    %44 = vector.load %arg1[%c0_23, %c0_24, %c48] : memref<8x8x96xbf16, #tpu.memory_space<vmem>>, vector<8x8x8xbf16>
    %c0_25 = arith.constant 0 : index
    %c0_26 = arith.constant 0 : index
    %c80 = arith.constant 80 : index
    %45 = vector.load %arg1[%c0_25, %c0_26, %c80] : memref<8x8x96xbf16, #tpu.memory_space<vmem>>, vector<8x8x8xbf16>
    "tpu.trace_start"() <{level = 10 : i32, message = "bqd,bkd->bqk"}> : () -> ()
    %cst_27 = arith.constant dense<0.000000e+00> : vector<8x8x8xf32>
    %46 = tpu.matmul %43, %44, %cst_27 {dimension_numbers = #tpu.dot_dimension_numbers<[2], [2], [1], [1], [0, 0, 0, 1, 1, 1], [0], [0]>} : vector<8x8x8xbf16>, vector<8x8x8xbf16>, vector<8x8x8xf32> -> vector<8x8x8xf32>
    %cst_28 = arith.constant -1.000000e+30 : f32
    "tpu.trace_stop"() : () -> ()
    %47 = vector.shape_cast %2 : vector<1x1x8xi1> to vector<1x1x8xi1>
    %48 = vector.broadcast %47 : vector<1x1x8xi1> to vector<8x8x8xi1>
    %49 = vector.broadcast %cst_28 : f32 to vector<8x8x8xf32>
    %50 = arith.select %48, %49, %46 : vector<8x8x8xi1>, vector<8x8x8xf32>
    %cst_29 = arith.constant dense<0xFF800000> : vector<8x8xf32>
    %51 = vector.multi_reduction <maximumf>, %50, %cst_29 [2] : vector<8x8x8xf32> to vector<8x8xf32>
    %52 = vector.shape_cast %51 : vector<8x8xf32> to vector<8x8x1xf32>
    %53 = vector.broadcast %52 : vector<8x8x1xf32> to vector<8x8x8xf32>
    %54 = arith.subf %50, %53 : vector<8x8x8xf32>
    %55 = math.exp %54 : vector<8x8x8xf32>
    %cst_30 = arith.constant dense<0.000000e+00> : vector<8x8xf32>
    %56 = vector.multi_reduction <add>, %55, %cst_30 [2] : vector<8x8x8xf32> to vector<8x8xf32>
    %57 = vector.shape_cast %56 : vector<8x8xf32> to vector<8x8x1xf32>
    %58 = tpu.reciprocal %57 {approx = true} : vector<8x8x1xf32> -> vector<8x8x1xf32>
    %59 = vector.broadcast %58 : vector<8x8x1xf32> to vector<8x8x8xf32>
    %60 = arith.mulf %55, %59 : vector<8x8x8xf32>
    %61 = arith.truncf %60 : vector<8x8x8xf32> to vector<8x8x8xbf16>
    "tpu.trace_start"() <{level = 10 : i32, message = "bqk,bkd->bqd"}> : () -> ()
    %cst_31 = arith.constant dense<0.000000e+00> : vector<8x8x8xf32>
    %62 = tpu.matmul %61, %45, %cst_31 {dimension_numbers = #tpu.dot_dimension_numbers<[2], [1], [1], [2], [0, 0, 0, 1, 1, 2], [0], [0]>} : vector<8x8x8xbf16>, vector<8x8x8xbf16>, vector<8x8x8xf32> -> vector<8x8x8xf32>
    "tpu.trace_stop"() : () -> ()
    %c0_32 = arith.constant 0 : index
    %c0_33 = arith.constant 0 : index
    %c24 = arith.constant 24 : index
    %63 = vector.load %arg1[%c0_32, %c0_33, %c24] : memref<8x8x96xbf16, #tpu.memory_space<vmem>>, vector<8x8x8xbf16>
    %c0_34 = arith.constant 0 : index
    %c0_35 = arith.constant 0 : index
    %c56 = arith.constant 56 : index
    %64 = vector.load %arg1[%c0_34, %c0_35, %c56] : memref<8x8x96xbf16, #tpu.memory_space<vmem>>, vector<8x8x8xbf16>
    %c0_36 = arith.constant 0 : index
    %c0_37 = arith.constant 0 : index
    %c88 = arith.constant 88 : index
    %65 = vector.load %arg1[%c0_36, %c0_37, %c88] : memref<8x8x96xbf16, #tpu.memory_space<vmem>>, vector<8x8x8xbf16>
    "tpu.trace_start"() <{level = 10 : i32, message = "bqd,bkd->bqk"}> : () -> ()
    %cst_38 = arith.constant dense<0.000000e+00> : vector<8x8x8xf32>
    %66 = tpu.matmul %63, %64, %cst_38 {dimension_numbers = #tpu.dot_dimension_numbers<[2], [2], [1], [1], [0, 0, 0, 1, 1, 1], [0], [0]>} : vector<8x8x8xbf16>, vector<8x8x8xbf16>, vector<8x8x8xf32> -> vector<8x8x8xf32>
    %cst_39 = arith.constant -1.000000e+30 : f32
    "tpu.trace_stop"() : () -> ()
    %67 = vector.shape_cast %2 : vector<1x1x8xi1> to vector<1x1x8xi1>
    %68 = vector.broadcast %67 : vector<1x1x8xi1> to vector<8x8x8xi1>
    %69 = vector.broadcast %cst_39 : f32 to vector<8x8x8xf32>
    %70 = arith.select %68, %69, %66 : vector<8x8x8xi1>, vector<8x8x8xf32>
    %cst_40 = arith.constant dense<0xFF800000> : vector<8x8xf32>
    %71 = vector.multi_reduction <maximumf>, %70, %cst_40 [2] : vector<8x8x8xf32> to vector<8x8xf32>
    %72 = vector.shape_cast %71 : vector<8x8xf32> to vector<8x8x1xf32>
    %73 = vector.broadcast %72 : vector<8x8x1xf32> to vector<8x8x8xf32>
    %74 = arith.subf %70, %73 : vector<8x8x8xf32>
    %75 = math.exp %74 : vector<8x8x8xf32>
    %cst_41 = arith.constant dense<0.000000e+00> : vector<8x8xf32>
    %76 = vector.multi_reduction <add>, %75, %cst_41 [2] : vector<8x8x8xf32> to vector<8x8xf32>
    %77 = vector.shape_cast %76 : vector<8x8xf32> to vector<8x8x1xf32>
    %78 = tpu.reciprocal %77 {approx = true} : vector<8x8x1xf32> -> vector<8x8x1xf32>
    %79 = vector.broadcast %78 : vector<8x8x1xf32> to vector<8x8x8xf32>
    %80 = arith.mulf %75, %79 : vector<8x8x8xf32>
    %81 = arith.truncf %80 : vector<8x8x8xf32> to vector<8x8x8xbf16>
    "tpu.trace_start"() <{level = 10 : i32, message = "bqk,bkd->bqd"}> : () -> ()
    %cst_42 = arith.constant dense<0.000000e+00> : vector<8x8x8xf32>
    %82 = tpu.matmul %81, %65, %cst_42 {dimension_numbers = #tpu.dot_dimension_numbers<[2], [1], [1], [2], [0, 0, 0, 1, 1, 2], [0], [0]>} : vector<8x8x8xbf16>, vector<8x8x8xbf16>, vector<8x8x8xf32> -> vector<8x8x8xf32>
    "tpu.trace_stop"() : () -> ()
    %83 = tpu.concatenate %22, %42, %62, %82 in 2 : vector<8x8x8xf32>, vector<8x8x8xf32>, vector<8x8x8xf32>, vector<8x8x8xf32> -> vector<8x8x32xf32>
    %84 = arith.truncf %83 : vector<8x8x32xf32> to vector<8x8x32xbf16>
    %c0_43 = arith.constant 0 : index
    %c0_44 = arith.constant 0 : index
    %c0_45 = arith.constant 0 : index
    %85 = vector.load %arg2[%c0_43, %c0_44, %c0_45] : memref<8x8x32xbf16, #tpu.memory_space<vmem>>, vector<8x8x32xbf16>
    tpu.vector_store %arg2[%c0_43, %c0_44, %c0_45], %84 {strides = array<i32>} : memref<8x8x32xbf16, #tpu.memory_space<vmem>>, vector<8x8x32xbf16>,
    return
  }
  func.func @transform_0(%arg0: i32) -> (i32, i32, i32) {
    %c0_i32 = arith.constant 0 : i32
    %c0_i32_0 = arith.constant 0 : i32
    %c0_i32_1 = arith.constant 0 : i32
    return %arg0, %c0_i32, %c0_i32_0 : i32, i32, i32
  }
  func.func @transform_1(%arg0: i32) -> (i32, i32, i32) {
    %c0_i32 = arith.constant 0 : i32
    %c0_i32_0 = arith.constant 0 : i32
    %c0_i32_1 = arith.constant 0 : i32
    return %arg0, %c0_i32, %c0_i32_0 : i32, i32, i32
  }
}

module attributes {stable_mosaic.version = 11 : i64} {
  func.func @_linear_ws_kernel(%arg0: i32, %arg1: memref<16x32xbf16, #tpu.memory_space<vmem>>, %arg2: memref<32x32xbf16, #tpu.memory_space<vmem>>, %arg3: memref<1x32xf32, #tpu.memory_space<vmem>>, %arg4: memref<16x32xbf16, #tpu.memory_space<vmem>>) attributes {dimension_semantics = [#tpu.dimension_semantics<parallel>], iteration_bounds = array<i64: 1>, scalar_prefetch = 0 : i64, scratch_operands = 0 : i64, tpu.core_type = #tpu.core_type<tc>, window_params = [{transform_indices = @transform_0, window_bounds = array<i64: 16, 32>}, {pipeline_mode = #tpu.pipeline_mode<synchronous>, transform_indices = @transform_1, window_bounds = array<i64: 32, 32>}, {pipeline_mode = #tpu.pipeline_mode<synchronous>, transform_indices = @transform_2, window_bounds = array<i64: 1, 32>}, {transform_indices = @transform_3, window_bounds = array<i64: 16, 32>}]} {
    %c0 = arith.constant 0 : index
    %c0_0 = arith.constant 0 : index
    %0 = vector.load %arg1[%c0, %c0_0] : memref<16x32xbf16, #tpu.memory_space<vmem>>, vector<16x32xbf16>
    %c0_1 = arith.constant 0 : index
    %c0_2 = arith.constant 0 : index
    %1 = vector.load %arg2[%c0_1, %c0_2] : memref<32x32xbf16, #tpu.memory_space<vmem>>, vector<32x32xbf16>
    %cst = arith.constant dense<0.000000e+00> : vector<16x32xf32>
    %2 = tpu.matmul %0, %1, %cst {dimension_numbers = #tpu.dot_dimension_numbers<[1], [0], [0], [1], [0, 0, 1, 1], [], []>} : vector<16x32xbf16>, vector<32x32xbf16>, vector<16x32xf32> -> vector<16x32xf32>
    %c0_3 = arith.constant 0 : index
    %c0_4 = arith.constant 0 : index
    %3 = vector.load %arg3[%c0_3, %c0_4] : memref<1x32xf32, #tpu.memory_space<vmem>>, vector<1x32xf32>
    %4 = vector.broadcast %3 : vector<1x32xf32> to vector<16x32xf32>
    %5 = arith.addf %2, %4 : vector<16x32xf32>
    %6 = arith.truncf %5 : vector<16x32xf32> to vector<16x32xbf16>
    %c0_5 = arith.constant 0 : index
    %c0_6 = arith.constant 0 : index
    %7 = vector.load %arg4[%c0_5, %c0_6] : memref<16x32xbf16, #tpu.memory_space<vmem>>, vector<16x32xbf16>
    tpu.vector_store %arg4[%c0_5, %c0_6], %6 {strides = array<i32>} : memref<16x32xbf16, #tpu.memory_space<vmem>>, vector<16x32xbf16>,
    return
  }
  func.func @transform_0(%arg0: i32) -> (i32, i32) {
    %c0_i32 = arith.constant 0 : i32
    %c0_i32_0 = arith.constant 0 : i32
    return %arg0, %c0_i32 : i32, i32
  }
  func.func @transform_1(%arg0: i32) -> (i32, i32) {
    %c0_i32 = arith.constant 0 : i32
    %c0_i32_0 = arith.constant 0 : i32
    %c0_i32_1 = arith.constant 0 : i32
    return %c0_i32, %c0_i32_0 : i32, i32
  }
  func.func @transform_2(%arg0: i32) -> (i32, i32) {
    %c0_i32 = arith.constant 0 : i32
    %c0_i32_0 = arith.constant 0 : i32
    %c0_i32_1 = arith.constant 0 : i32
    return %c0_i32, %c0_i32_0 : i32, i32
  }
  func.func @transform_3(%arg0: i32) -> (i32, i32) {
    %c0_i32 = arith.constant 0 : i32
    %c0_i32_0 = arith.constant 0 : i32
    return %arg0, %c0_i32 : i32, i32
  }
}

module attributes {stable_mosaic.version = 11 : i64} {
  func.func @_linear_ws_kernel(%arg0: i32, %arg1: memref<16x32xbf16, #tpu.memory_space<vmem>>, %arg2: memref<32x32xbf16, #tpu.memory_space<vmem>>, %arg3: memref<1x32xf32, #tpu.memory_space<vmem>>, %arg4: memref<16x32xbf16, #tpu.memory_space<vmem>>, %arg5: memref<16x32xbf16, #tpu.memory_space<vmem>>) attributes {dimension_semantics = [#tpu.dimension_semantics<parallel>], iteration_bounds = array<i64: 1>, scalar_prefetch = 0 : i64, scratch_operands = 0 : i64, tpu.core_type = #tpu.core_type<tc>, window_params = [{transform_indices = @transform_0, window_bounds = array<i64: 16, 32>}, {pipeline_mode = #tpu.pipeline_mode<synchronous>, transform_indices = @transform_1, window_bounds = array<i64: 32, 32>}, {pipeline_mode = #tpu.pipeline_mode<synchronous>, transform_indices = @transform_2, window_bounds = array<i64: 1, 32>}, {transform_indices = @transform_3, window_bounds = array<i64: 16, 32>}, {transform_indices = @transform_4, window_bounds = array<i64: 16, 32>}]} {
    %c0 = arith.constant 0 : index
    %c0_0 = arith.constant 0 : index
    %0 = vector.load %arg1[%c0, %c0_0] : memref<16x32xbf16, #tpu.memory_space<vmem>>, vector<16x32xbf16>
    %c0_1 = arith.constant 0 : index
    %c0_2 = arith.constant 0 : index
    %1 = vector.load %arg2[%c0_1, %c0_2] : memref<32x32xbf16, #tpu.memory_space<vmem>>, vector<32x32xbf16>
    %cst = arith.constant dense<0.000000e+00> : vector<16x32xf32>
    %2 = tpu.matmul %0, %1, %cst {dimension_numbers = #tpu.dot_dimension_numbers<[1], [0], [0], [1], [0, 0, 1, 1], [], []>} : vector<16x32xbf16>, vector<32x32xbf16>, vector<16x32xf32> -> vector<16x32xf32>
    %c0_3 = arith.constant 0 : index
    %c0_4 = arith.constant 0 : index
    %3 = vector.load %arg3[%c0_3, %c0_4] : memref<1x32xf32, #tpu.memory_space<vmem>>, vector<1x32xf32>
    %4 = vector.broadcast %3 : vector<1x32xf32> to vector<16x32xf32>
    %5 = arith.addf %2, %4 : vector<16x32xf32>
    %c0_5 = arith.constant 0 : index
    %c0_6 = arith.constant 0 : index
    %6 = vector.load %arg4[%c0_5, %c0_6] : memref<16x32xbf16, #tpu.memory_space<vmem>>, vector<16x32xbf16>
    %7 = arith.extf %6 : vector<16x32xbf16> to vector<16x32xf32>
    %8 = arith.addf %5, %7 : vector<16x32xf32>
    %9 = arith.truncf %8 : vector<16x32xf32> to vector<16x32xbf16>
    %c0_7 = arith.constant 0 : index
    %c0_8 = arith.constant 0 : index
    %10 = vector.load %arg5[%c0_7, %c0_8] : memref<16x32xbf16, #tpu.memory_space<vmem>>, vector<16x32xbf16>
    tpu.vector_store %arg5[%c0_7, %c0_8], %9 {strides = array<i32>} : memref<16x32xbf16, #tpu.memory_space<vmem>>, vector<16x32xbf16>,
    return
  }
  func.func @transform_0(%arg0: i32) -> (i32, i32) {
    %c0_i32 = arith.constant 0 : i32
    %c0_i32_0 = arith.constant 0 : i32
    return %arg0, %c0_i32 : i32, i32
  }
  func.func @transform_1(%arg0: i32) -> (i32, i32) {
    %c0_i32 = arith.constant 0 : i32
    %c0_i32_0 = arith.constant 0 : i32
    %c0_i32_1 = arith.constant 0 : i32
    return %c0_i32, %c0_i32_0 : i32, i32
  }
  func.func @transform_2(%arg0: i32) -> (i32, i32) {
    %c0_i32 = arith.constant 0 : i32
    %c0_i32_0 = arith.constant 0 : i32
    %c0_i32_1 = arith.constant 0 : i32
    return %c0_i32, %c0_i32_0 : i32, i32
  }
  func.func @transform_3(%arg0: i32) -> (i32, i32) {
    %c0_i32 = arith.constant 0 : i32
    %c0_i32_0 = arith.constant 0 : i32
    return %arg0, %c0_i32 : i32, i32
  }
  func.func @transform_4(%arg0: i32) -> (i32, i32) {
    %c0_i32 = arith.constant 0 : i32
    %c0_i32_0 = arith.constant 0 : i32
    return %arg0, %c0_i32 : i32, i32
  }
}

module attributes {stable_mosaic.version = 11 : i64} {
  func.func @_attention_kernel(%arg0: i32, %arg1: memref<4x8x96xbf16, #tpu.memory_space<vmem>>, %arg2: memref<4x8x32xbf16, #tpu.memory_space<vmem>>) attributes {dimension_semantics = [#tpu.dimension_semantics<parallel>], iteration_bounds = array<i64: 1>, scalar_prefetch = 0 : i64, scratch_operands = 0 : i64, tpu.core_type = #tpu.core_type<tc>, window_params = [{transform_indices = @transform_0, window_bounds = array<i64: 4, 8, 96>}, {transform_indices = @transform_1, window_bounds = array<i64: 4, 8, 32>}]} {
    %0 = tpu.iota {dimensions = array<i32: 2>} : vector<1x1x8xi32>
    %c5_i32 = arith.constant 5 : i32
    %1 = vector.broadcast %c5_i32 : i32 to vector<1x1x8xi32>
    %2 = arith.cmpi sge, %0, %1 : vector<1x1x8xi32>
    %c0 = arith.constant 0 : index
    %c0_0 = arith.constant 0 : index
    %c0_1 = arith.constant 0 : index
    %3 = vector.load %arg1[%c0, %c0_0, %c0_1] : memref<4x8x96xbf16, #tpu.memory_space<vmem>>, vector<4x8x8xbf16>
    %c0_2 = arith.constant 0 : index
    %c0_3 = arith.constant 0 : index
    %c32 = arith.constant 32 : index
    %4 = vector.load %arg1[%c0_2, %c0_3, %c32] : memref<4x8x96xbf16, #tpu.memory_space<vmem>>, vector<4x8x8xbf16>
    %c0_4 = arith.constant 0 : index
    %c0_5 = arith.constant 0 : index
    %c64 = arith.constant 64 : index
    %5 = vector.load %arg1[%c0_4, %c0_5, %c64] : memref<4x8x96xbf16, #tpu.memory_space<vmem>>, vector<4x8x8xbf16>
    "tpu.trace_start"() <{level = 10 : i32, message = "bqd,bkd->bqk"}> : () -> ()
    %cst = arith.constant dense<0.000000e+00> : vector<4x8x8xf32>
    %6 = tpu.matmul %3, %4, %cst {dimension_numbers = #tpu.dot_dimension_numbers<[2], [2], [1], [1], [0, 0, 0, 1, 1, 1], [0], [0]>} : vector<4x8x8xbf16>, vector<4x8x8xbf16>, vector<4x8x8xf32> -> vector<4x8x8xf32>
    %cst_6 = arith.constant -1.000000e+30 : f32
    "tpu.trace_stop"() : () -> ()
    %7 = vector.shape_cast %2 : vector<1x1x8xi1> to vector<1x1x8xi1>
    %8 = vector.broadcast %7 : vector<1x1x8xi1> to vector<4x8x8xi1>
    %9 = vector.broadcast %cst_6 : f32 to vector<4x8x8xf32>
    %10 = arith.select %8, %9, %6 : vector<4x8x8xi1>, vector<4x8x8xf32>
    %cst_7 = arith.constant dense<0xFF800000> : vector<4x8xf32>
    %11 = vector.multi_reduction <maximumf>, %10, %cst_7 [2] : vector<4x8x8xf32> to vector<4x8xf32>
    %12 = vector.shape_cast %11 : vector<4x8xf32> to vector<4x8x1xf32>
    %13 = vector.broadcast %12 : vector<4x8x1xf32> to vector<4x8x8xf32>
    %14 = arith.subf %10, %13 : vector<4x8x8xf32>
    %15 = math.exp %14 : vector<4x8x8xf32>
    %cst_8 = arith.constant dense<0.000000e+00> : vector<4x8xf32>
    %16 = vector.multi_reduction <add>, %15, %cst_8 [2] : vector<4x8x8xf32> to vector<4x8xf32>
    %17 = vector.shape_cast %16 : vector<4x8xf32> to vector<4x8x1xf32>
    %18 = tpu.reciprocal %17 {approx = true} : vector<4x8x1xf32> -> vector<4x8x1xf32>
    %19 = vector.broadcast %18 : vector<4x8x1xf32> to vector<4x8x8xf32>
    %20 = arith.mulf %15, %19 : vector<4x8x8xf32>
    %21 = arith.truncf %20 : vector<4x8x8xf32> to vector<4x8x8xbf16>
    "tpu.trace_start"() <{level = 10 : i32, message = "bqk,bkd->bqd"}> : () -> ()
    %cst_9 = arith.constant dense<0.000000e+00> : vector<4x8x8xf32>
    %22 = tpu.matmul %21, %5, %cst_9 {dimension_numbers = #tpu.dot_dimension_numbers<[2], [1], [1], [2], [0, 0, 0, 1, 1, 2], [0], [0]>} : vector<4x8x8xbf16>, vector<4x8x8xbf16>, vector<4x8x8xf32> -> vector<4x8x8xf32>
    "tpu.trace_stop"() : () -> ()
    %c0_10 = arith.constant 0 : index
    %c0_11 = arith.constant 0 : index
    %c8 = arith.constant 8 : index
    %23 = vector.load %arg1[%c0_10, %c0_11, %c8] : memref<4x8x96xbf16, #tpu.memory_space<vmem>>, vector<4x8x8xbf16>
    %c0_12 = arith.constant 0 : index
    %c0_13 = arith.constant 0 : index
    %c40 = arith.constant 40 : index
    %24 = vector.load %arg1[%c0_12, %c0_13, %c40] : memref<4x8x96xbf16, #tpu.memory_space<vmem>>, vector<4x8x8xbf16>
    %c0_14 = arith.constant 0 : index
    %c0_15 = arith.constant 0 : index
    %c72 = arith.constant 72 : index
    %25 = vector.load %arg1[%c0_14, %c0_15, %c72] : memref<4x8x96xbf16, #tpu.memory_space<vmem>>, vector<4x8x8xbf16>
    "tpu.trace_start"() <{level = 10 : i32, message = "bqd,bkd->bqk"}> : () -> ()
    %cst_16 = arith.constant dense<0.000000e+00> : vector<4x8x8xf32>
    %26 = tpu.matmul %23, %24, %cst_16 {dimension_numbers = #tpu.dot_dimension_numbers<[2], [2], [1], [1], [0, 0, 0, 1, 1, 1], [0], [0]>} : vector<4x8x8xbf16>, vector<4x8x8xbf16>, vector<4x8x8xf32> -> vector<4x8x8xf32>
    %cst_17 = arith.constant -1.000000e+30 : f32
    "tpu.trace_stop"() : () -> ()
    %27 = vector.shape_cast %2 : vector<1x1x8xi1> to vector<1x1x8xi1>
    %28 = vector.broadcast %27 : vector<1x1x8xi1> to vector<4x8x8xi1>
    %29 = vector.broadcast %cst_17 : f32 to vector<4x8x8xf32>
    %30 = arith.select %28, %29, %26 : vector<4x8x8xi1>, vector<4x8x8xf32>
    %cst_18 = arith.constant dense<0xFF800000> : vector<4x8xf32>
    %31 = vector.multi_reduction <maximumf>, %30, %cst_18 [2] : vector<4x8x8xf32> to vector<4x8xf32>
    %32 = vector.shape_cast %31 : vector<4x8xf32> to vector<4x8x1xf32>
    %33 = vector.broadcast %32 : vector<4x8x1xf32> to vector<4x8x8xf32>
    %34 = arith.subf %30, %33 : vector<4x8x8xf32>
    %35 = math.exp %34 : vector<4x8x8xf32>
    %cst_19 = arith.constant dense<0.000000e+00> : vector<4x8xf32>
    %36 = vector.multi_reduction <add>, %35, %cst_19 [2] : vector<4x8x8xf32> to vector<4x8xf32>
    %37 = vector.shape_cast %36 : vector<4x8xf32> to vector<4x8x1xf32>
    %38 = tpu.reciprocal %37 {approx = true} : vector<4x8x1xf32> -> vector<4x8x1xf32>
    %39 = vector.broadcast %38 : vector<4x8x1xf32> to vector<4x8x8xf32>
    %40 = arith.mulf %35, %39 : vector<4x8x8xf32>
    %41 = arith.truncf %40 : vector<4x8x8xf32> to vector<4x8x8xbf16>
    "tpu.trace_start"() <{level = 10 : i32, message = "bqk,bkd->bqd"}> : () -> ()
    %cst_20 = arith.constant dense<0.000000e+00> : vector<4x8x8xf32>
    %42 = tpu.matmul %41, %25, %cst_20 {dimension_numbers = #tpu.dot_dimension_numbers<[2], [1], [1], [2], [0, 0, 0, 1, 1, 2], [0], [0]>} : vector<4x8x8xbf16>, vector<4x8x8xbf16>, vector<4x8x8xf32> -> vector<4x8x8xf32>
    "tpu.trace_stop"() : () -> ()
    %c0_21 = arith.constant 0 : index
    %c0_22 = arith.constant 0 : index
    %c16 = arith.constant 16 : index
    %43 = vector.load %arg1[%c0_21, %c0_22, %c16] : memref<4x8x96xbf16, #tpu.memory_space<vmem>>, vector<4x8x8xbf16>
    %c0_23 = arith.constant 0 : index
    %c0_24 = arith.constant 0 : index
    %c48 = arith.constant 48 : index
    %44 = vector.load %arg1[%c0_23, %c0_24, %c48] : memref<4x8x96xbf16, #tpu.memory_space<vmem>>, vector<4x8x8xbf16>
    %c0_25 = arith.constant 0 : index
    %c0_26 = arith.constant 0 : index
    %c80 = arith.constant 80 : index
    %45 = vector.load %arg1[%c0_25, %c0_26, %c80] : memref<4x8x96xbf16, #tpu.memory_space<vmem>>, vector<4x8x8xbf16>
    "tpu.trace_start"() <{level = 10 : i32, message = "bqd,bkd->bqk"}> : () -> ()
    %cst_27 = arith.constant dense<0.000000e+00> : vector<4x8x8xf32>
    %46 = tpu.matmul %43, %44, %cst_27 {dimension_numbers = #tpu.dot_dimension_numbers<[2], [2], [1], [1], [0, 0, 0, 1, 1, 1], [0], [0]>} : vector<4x8x8xbf16>, vector<4x8x8xbf16>, vector<4x8x8xf32> -> vector<4x8x8xf32>
    %cst_28 = arith.constant -1.000000e+30 : f32
    "tpu.trace_stop"() : () -> ()
    %47 = vector.shape_cast %2 : vector<1x1x8xi1> to vector<1x1x8xi1>
    %48 = vector.broadcast %47 : vector<1x1x8xi1> to vector<4x8x8xi1>
    %49 = vector.broadcast %cst_28 : f32 to vector<4x8x8xf32>
    %50 = arith.select %48, %49, %46 : vector<4x8x8xi1>, vector<4x8x8xf32>
    %cst_29 = arith.constant dense<0xFF800000> : vector<4x8xf32>
    %51 = vector.multi_reduction <maximumf>, %50, %cst_29 [2] : vector<4x8x8xf32> to vector<4x8xf32>
    %52 = vector.shape_cast %51 : vector<4x8xf32> to vector<4x8x1xf32>
    %53 = vector.broadcast %52 : vector<4x8x1xf32> to vector<4x8x8xf32>
    %54 = arith.subf %50, %53 : vector<4x8x8xf32>
    %55 = math.exp %54 : vector<4x8x8xf32>
    %cst_30 = arith.constant dense<0.000000e+00> : vector<4x8xf32>
    %56 = vector.multi_reduction <add>, %55, %cst_30 [2] : vector<4x8x8xf32> to vector<4x8xf32>
    %57 = vector.shape_cast %56 : vector<4x8xf32> to vector<4x8x1xf32>
    %58 = tpu.reciprocal %57 {approx = true} : vector<4x8x1xf32> -> vector<4x8x1xf32>
    %59 = vector.broadcast %58 : vector<4x8x1xf32> to vector<4x8x8xf32>
    %60 = arith.mulf %55, %59 : vector<4x8x8xf32>
    %61 = arith.truncf %60 : vector<4x8x8xf32> to vector<4x8x8xbf16>
    "tpu.trace_start"() <{level = 10 : i32, message = "bqk,bkd->bqd"}> : () -> ()
    %cst_31 = arith.constant dense<0.000000e+00> : vector<4x8x8xf32>
    %62 = tpu.matmul %61, %45, %cst_31 {dimension_numbers = #tpu.dot_dimension_numbers<[2], [1], [1], [2], [0, 0, 0, 1, 1, 2], [0], [0]>} : vector<4x8x8xbf16>, vector<4x8x8xbf16>, vector<4x8x8xf32> -> vector<4x8x8xf32>
    "tpu.trace_stop"() : () -> ()
    %c0_32 = arith.constant 0 : index
    %c0_33 = arith.constant 0 : index
    %c24 = arith.constant 24 : index
    %63 = vector.load %arg1[%c0_32, %c0_33, %c24] : memref<4x8x96xbf16, #tpu.memory_space<vmem>>, vector<4x8x8xbf16>
    %c0_34 = arith.constant 0 : index
    %c0_35 = arith.constant 0 : index
    %c56 = arith.constant 56 : index
    %64 = vector.load %arg1[%c0_34, %c0_35, %c56] : memref<4x8x96xbf16, #tpu.memory_space<vmem>>, vector<4x8x8xbf16>
    %c0_36 = arith.constant 0 : index
    %c0_37 = arith.constant 0 : index
    %c88 = arith.constant 88 : index
    %65 = vector.load %arg1[%c0_36, %c0_37, %c88] : memref<4x8x96xbf16, #tpu.memory_space<vmem>>, vector<4x8x8xbf16>
    "tpu.trace_start"() <{level = 10 : i32, message = "bqd,bkd->bqk"}> : () -> ()
    %cst_38 = arith.constant dense<0.000000e+00> : vector<4x8x8xf32>
    %66 = tpu.matmul %63, %64, %cst_38 {dimension_numbers = #tpu.dot_dimension_numbers<[2], [2], [1], [1], [0, 0, 0, 1, 1, 1], [0], [0]>} : vector<4x8x8xbf16>, vector<4x8x8xbf16>, vector<4x8x8xf32> -> vector<4x8x8xf32>
    %cst_39 = arith.constant -1.000000e+30 : f32
    "tpu.trace_stop"() : () -> ()
    %67 = vector.shape_cast %2 : vector<1x1x8xi1> to vector<1x1x8xi1>
    %68 = vector.broadcast %67 : vector<1x1x8xi1> to vector<4x8x8xi1>
    %69 = vector.broadcast %cst_39 : f32 to vector<4x8x8xf32>
    %70 = arith.select %68, %69, %66 : vector<4x8x8xi1>, vector<4x8x8xf32>
    %cst_40 = arith.constant dense<0xFF800000> : vector<4x8xf32>
    %71 = vector.multi_reduction <maximumf>, %70, %cst_40 [2] : vector<4x8x8xf32> to vector<4x8xf32>
    %72 = vector.shape_cast %71 : vector<4x8xf32> to vector<4x8x1xf32>
    %73 = vector.broadcast %72 : vector<4x8x1xf32> to vector<4x8x8xf32>
    %74 = arith.subf %70, %73 : vector<4x8x8xf32>
    %75 = math.exp %74 : vector<4x8x8xf32>
    %cst_41 = arith.constant dense<0.000000e+00> : vector<4x8xf32>
    %76 = vector.multi_reduction <add>, %75, %cst_41 [2] : vector<4x8x8xf32> to vector<4x8xf32>
    %77 = vector.shape_cast %76 : vector<4x8xf32> to vector<4x8x1xf32>
    %78 = tpu.reciprocal %77 {approx = true} : vector<4x8x1xf32> -> vector<4x8x1xf32>
    %79 = vector.broadcast %78 : vector<4x8x1xf32> to vector<4x8x8xf32>
    %80 = arith.mulf %75, %79 : vector<4x8x8xf32>
    %81 = arith.truncf %80 : vector<4x8x8xf32> to vector<4x8x8xbf16>
    "tpu.trace_start"() <{level = 10 : i32, message = "bqk,bkd->bqd"}> : () -> ()
    %cst_42 = arith.constant dense<0.000000e+00> : vector<4x8x8xf32>
    %82 = tpu.matmul %81, %65, %cst_42 {dimension_numbers = #tpu.dot_dimension_numbers<[2], [1], [1], [2], [0, 0, 0, 1, 1, 2], [0], [0]>} : vector<4x8x8xbf16>, vector<4x8x8xbf16>, vector<4x8x8xf32> -> vector<4x8x8xf32>
    "tpu.trace_stop"() : () -> ()
    %83 = tpu.concatenate %22, %42, %62, %82 in 2 : vector<4x8x8xf32>, vector<4x8x8xf32>, vector<4x8x8xf32>, vector<4x8x8xf32> -> vector<4x8x32xf32>
    %84 = arith.truncf %83 : vector<4x8x32xf32> to vector<4x8x32xbf16>
    %c0_43 = arith.constant 0 : index
    %c0_44 = arith.constant 0 : index
    %c0_45 = arith.constant 0 : index
    %85 = vector.load %arg2[%c0_43, %c0_44, %c0_45] : memref<4x8x32xbf16, #tpu.memory_space<vmem>>, vector<4x8x32xbf16>
    tpu.vector_store %arg2[%c0_43, %c0_44, %c0_45], %84 {strides = array<i32>} : memref<4x8x32xbf16, #tpu.memory_space<vmem>>, vector<4x8x32xbf16>,
    return
  }
  func.func @transform_0(%arg0: i32) -> (i32, i32, i32) {
    %c0_i32 = arith.constant 0 : i32
    %c0_i32_0 = arith.constant 0 : i32
    %c0_i32_1 = arith.constant 0 : i32
    return %arg0, %c0_i32, %c0_i32_0 : i32, i32, i32
  }
  func.func @transform_1(%arg0: i32) -> (i32, i32, i32) {
    %c0_i32 = arith.constant 0 : i32
    %c0_i32_0 = arith.constant 0 : i32
    %c0_i32_1 = arith.constant 0 : i32
    return %arg0, %c0_i32, %c0_i32_0 : i32, i32, i32
  }
}

module attributes {stable_mosaic.version = 11 : i64} {
  func.func @_linear_ws_kernel(%arg0: i32, %arg1: memref<20x32xbf16, #tpu.memory_space<vmem>>, %arg2: memref<32x96xbf16, #tpu.memory_space<vmem>>, %arg3: memref<1x96xf32, #tpu.memory_space<vmem>>, %arg4: memref<1x32xf32, #tpu.memory_space<vmem>>, %arg5: memref<1x32xf32, #tpu.memory_space<vmem>>, %arg6: memref<20x96xbf16, #tpu.memory_space<vmem>>) attributes {dimension_semantics = [#tpu.dimension_semantics<parallel>], iteration_bounds = array<i64: 1>, scalar_prefetch = 0 : i64, scratch_operands = 0 : i64, tpu.core_type = #tpu.core_type<tc>, window_params = [{transform_indices = @transform_0, window_bounds = array<i64: 20, 32>}, {pipeline_mode = #tpu.pipeline_mode<synchronous>, transform_indices = @transform_1, window_bounds = array<i64: 32, 96>}, {pipeline_mode = #tpu.pipeline_mode<synchronous>, transform_indices = @transform_2, window_bounds = array<i64: 1, 96>}, {pipeline_mode = #tpu.pipeline_mode<synchronous>, transform_indices = @transform_3, window_bounds = array<i64: 1, 32>}, {pipeline_mode = #tpu.pipeline_mode<synchronous>, transform_indices = @transform_4, window_bounds = array<i64: 1, 32>}, {transform_indices = @transform_5, window_bounds = array<i64: 20, 96>}]} {
    %c0 = arith.constant 0 : index
    %c0_0 = arith.constant 0 : index
    %0 = vector.load %arg1[%c0, %c0_0] : memref<20x32xbf16, #tpu.memory_space<vmem>>, vector<20x32xbf16>
    %1 = arith.extf %0 : vector<20x32xbf16> to vector<20x32xf32>
    %cst = arith.constant dense<0.000000e+00> : vector<20xf32>
    %2 = vector.multi_reduction <add>, %1, %cst [1] : vector<20x32xf32> to vector<20xf32>
    %3 = vector.shape_cast %2 : vector<20xf32> to vector<20x1xf32>
    %cst_1 = arith.constant 3.200000e+01 : f32
    %4 = vector.broadcast %cst_1 : f32 to vector<20x1xf32>
    %5 = arith.divf %3, %4 : vector<20x1xf32>
    %6 = vector.broadcast %5 : vector<20x1xf32> to vector<20x32xf32>
    %7 = arith.subf %1, %6 : vector<20x32xf32>
    %8 = arith.mulf %7, %7 : vector<20x32xf32>
    %cst_2 = arith.constant dense<0.000000e+00> : vector<20xf32>
    %9 = vector.multi_reduction <add>, %8, %cst_2 [1] : vector<20x32xf32> to vector<20xf32>
    %10 = vector.shape_cast %9 : vector<20xf32> to vector<20x1xf32>
    %cst_3 = arith.constant 3.200000e+01 : f32
    %11 = vector.broadcast %cst_3 : f32 to vector<20x1xf32>
    %12 = arith.divf %10, %11 : vector<20x1xf32>
    %cst_4 = arith.constant 9.99999997E-7 : f32
    %13 = vector.broadcast %cst_4 : f32 to vector<20x1xf32>
    %14 = arith.addf %12, %13 : vector<20x1xf32>
    %15 = math.rsqrt %14 : vector<20x1xf32>
    %16 = vector.broadcast %15 : vector<20x1xf32> to vector<20x32xf32>
    %17 = arith.mulf %7, %16 : vector<20x32xf32>
    %c0_5 = arith.constant 0 : index
    %c0_6 = arith.constant 0 : index
    %18 = vector.load %arg4[%c0_5, %c0_6] : memref<1x32xf32, #tpu.memory_space<vmem>>, vector<1x32xf32>
    %19 = vector.broadcast %18 : vector<1x32xf32> to vector<20x32xf32>
    %20 = arith.mulf %17, %19 : vector<20x32xf32>
    %c0_7 = arith.constant 0 : index
    %c0_8 = arith.constant 0 : index
    %21 = vector.load %arg5[%c0_7, %c0_8] : memref<1x32xf32, #tpu.memory_space<vmem>>, vector<1x32xf32>
    %22 = vector.broadcast %21 : vector<1x32xf32> to vector<20x32xf32>
    %23 = arith.addf %20, %22 : vector<20x32xf32>
    %24 = arith.truncf %23 : vector<20x32xf32> to vector<20x32xbf16>
    %c0_9 = arith.constant 0 : index
    %c0_10 = arith.constant 0 : index
    %25 = vector.load %arg2[%c0_9, %c0_10] : memref<32x96xbf16, #tpu.memory_space<vmem>>, vector<32x96xbf16>
    %cst_11 = arith.constant dense<0.000000e+00> : vector<20x96xf32>
    %26 = tpu.matmul %24, %25, %cst_11 {dimension_numbers = #tpu.dot_dimension_numbers<[1], [0], [0], [1], [0, 0, 1, 1], [], []>} : vector<20x32xbf16>, vector<32x96xbf16>, vector<20x96xf32> -> vector<20x96xf32>
    %c0_12 = arith.constant 0 : index
    %c0_13 = arith.constant 0 : index
    %27 = vector.load %arg3[%c0_12, %c0_13] : memref<1x96xf32, #tpu.memory_space<vmem>>, vector<1x96xf32>
    %28 = vector.broadcast %27 : vector<1x96xf32> to vector<20x96xf32>
    %29 = arith.addf %26, %28 : vector<20x96xf32>
    %30 = arith.truncf %29 : vector<20x96xf32> to vector<20x96xbf16>
    %c0_14 = arith.constant 0 : index
    %c0_15 = arith.constant 0 : index
    %31 = vector.load %arg6[%c0_14, %c0_15] : memref<20x96xbf16, #tpu.memory_space<vmem>>, vector<20x96xbf16>
    tpu.vector_store %arg6[%c0_14, %c0_15], %30 {strides = array<i32>} : memref<20x96xbf16, #tpu.memory_space<vmem>>, vector<20x96xbf16>,
    return
  }
  func.func @transform_0(%arg0: i32) -> (i32, i32) {
    %c0_i32 = arith.constant 0 : i32
    %c0_i32_0 = arith.constant 0 : i32
    return %arg0, %c0_i32 : i32, i32
  }
  func.func @transform_1(%arg0: i32) -> (i32, i32) {
    %c0_i32 = arith.constant 0 : i32
    %c0_i32_0 = arith.constant 0 : i32
    %c0_i32_1 = arith.constant 0 : i32
    return %c0_i32, %c0_i32_0 : i32, i32
  }
  func.func @transform_2(%arg0: i32) -> (i32, i32) {
    %c0_i32 = arith.constant 0 : i32
    %c0_i32_0 = arith.constant 0 : i32
    %c0_i32_1 = arith.constant 0 : i32
    return %c0_i32, %c0_i32_0 : i32, i32
  }
  func.func @transform_3(%arg0: i32) -> (i32, i32) {
    %c0_i32 = arith.constant 0 : i32
    %c0_i32_0 = arith.constant 0 : i32
    %c0_i32_1 = arith.constant 0 : i32
    return %c0_i32, %c0_i32_0 : i32, i32
  }
  func.func @transform_4(%arg0: i32) -> (i32, i32) {
    %c0_i32 = arith.constant 0 : i32
    %c0_i32_0 = arith.constant 0 : i32
    %c0_i32_1 = arith.constant 0 : i32
    return %c0_i32, %c0_i32_0 : i32, i32
  }
  func.func @transform_5(%arg0: i32) -> (i32, i32) {
    %c0_i32 = arith.constant 0 : i32
    %c0_i32_0 = arith.constant 0 : i32
    return %arg0, %c0_i32 : i32, i32
  }
}

module attributes {stable_mosaic.version = 11 : i64} {
  func.func @_linear_ws_kernel(%arg0: i32, %arg1: memref<20x32xbf16, #tpu.memory_space<vmem>>, %arg2: memref<32x32xbf16, #tpu.memory_space<vmem>>, %arg3: memref<1x32xf32, #tpu.memory_space<vmem>>, %arg4: memref<20x32xbf16, #tpu.memory_space<vmem>>) attributes {dimension_semantics = [#tpu.dimension_semantics<parallel>], iteration_bounds = array<i64: 1>, scalar_prefetch = 0 : i64, scratch_operands = 0 : i64, tpu.core_type = #tpu.core_type<tc>, window_params = [{transform_indices = @transform_0, window_bounds = array<i64: 20, 32>}, {pipeline_mode = #tpu.pipeline_mode<synchronous>, transform_indices = @transform_1, window_bounds = array<i64: 32, 32>}, {pipeline_mode = #tpu.pipeline_mode<synchronous>, transform_indices = @transform_2, window_bounds = array<i64: 1, 32>}, {transform_indices = @transform_3, window_bounds = array<i64: 20, 32>}]} {
    %c0 = arith.constant 0 : index
    %c0_0 = arith.constant 0 : index
    %0 = vector.load %arg1[%c0, %c0_0] : memref<20x32xbf16, #tpu.memory_space<vmem>>, vector<20x32xbf16>
    %c0_1 = arith.constant 0 : index
    %c0_2 = arith.constant 0 : index
    %1 = vector.load %arg2[%c0_1, %c0_2] : memref<32x32xbf16, #tpu.memory_space<vmem>>, vector<32x32xbf16>
    %cst = arith.constant dense<0.000000e+00> : vector<20x32xf32>
    %2 = tpu.matmul %0, %1, %cst {dimension_numbers = #tpu.dot_dimension_numbers<[1], [0], [0], [1], [0, 0, 1, 1], [], []>} : vector<20x32xbf16>, vector<32x32xbf16>, vector<20x32xf32> -> vector<20x32xf32>
    %c0_3 = arith.constant 0 : index
    %c0_4 = arith.constant 0 : index
    %3 = vector.load %arg3[%c0_3, %c0_4] : memref<1x32xf32, #tpu.memory_space<vmem>>, vector<1x32xf32>
    %4 = vector.broadcast %3 : vector<1x32xf32> to vector<20x32xf32>
    %5 = arith.addf %2, %4 : vector<20x32xf32>
    %6 = arith.truncf %5 : vector<20x32xf32> to vector<20x32xbf16>
    %c0_5 = arith.constant 0 : index
    %c0_6 = arith.constant 0 : index
    %7 = vector.load %arg4[%c0_5, %c0_6] : memref<20x32xbf16, #tpu.memory_space<vmem>>, vector<20x32xbf16>
    tpu.vector_store %arg4[%c0_5, %c0_6], %6 {strides = array<i32>} : memref<20x32xbf16, #tpu.memory_space<vmem>>, vector<20x32xbf16>,
    return
  }
  func.func @transform_0(%arg0: i32) -> (i32, i32) {
    %c0_i32 = arith.constant 0 : i32
    %c0_i32_0 = arith.constant 0 : i32
    return %arg0, %c0_i32 : i32, i32
  }
  func.func @transform_1(%arg0: i32) -> (i32, i32) {
    %c0_i32 = arith.constant 0 : i32
    %c0_i32_0 = arith.constant 0 : i32
    %c0_i32_1 = arith.constant 0 : i32
    return %c0_i32, %c0_i32_0 : i32, i32
  }
  func.func @transform_2(%arg0: i32) -> (i32, i32) {
    %c0_i32 = arith.constant 0 : i32
    %c0_i32_0 = arith.constant 0 : i32
    %c0_i32_1 = arith.constant 0 : i32
    return %c0_i32, %c0_i32_0 : i32, i32
  }
  func.func @transform_3(%arg0: i32) -> (i32, i32) {
    %c0_i32 = arith.constant 0 : i32
    %c0_i32_0 = arith.constant 0 : i32
    return %arg0, %c0_i32 : i32, i32
  }
}

module attributes {stable_mosaic.version = 11 : i64} {
  func.func @_linear_ws_kernel(%arg0: i32, %arg1: memref<18x32xbf16, #tpu.memory_space<vmem>>, %arg2: memref<32x64xbf16, #tpu.memory_space<vmem>>, %arg3: memref<1x64xf32, #tpu.memory_space<vmem>>, %arg4: memref<1x32xf32, #tpu.memory_space<vmem>>, %arg5: memref<1x32xf32, #tpu.memory_space<vmem>>, %arg6: memref<18x64xbf16, #tpu.memory_space<vmem>>) attributes {dimension_semantics = [#tpu.dimension_semantics<parallel>], iteration_bounds = array<i64: 1>, scalar_prefetch = 0 : i64, scratch_operands = 0 : i64, tpu.core_type = #tpu.core_type<tc>, window_params = [{transform_indices = @transform_0, window_bounds = array<i64: 18, 32>}, {pipeline_mode = #tpu.pipeline_mode<synchronous>, transform_indices = @transform_1, window_bounds = array<i64: 32, 64>}, {pipeline_mode = #tpu.pipeline_mode<synchronous>, transform_indices = @transform_2, window_bounds = array<i64: 1, 64>}, {pipeline_mode = #tpu.pipeline_mode<synchronous>, transform_indices = @transform_3, window_bounds = array<i64: 1, 32>}, {pipeline_mode = #tpu.pipeline_mode<synchronous>, transform_indices = @transform_4, window_bounds = array<i64: 1, 32>}, {transform_indices = @transform_5, window_bounds = array<i64: 18, 64>}]} {
    %c0 = arith.constant 0 : index
    %c0_0 = arith.constant 0 : index
    %0 = vector.load %arg1[%c0, %c0_0] : memref<18x32xbf16, #tpu.memory_space<vmem>>, vector<18x32xbf16>
    %1 = arith.extf %0 : vector<18x32xbf16> to vector<18x32xf32>
    %cst = arith.constant dense<0.000000e+00> : vector<18xf32>
    %2 = vector.multi_reduction <add>, %1, %cst [1] : vector<18x32xf32> to vector<18xf32>
    %3 = vector.shape_cast %2 : vector<18xf32> to vector<18x1xf32>
    %cst_1 = arith.constant 3.200000e+01 : f32
    %4 = vector.broadcast %cst_1 : f32 to vector<18x1xf32>
    %5 = arith.divf %3, %4 : vector<18x1xf32>
    %6 = vector.broadcast %5 : vector<18x1xf32> to vector<18x32xf32>
    %7 = arith.subf %1, %6 : vector<18x32xf32>
    %8 = arith.mulf %7, %7 : vector<18x32xf32>
    %cst_2 = arith.constant dense<0.000000e+00> : vector<18xf32>
    %9 = vector.multi_reduction <add>, %8, %cst_2 [1] : vector<18x32xf32> to vector<18xf32>
    %10 = vector.shape_cast %9 : vector<18xf32> to vector<18x1xf32>
    %cst_3 = arith.constant 3.200000e+01 : f32
    %11 = vector.broadcast %cst_3 : f32 to vector<18x1xf32>
    %12 = arith.divf %10, %11 : vector<18x1xf32>
    %cst_4 = arith.constant 9.99999997E-7 : f32
    %13 = vector.broadcast %cst_4 : f32 to vector<18x1xf32>
    %14 = arith.addf %12, %13 : vector<18x1xf32>
    %15 = math.rsqrt %14 : vector<18x1xf32>
    %16 = vector.broadcast %15 : vector<18x1xf32> to vector<18x32xf32>
    %17 = arith.mulf %7, %16 : vector<18x32xf32>
    %c0_5 = arith.constant 0 : index
    %c0_6 = arith.constant 0 : index
    %18 = vector.load %arg4[%c0_5, %c0_6] : memref<1x32xf32, #tpu.memory_space<vmem>>, vector<1x32xf32>
    %19 = vector.broadcast %18 : vector<1x32xf32> to vector<18x32xf32>
    %20 = arith.mulf %17, %19 : vector<18x32xf32>
    %c0_7 = arith.constant 0 : index
    %c0_8 = arith.constant 0 : index
    %21 = vector.load %arg5[%c0_7, %c0_8] : memref<1x32xf32, #tpu.memory_space<vmem>>, vector<1x32xf32>
    %22 = vector.broadcast %21 : vector<1x32xf32> to vector<18x32xf32>
    %23 = arith.addf %20, %22 : vector<18x32xf32>
    %24 = arith.truncf %23 : vector<18x32xf32> to vector<18x32xbf16>
    %c0_9 = arith.constant 0 : index
    %c0_10 = arith.constant 0 : index
    %25 = vector.load %arg2[%c0_9, %c0_10] : memref<32x64xbf16, #tpu.memory_space<vmem>>, vector<32x64xbf16>
    %cst_11 = arith.constant dense<0.000000e+00> : vector<18x64xf32>
    %26 = tpu.matmul %24, %25, %cst_11 {dimension_numbers = #tpu.dot_dimension_numbers<[1], [0], [0], [1], [0, 0, 1, 1], [], []>} : vector<18x32xbf16>, vector<32x64xbf16>, vector<18x64xf32> -> vector<18x64xf32>
    %c0_12 = arith.constant 0 : index
    %c0_13 = arith.constant 0 : index
    %27 = vector.load %arg3[%c0_12, %c0_13] : memref<1x64xf32, #tpu.memory_space<vmem>>, vector<1x64xf32>
    %28 = vector.broadcast %27 : vector<1x64xf32> to vector<18x64xf32>
    %29 = arith.addf %26, %28 : vector<18x64xf32>
    %30 = arith.mulf %29, %29 : vector<18x64xf32>
    %31 = arith.mulf %29, %30 : vector<18x64xf32>
    %cst_14 = arith.constant 4.471500e-02 : f32
    %32 = vector.broadcast %cst_14 : f32 to vector<18x64xf32>
    %33 = arith.mulf %32, %31 : vector<18x64xf32>
    %34 = arith.addf %29, %33 : vector<18x64xf32>
    %cst_15 = arith.constant 0.797884583 : f32
    %35 = vector.broadcast %cst_15 : f32 to vector<18x64xf32>
    %36 = arith.mulf %35, %34 : vector<18x64xf32>
    %37 = math.tanh %36 : vector<18x64xf32>
    %cst_16 = arith.constant 1.000000e+00 : f32
    %38 = vector.broadcast %cst_16 : f32 to vector<18x64xf32>
    %39 = arith.addf %38, %37 : vector<18x64xf32>
    %cst_17 = arith.constant 5.000000e-01 : f32
    %40 = vector.broadcast %cst_17 : f32 to vector<18x64xf32>
    %41 = arith.mulf %40, %39 : vector<18x64xf32>
    %42 = arith.mulf %29, %41 : vector<18x64xf32>
    %43 = arith.truncf %42 : vector<18x64xf32> to vector<18x64xbf16>
    %c0_18 = arith.constant 0 : index
    %c0_19 = arith.constant 0 : index
    %44 = vector.load %arg6[%c0_18, %c0_19] : memref<18x64xbf16, #tpu.memory_space<vmem>>, vector<18x64xbf16>
    tpu.vector_store %arg6[%c0_18, %c0_19], %43 {strides = array<i32>} : memref<18x64xbf16, #tpu.memory_space<vmem>>, vector<18x64xbf16>,
    return
  }
  func.func @transform_0(%arg0: i32) -> (i32, i32) {
    %c0_i32 = arith.constant 0 : i32
    %c0_i32_0 = arith.constant 0 : i32
    return %arg0, %c0_i32 : i32, i32
  }
  func.func @transform_1(%arg0: i32) -> (i32, i32) {
    %c0_i32 = arith.constant 0 : i32
    %c0_i32_0 = arith.constant 0 : i32
    %c0_i32_1 = arith.constant 0 : i32
    return %c0_i32, %c0_i32_0 : i32, i32
  }
  func.func @transform_2(%arg0: i32) -> (i32, i32) {
    %c0_i32 = arith.constant 0 : i32
    %c0_i32_0 = arith.constant 0 : i32
    %c0_i32_1 = arith.constant 0 : i32
    return %c0_i32, %c0_i32_0 : i32, i32
  }
  func.func @transform_3(%arg0: i32) -> (i32, i32) {
    %c0_i32 = arith.constant 0 : i32
    %c0_i32_0 = arith.constant 0 : i32
    %c0_i32_1 = arith.constant 0 : i32
    return %c0_i32, %c0_i32_0 : i32, i32
  }
  func.func @transform_4(%arg0: i32) -> (i32, i32) {
    %c0_i32 = arith.constant 0 : i32
    %c0_i32_0 = arith.constant 0 : i32
    %c0_i32_1 = arith.constant 0 : i32
    return %c0_i32, %c0_i32_0 : i32, i32
  }
  func.func @transform_5(%arg0: i32) -> (i32, i32) {
    %c0_i32 = arith.constant 0 : i32
    %c0_i32_0 = arith.constant 0 : i32
    return %arg0, %c0_i32 : i32, i32
  }
}

module attributes {stable_mosaic.version = 11 : i64} {
  func.func @_linear_ws_kernel(%arg0: i32, %arg1: memref<18x64xbf16, #tpu.memory_space<vmem>>, %arg2: memref<64x32xbf16, #tpu.memory_space<vmem>>, %arg3: memref<1x32xf32, #tpu.memory_space<vmem>>, %arg4: memref<18x32xbf16, #tpu.memory_space<vmem>>, %arg5: memref<18x32xbf16, #tpu.memory_space<vmem>>) attributes {dimension_semantics = [#tpu.dimension_semantics<parallel>], iteration_bounds = array<i64: 1>, scalar_prefetch = 0 : i64, scratch_operands = 0 : i64, tpu.core_type = #tpu.core_type<tc>, window_params = [{transform_indices = @transform_0, window_bounds = array<i64: 18, 64>}, {pipeline_mode = #tpu.pipeline_mode<synchronous>, transform_indices = @transform_1, window_bounds = array<i64: 64, 32>}, {pipeline_mode = #tpu.pipeline_mode<synchronous>, transform_indices = @transform_2, window_bounds = array<i64: 1, 32>}, {transform_indices = @transform_3, window_bounds = array<i64: 18, 32>}, {transform_indices = @transform_4, window_bounds = array<i64: 18, 32>}]} {
    %c0 = arith.constant 0 : index
    %c0_0 = arith.constant 0 : index
    %0 = vector.load %arg1[%c0, %c0_0] : memref<18x64xbf16, #tpu.memory_space<vmem>>, vector<18x64xbf16>
    %c0_1 = arith.constant 0 : index
    %c0_2 = arith.constant 0 : index
    %1 = vector.load %arg2[%c0_1, %c0_2] : memref<64x32xbf16, #tpu.memory_space<vmem>>, vector<64x32xbf16>
    %cst = arith.constant dense<0.000000e+00> : vector<18x32xf32>
    %2 = tpu.matmul %0, %1, %cst {dimension_numbers = #tpu.dot_dimension_numbers<[1], [0], [0], [1], [0, 0, 1, 1], [], []>} : vector<18x64xbf16>, vector<64x32xbf16>, vector<18x32xf32> -> vector<18x32xf32>
    %c0_3 = arith.constant 0 : index
    %c0_4 = arith.constant 0 : index
    %3 = vector.load %arg3[%c0_3, %c0_4] : memref<1x32xf32, #tpu.memory_space<vmem>>, vector<1x32xf32>
    %4 = vector.broadcast %3 : vector<1x32xf32> to vector<18x32xf32>
    %5 = arith.addf %2, %4 : vector<18x32xf32>
    %c0_5 = arith.constant 0 : index
    %c0_6 = arith.constant 0 : index
    %6 = vector.load %arg4[%c0_5, %c0_6] : memref<18x32xbf16, #tpu.memory_space<vmem>>, vector<18x32xbf16>
    %7 = arith.extf %6 : vector<18x32xbf16> to vector<18x32xf32>
    %8 = arith.addf %5, %7 : vector<18x32xf32>
    %9 = arith.truncf %8 : vector<18x32xf32> to vector<18x32xbf16>
    %c0_7 = arith.constant 0 : index
    %c0_8 = arith.constant 0 : index
    %10 = vector.load %arg5[%c0_7, %c0_8] : memref<18x32xbf16, #tpu.memory_space<vmem>>, vector<18x32xbf16>
    tpu.vector_store %arg5[%c0_7, %c0_8], %9 {strides = array<i32>} : memref<18x32xbf16, #tpu.memory_space<vmem>>, vector<18x32xbf16>,
    return
  }
  func.func @transform_0(%arg0: i32) -> (i32, i32) {
    %c0_i32 = arith.constant 0 : i32
    %c0_i32_0 = arith.constant 0 : i32
    return %arg0, %c0_i32 : i32, i32
  }
  func.func @transform_1(%arg0: i32) -> (i32, i32) {
    %c0_i32 = arith.constant 0 : i32
    %c0_i32_0 = arith.constant 0 : i32
    %c0_i32_1 = arith.constant 0 : i32
    return %c0_i32, %c0_i32_0 : i32, i32
  }
  func.func @transform_2(%arg0: i32) -> (i32, i32) {
    %c0_i32 = arith.constant 0 : i32
    %c0_i32_0 = arith.constant 0 : i32
    %c0_i32_1 = arith.constant 0 : i32
    return %c0_i32, %c0_i32_0 : i32, i32
  }
  func.func @transform_3(%arg0: i32) -> (i32, i32) {
    %c0_i32 = arith.constant 0 : i32
    %c0_i32_0 = arith.constant 0 : i32
    return %arg0, %c0_i32 : i32, i32
  }
  func.func @transform_4(%arg0: i32) -> (i32, i32) {
    %c0_i32 = arith.constant 0 : i32
    %c0_i32_0 = arith.constant 0 : i32
    return %arg0, %c0_i32 : i32, i32
  }
}

</mosaic_0001>

<bundles_post_ra>
// kernel: timesformer_forward.22
= control target key start
LH: loop header
LB: loop body
LE: loop exit
PB: predicated region body
PF: predicated region fallthrough
CT: control target
= control target key end

     0   :  { %vm42_vm0 = vcmask 261120   ;;  %vm62_vm1 = vcmask 257024   ;;  %s124_s1 = inlined_call_operand.vmem [shape: bf16[32,32], index: 1, kind: input, shape index: {}]   ;;  %s125_s2 = inlined_call_operand.vmem [shape: f32[1,32], index: 2, kind: input, shape index: {}]   ;;  %s126_s0 = inlined_call_operand.vmem [shape: bf16[16,32], index: 0, kind: input, shape index: {}]   ;;  %s127_s3 = inlined_call_operand.vmem [shape: bf16[16,32], index: 3, kind: output, shape index: {}]  }
   0x1   :  { %v84_v0 = vld [vmem:[%s124_s1 + $0x8] sm:$0xff]  ;;  %v83_v1 = vld [vmem:[%s124_s1] sm:$0xff] }
   0x2   :  { %52 = vmatpush.bf16.msra.mxu0 %v84_v0  ;;  %v82_v2 = vld [vmem:[%s126_s0] sm:$0xff] }
   0x3   :  { %v85_v3 = vld [vmem:[%s125_s2] ss:$0 sm:$0xff] }
   0x6   :  { %53 = vmatpush.bf16.msra.mxu0 %v83_v1 }
   0x9   :  { %81 = vmatmul.msk.bf16.vlgmr.msra.gmra.mxu0 %vm42_vm0, %v82_v2 }
  0x86   :  { %v55_v4 = vpop.f32.mrf.mxu0 }
  0x87   :  { %v56_v5 = vadd.f32 %v85_v3, %v55_v4 }
  0x89   :  { %v60_v6 = vpack.c.bf16 %v56_v5, %v56_v5 }
  0x8b   :  { %63 = vst.msk [vmem:[%s127_s3] sm:$0xf] %vm62_vm1, %v60_v6 }
  0x8e   :  { %v57_v7 = vpop.f32.mrf.mxu0 }
  0x8f   :  { %v58_v8 = vadd.f32 %v85_v3, %v57_v7 }
  0x91   :  { %v61_v9 = vpack.c.bf16 %v58_v8, %v58_v8 }
  0x93   :  { %64 = vst.msk [vmem:[%s127_s3 + $0x4] sm:$0xf] %vm62_vm1, %v61_v9 }

// kernel: timesformer_forward.20
= control target key start
LH: loop header
LB: loop body
LE: loop exit
PB: predicated region body
PF: predicated region fallthrough
CT: control target
= control target key end

     0   :  { %vm25_vm0 = vcmask 261120   ;;  %v161_v5 = vmov 32.0   ;;  %vm129_vm8 = vcmask 781312   ;;  %s221_s0 = inlined_call_operand.vmem [shape: bf16[16,32], index: 0, kind: input, shape index: {}]   ;;  %s222_s3 = inlined_call_operand.vmem [shape: f32[1,32], index: 3, kind: input, shape index: {}]   ;;  %s223_s4 = inlined_call_operand.vmem [shape: f32[1,32], index: 4, kind: input, shape index: {}]   ;;  %s224_s2 = inlined_call_operand.vmem [shape: f32[1,96], index: 2, kind: input, shape index: {}]   ;;  %s225_s1 = inlined_call_operand.vmem [shape: bf16[32,96], index: 1, kind: input, shape index: {}]   ;;  %s226_s5 = inlined_call_operand.vmem [shape: bf16[16,96], index: 5, kind: output, shape index: {}]  }
   0x1   :  { %v148_v0 = vld [vmem:[%s221_s0] sm:$0xff]   ;;  %155 = vrcp.f32 %v161_v5  ;;  %v146_v22 = vld [vmem:[%s225_s1 + $0x8] sm:$0xff] }
   0x2   :  { %v149_v1 = vunpack.c.l.bf16 %v148_v0  ;;  %v150_v3 = vunpack.c.h.bf16 %v148_v0  ;;  %119 = vmatpush.bf16.msra.mxu0 %v146_v22  ;;  %v145_v24 = vld [vmem:[%s225_s1] sm:$0xff] }
   0x3   :  { %v152_v43 = vld [vmem:[%s222_s3] ss:$0 sm:$0xff] }
   0x4   :  { %v26_v2 = vsel %vm25_vm0, %v149_v1, 0.0  ;;  %v29_v4 = vsel %vm25_vm0, %v150_v3, 0.0  ;;  %v153_v48 = vld [vmem:[%s223_s4] ss:$0 sm:$0xff] }
   0x5   :  { %27 = vadd.xlane.f32.xlu0 %v26_v2  ;;  %v154_v53 = vld [vmem:[%s224_s2] ss:$0 sm:$0xff] }
   0x6   :  { %120 = vmatpush.bf16.msra.mxu0 %v145_v24 }
   0x7   :  { %v156_v6 = vpop.eup %155 }
   0x8   :  { %v33_v7 = vmul.f32 32.0, %v156_v6  ;;  %vm37_vm1 = vweird.f32 %v156_v6 }
   0xa   :  { %v34_v8 = vsub.f32 1.0, %v33_v7 }
   0xc   :  { %v35_v9 = vmul.f32 %v156_v6, %v34_v8 }
   0xd   :  { %30 = vadd.xlane.f32.xlu0 %v29_v4 }
   0xe   :  { %v36_v10 = vadd.f32 %v156_v6, %v35_v9 }
  0x10   :  { %v38_v11 = vsel %vm37_vm1, %v156_v6, %v36_v10 }
  0x78   :  { %v28_v12 = vpop.xlane.xlu0 %27 }
  0x79   :  { %v39_v13 = vmul.f32 %v38_v11, %v28_v12 }
  0x7b   :  { %v41_v14 = vsub.f32 %v149_v1, %v39_v13 }
  0x7d   :  { %v43_v15 = vmul.f32 %v41_v14, %v41_v14 }
  0x7f   :  { %v45_v16 = vsel %vm25_vm0, %v43_v15, 0.0 }
  0x80   :  { %46 = vadd.xlane.f32.xlu1 %v45_v16  ;;  %v31_v17 = vpop.xlane.xlu0 %30 }
  0x81   :  { %v40_v18 = vmul.f32 %v38_v11, %v31_v17 }
  0x83   :  { %v42_v19 = vsub.f32 %v150_v3, %v40_v18 }
  0x85   :  { %v44_v20 = vmul.f32 %v42_v19, %v42_v19 }
  0x87   :  { %v48_v21 = vsel %vm25_vm0, %v44_v20, 0.0 }
  0x88   :  { %49 = vadd.xlane.f32.xlu1 %v48_v21 }
  0xf3   :  { %v47_v23 = vpop.xlane.xlu1 %46 }
  0xf4   :  { %v51_v25 = vmul.f32 %v47_v23, %v38_v11 }
  0xf6   :  { %v53_v26 = vadd.f32 1e-06, %v51_v25 }
  0xf8   :  { %157 = vrsqrt.f32 %v53_v26  ;;  %vm61_vm3 = vweird.f32 %v53_v26 }
  0xfb   :  { %v50_v27 = vpop.xlane.xlu1 %49 }
  0xfc   :  { %v52_v28 = vmul.f32 %v50_v27, %v38_v11 }
  0xfe   :  { %v158_v29 = vpop.eup %157  ;;  %v54_v30 = vadd.f32 1e-06, %v52_v28 }
  0xff   :  { %v56_v31 = vmul.f32 %v158_v29, %v53_v26  ;;  %vm62_vm2 = vweird.f32 %v158_v29 }
 0x100   :  { %159 = vrsqrt.f32 %v54_v30  ;;  %vm63_vm4 = vmor %vm61_vm3, %vm62_vm2  ;;  %vm71_vm6 = vweird.f32 %v54_v30 }
 0x101   :  { %v57_v32 = vmul.f32 %v158_v29, %v56_v31 }
 0x103   :  { %v58_v33 = vmul.f32 0.5, %v57_v32 }
 0x105   :  { %v59_v34 = vsub.f32 1.5, %v58_v33 }
 0x106   :  { %v160_v35 = vpop.eup %159 }
 0x107   :  { %v60_v36 = vmul.f32 %v158_v29, %v59_v34  ;;  %v66_v37 = vmul.f32 %v160_v35, %v54_v30  ;;  %vm72_vm5 = vweird.f32 %v160_v35 }
 0x108   :  { %vm73_vm7 = vmor %vm71_vm6, %vm72_vm5 }
 0x109   :  { %v67_v38 = vmul.f32 %v160_v35, %v66_v37  ;;  %v64_v39 = vsel %vm63_vm4, %v158_v29, %v60_v36 }
 0x10a   :  { %v75_v42 = vmul.f32 %v64_v39, %v41_v14 }
 0x10b   :  { %v68_v40 = vmul.f32 0.5, %v67_v38 }
 0x10c   :  { %v81_v47 = vmul.f32 %v152_v43, %v75_v42 }
 0x10d   :  { %v69_v41 = vsub.f32 1.5, %v68_v40 }
 0x10e   :  { %v87_v50 = vadd.f32 %v153_v48, %v81_v47 }
 0x10f   :  { %v70_v44 = vmul.f32 %v160_v35, %v69_v41 }
 0x111   :  { %v74_v45 = vsel %vm73_vm7, %v160_v35, %v70_v44 }
 0x112   :  { %v76_v46 = vmul.f32 %v74_v45, %v42_v19 }
 0x114   :  { %v82_v49 = vmul.f32 %v152_v43, %v76_v46 }
 0x116   :  { %v88_v51 = vadd.f32 %v153_v48, %v82_v49 }
 0x118   :  { %v89_v52 = vpack.c.bf16 %v88_v51, %v87_v50 }
 0x11a   :  { %144 = vmatmul.msk.bf16.vlgmr.msra.gmra.mxu0 %vm25_vm0, %v89_v52 }
 0x197   :  { %v122_v54 = vpop.f32.mrf.mxu0 }
 0x198   :  { %v123_v55 = vadd.f32 %v154_v53, %v122_v54 }
 0x19a   :  { %v127_v56 = vpack.c.bf16 %v123_v55, %v123_v55 }
 0x19c   :  { %130 = vst.msk [vmem:[%s226_s5] sm:$0xf] %vm129_vm8, %v127_v56 }
 0x19f   :  { %v124_v57 = vpop.f32.mrf.mxu0 }
 0x1a0   :  { %v125_v58 = vadd.f32 %v154_v53, %v124_v57 }
 0x1a2   :  { %v128_v59 = vpack.c.bf16 %v125_v58, %v125_v58 }
 0x1a4   :  { %131 = vst.msk [vmem:[%s226_s5 + $0x4] sm:$0xf] %vm129_vm8, %v128_v59 }

// kernel: timesformer_forward.19
= control target key start
LH: loop header
LB: loop body
LE: loop exit
PB: predicated region body
PF: predicated region fallthrough
CT: control target
= control target key end

     0   :  { %vm126_vm0 = vcmask 523264   ;;  %vm160_vm1 = vcmask 257024   ;;  %s316_s1 = inlined_call_operand.vmem [shape: bf16[192,32], index: 1, kind: input, shape index: {}]   ;;  %s317_s0 = inlined_call_operand.vmem [shape: bf16[16,192], index: 0, kind: input, shape index: {}]   ;;  %s318_s2 = inlined_call_operand.vmem [shape: f32[1,32], index: 2, kind: input, shape index: {}]   ;;  %s319_s3 = inlined_call_operand.vmem [shape: bf16[16,32], index: 3, kind: output, shape index: {}]  }
   0x1   :  { %v233_v0 = vld [vmem:[%s316_s1 + $0x38] sm:$0xff]  ;;  %v232_v2 = vld [vmem:[%s316_s1 + $0x30] sm:$0xff]  ;;  %v231_v4 = vld [vmem:[%s316_s1 + $0x28] sm:$0xff] }
   0x2   :  { %v237_v1 = vld [vmem:[%s316_s1 + $0x58] sm:$0xff]  ;;  %130 = vmatpush.bf16.msra.mxu0 %v233_v0  ;;  %v236_v3 = vld [vmem:[%s316_s1 + $0x50] sm:$0xff]  ;;  %v235_v5 = vld [vmem:[%s316_s1 + $0x48] sm:$0xff] }
   0x3   :  { %148 = vmatpush.bf16.msra.mxu1 %v237_v1  ;;  %v230_v6 = vld [vmem:[%s316_s1 + $0x20] sm:$0xff]  ;;  %v171_v9 = vld [vmem:[%s317_s0 + $0x8] sm:$0xf0]  ;;  %v229_v10 = vld [vmem:[%s316_s1 + $0x18] sm:$0xff] }
   0x4   :  { %v234_v7 = vld [vmem:[%s316_s1 + $0x40] sm:$0xff]  ;;  %v228_v12 = vld [vmem:[%s316_s1 + $0x10] sm:$0xff]  ;;  %v227_v13 = vld [vmem:[%s316_s1 + $0x8] sm:$0xff] }
   0x5   :  { %v224_v8 = vld [vmem:[%s317_s0 + $0x4] sm:$0xf]  ;;  %v169_v15 = vld [vmem:[%s317_s0] sm:$0xf]  ;;  %v225_v16 = vld [vmem:[%s317_s0 + $0x4] sm:$0xf0] }
   0x6   :  { %131 = vmatpush.bf16.msra.mxu0 %v232_v2  ;;  %v174_v11 = vor.u32 %v224_v8, %v171_v9  ;;  %v226_v14 = vld [vmem:[%s316_s1] sm:$0xff]  ;;  %v170_v17 = vor.u32 %v225_v16, %v169_v15 }
   0x7   :  { %149 = vmatpush.bf16.msra.mxu1 %v236_v3  ;;  %v238_v18 = vld [vmem:[%s318_s2] ss:$0 sm:$0xff] }
   0xa   :  { %132 = vmatpush.bf16.msra.mxu0 %v231_v4 }
   0xb   :  { %150 = vmatpush.bf16.msra.mxu1 %v235_v5 }
   0xe   :  { %133 = vmatpush.bf16.msra.mxu0 %v230_v6 }
   0xf   :  { %151 = vmatpush.bf16.msra.mxu1 %v234_v7 }
  0x12   :  { %134 = vmatpush.bf16.msra.mxu0 %v229_v10  ;;  %223 = vmatmul.msk.bf16.vlgmr.msra.gmra.mxu1 %vm126_vm0, %v174_v11 }
  0x16   :  { %135 = vmatpush.bf16.msra.mxu0 %v228_v12 }
  0x1a   :  { %136 = vmatpush.bf16.msra.mxu0 %v227_v13 }
  0x1e   :  { %137 = vmatpush.bf16.msra.mxu0 %v226_v14 }
  0x21   :  { %138 = vmatmul.bf16.vlgmr.msra.gmra.mxu0 %v170_v17 }
  0x8f   :  { %v153_v19 = vpop.f32.mrf.mxu1 }
  0x97   :  { %v155_v26 = vpop.f32.mrf.mxu1 }
  0x9e   :  { %v139_v20 = vpop.f32.mrf.mxu0 }
  0x9f   :  { %v140_v21 = vadd.f32 %v238_v18, %v139_v20 }
  0xa1   :  { %v154_v22 = vadd.f32 %v153_v19, %v140_v21 }
  0xa3   :  { %v158_v23 = vpack.c.bf16 %v154_v22, %v154_v22 }
  0xa5   :  { %161 = vst.msk [vmem:[%s319_s3] sm:$0xf] %vm160_vm1, %v158_v23 }
  0xa6   :  { %v141_v24 = vpop.f32.mrf.mxu0 }
  0xa7   :  { %v142_v25 = vadd.f32 %v238_v18, %v141_v24 }
  0xa9   :  { %v156_v27 = vadd.f32 %v155_v26, %v142_v25 }
  0xab   :  { %v159_v28 = vpack.c.bf16 %v156_v27, %v156_v27 }
  0xad   :  { %162 = vst.msk [vmem:[%s319_s3 + $0x4] sm:$0xf] %vm160_vm1, %v159_v28 }

// kernel: timesformer_forward.23
= control target key start
LH: loop header
LB: loop body
LE: loop exit
PB: predicated region body
PF: predicated region fallthrough
CT: control target
= control target key end

     0   :  { %vm45_vm0 = vcmask 261120   ;;  %vm71_vm1 = vcmask 257024   ;;  %s145_s1 = inlined_call_operand.vmem [shape: bf16[32,32], index: 1, kind: input, shape index: {}]   ;;  %s146_s2 = inlined_call_operand.vmem [shape: f32[1,32], index: 2, kind: input, shape index: {}]   ;;  %s147_s0 = inlined_call_operand.vmem [shape: bf16[16,32], index: 0, kind: input, shape index: {}]   ;;  %s148_s3 = inlined_call_operand.vmem [shape: bf16[16,32], index: 3, kind: input, shape index: {}]   ;;  %s149_s4 = inlined_call_operand.vmem [shape: bf16[16,32], index: 4, kind: output, shape index: {}]  }
   0x1   :  { %v93_v0 = vld [vmem:[%s145_s1 + $0x8] sm:$0xff]  ;;  %v92_v1 = vld [vmem:[%s145_s1] sm:$0xff] }
   0x2   :  { %55 = vmatpush.bf16.msra.mxu0 %v93_v0  ;;  %v91_v2 = vld [vmem:[%s147_s0] sm:$0xff] }
   0x3   :  { %v95_v3 = vld [vmem:[%s148_s3] sm:$0xff]  }
   0x4   :  { %v98_v4 = vld [vmem:[%s146_s2] ss:$0 sm:$0xff]  ;;  %v96_v5 = vunpack.c.l.bf16 %v95_v3  ;;  %v97_v10 = vunpack.c.h.bf16 %v95_v3 }
   0x6   :  { %56 = vmatpush.bf16.msra.mxu0 %v92_v1 }
   0x9   :  { %90 = vmatmul.msk.bf16.vlgmr.msra.gmra.mxu0 %vm45_vm0, %v91_v2 }
  0x86   :  { %v58_v6 = vpop.f32.mrf.mxu0 }
  0x87   :  { %v59_v7 = vadd.f32 %v98_v4, %v58_v6 }
  0x89   :  { %v67_v8 = vadd.f32 %v96_v5, %v59_v7 }
  0x8b   :  { %v69_v9 = vpack.c.bf16 %v67_v8, %v67_v8 }
  0x8d   :  { %72 = vst.msk [vmem:[%s149_s4] sm:$0xf] %vm71_vm1, %v69_v9 }
  0x8e   :  { %v60_v11 = vpop.f32.mrf.mxu0 }
  0x8f   :  { %v61_v12 = vadd.f32 %v98_v4, %v60_v11 }
  0x91   :  { %v68_v13 = vadd.f32 %v97_v10, %v61_v12 }
  0x93   :  { %v70_v14 = vpack.c.bf16 %v68_v13, %v68_v13 }
  0x95   :  { %73 = vst.msk [vmem:[%s149_s4 + $0x4] sm:$0xf] %vm71_vm1, %v70_v14 }

// kernel: timesformer_forward.21
= control target key start
LH: loop header
LB: loop body
LE: loop exit
PB: predicated region body
PF: predicated region fallthrough
CT: control target
= control target key end

     0   :  { %s2419_s18 = smov 96   ;;  %s2420_s23 = smov 64   ;;  %vm25_vm0 = vcmask 64512   ;;  %v9_v43 = vlaneseq  ;;  %vm324_vm2 = vcmask 1043456   ;;  %vm2056_vm3 = vcmask 130048   ;;  %s3302_s0 = inlined_call_operand.vmem [shape: bf16[8,8,96], index: 0, kind: input, shape index: {}]   ;;  %s3303_s1 = inlined_call_operand.vmem [shape: bf16[8,8,32], index: 1, kind: output, shape index: {}]  }
   0x1   :  { %v2446_v0 = vld [vmem:[%s3302_s0 + $0x18] sm:$0xf]  ;;  %v14_v1 = vld [vmem:[%s3302_s0 + $0x8] sm:$0xf]  ;;  %v12_v2 = vld [vmem:[%s3302_s0] sm:$0xf] }
   0x2   :  { %v166_v3 = vunpack.c.l.b16 %v2446_v0  ;;  %v70_v4 = vunpack.c.l.b16 %v14_v1  ;;  %v21_v5 = vunpack.c.l.b16 %v12_v2  ;;  %v2458_v6 = vld [vmem:[%s3302_s0 + $0x1c] sm:$0xf]  ;;  %v15_v7 = vld [vmem:[%s3302_s0 + $0xc] sm:$0xf]  ;;  %v13_v11 = vld [vmem:[%s3302_s0 + $0x4] sm:$0xf] }
   0x3   :  { %v190_v12 = vunpack.c.l.b16 %v2458_v6  ;;  %v94_v13 = vunpack.c.l.b16 %v15_v7  ;;  %v46_v14 = vunpack.c.l.b16 %v13_v11  ;;  %v17_v18 = vld [vmem:[%s3302_s0 + $0x14] sm:$0xf]  ;;  %v16_v19 = vld [vmem:[%s3302_s0 + $0x10] sm:$0xf]  ;;  %v2494_v32 = vld [vmem:[%s3302_s0 + $0x8] sm:$0xff]   ;;  %s2421_s26 = smov 88  }
   0x4   :  { %v167_v8 = vpack.c.b16 %v166_v3, %v166_v3  ;;  %v71_v9 = vpack.c.b16 %v70_v4, %v70_v4  ;;  %v22_v10 = vpack.c.b16 %v21_v5, %v21_v5  ;;  %v142_v20 = vunpack.c.l.b16 %v17_v18  ;;  %s2422_s27 = smov 120   ;;  %s2423_s5 = smov 56  }
   0x5   :  { %v191_v15 = vpack.c.b16 %v190_v12, %v190_v12  ;;  %v95_v16 = vpack.c.b16 %v94_v13, %v94_v13  ;;  %v47_v17 = vpack.c.b16 %v46_v14, %v46_v14  ;;  %v118_v21 = vunpack.c.l.b16 %v16_v19  ;;  %s2424_s6 = smov 80   ;;  %s2425_s7 = smov 112  }
   0x6   :  { %168 = vrot.lane.b32.xlu1 %v167_v8, %s2419_s18  ;;  %72 = vrot.lane.b32.xlu0 %v71_v9, %s2419_s18  ;;  %v2473_v22 = vpack.c.b16 %v142_v20, %v142_v20  ;;  %v2165_v33 = vunpack.c.l.b16 %v2494_v32  ;;  %v2513_v44 = vand.u32 127, %v9_v43  ;;  %s2426_s8 = smov 48   ;;  %s2427_s9 = smov 72   ;;  %vm2065_vm4 = vcmask 195584  }
   0x7   :  { %23 = vrot.lane.b32.xlu2 %v22_v10, %s2419_s18  ;;  %v2475_v23 = vpack.c.b16 %v118_v21, %v118_v21  ;;  %s2428_s10 = smov 104   ;;  %s2430_s17 = smov 8   ;;  %vm2082_vm5 = vcmask 257024  }
   0x8   :  { %v2497_v34 = vpack.c.b16 %v2165_v33, %v2165_v33  ;;  %vm11_vm1 = vcmp.ge.s32.totalorder %v2513_v44, 2  ;;  %s2432_s19 = smov 24  }
   0xe   :  { %192 = vrot.lane.b32.xlu1 %v191_v15, %s2419_s18  ;;  %96 = vrot.lane.b32.xlu0 %v95_v16, %s2419_s18 }
   0xf   :  { %48 = vrot.lane.b32.xlu2 %v47_v17, %s2419_s18 }
  0x16   :  { %144 = vrot.lane.b32.xlu1 %v2473_v22, %s2419_s18  ;;  %120 = vrot.lane.b32.xlu0 %v2475_v23, %s2419_s18  ;;  %s2431_s18 = smov 16  }
  0x17   :  { %362 = vrot.lane.b32.xlu2 %v71_v9, %s2420_s23 }
  0x1e   :  { %383 = vrot.lane.b32.xlu0 %v95_v16, %s2420_s23  ;;  %467 = vrot.lane.b32.xlu1 %v191_v15, %s2420_s23 }
  0x1f   :  { %446 = vrot.lane.b32.xlu2 %v167_v8, %s2420_s23 }
  0x27   :  { %319 = vrot.lane.b32.xlu2 %v22_v10, %s2420_s23 }
  0x2f   :  { %341 = vrot.lane.b32.xlu2 %v47_v17, %s2420_s23 }
  0x37   :  { %553 = vrot.lane.b32.xlu2 %v2497_v34, %s2421_s26 }
  0x61   :  { %v24_v24 = vpop.permute.xlu2 %23 }
  0x62   :  { %v30_v25 = vsel %vm25_vm0, %v24_v24, 0  ;;  %v2166_v24 = vunpack.c.h.b16 %v2494_v32 }
  0x63   :  { %39 = vmatpush.bf16.xpose.msra.mxu0 %v30_v25 }
  0x69   :  { %v49_v26 = vpop.permute.xlu2 %48 }
  0x6a   :  { %2095 = vmatmul.msk.bf16.vlgmr.msra.gmra.mxu0 %vm25_vm0, %v12_v2  ;;  %v54_v27 = vsel %vm25_vm0, %v49_v26, 0  ;;  %v2572_v26 = vpack.c.b16 %v2166_v24, %v2166_v24 }
  0x6b   :  { %63 = vmatpush.bf16.xpose.msra.mxu1 %v54_v27 }
  0x71   :  { %v363_v52 = vpop.permute.xlu2 %362 }
  0x72   :  { %2096 = vmatmul.msk.bf16.vlgmr.msra.gmra.mxu1 %vm25_vm0, %v13_v11  ;;  %v368_v54 = vsel %vm324_vm2, %v363_v52, 0 }
  0x78   :  { %v169_v28 = vpop.permute.xlu1 %168  ;;  %v73_v29 = vpop.permute.xlu0 %72 }
  0x79   :  { %v78_v30 = vsel %vm25_vm0, %v73_v29, 0  ;;  %v174_v31 = vsel %vm25_vm0, %v169_v28, 0  ;;  %v447_v55 = vpop.permute.xlu2 %446 }
  0x7a   :  { %87 = vmatpush.bf16.xpose.msra.mxu2 %v78_v30  ;;  %v452_v56 = vsel %vm324_vm2, %v447_v55, 0 }
  0x80   :  { %v193_v35 = vpop.permute.xlu1 %192  ;;  %v97_v36 = vpop.permute.xlu0 %96 }
  0x81   :  { %2097 = vmatmul.msk.bf16.vlgmr.msra.gmra.mxu2 %vm25_vm0, %v14_v1  ;;  %v102_v37 = vsel %vm25_vm0, %v97_v36, 0  ;;  %v198_v38 = vsel %vm25_vm0, %v193_v35, 0  ;;  %v320_v60 = vpop.permute.xlu2 %319 }
  0x82   :  { %183 = vmatpush.bf16.xpose.msrb.mxu2 %v174_v31  ;;  %111 = vmatpush.bf16.xpose.msra.mxu3 %v102_v37  ;;  %v326_v61 = vsel %vm324_vm2, %v320_v60, 0  ;;  %v2209_v60 = vld [vmem:[%s3302_s0 + $0x18] sm:$0xff]  }
  0x88   :  { %v145_v39 = vpop.permute.xlu1 %144  ;;  %v121_v40 = vpop.permute.xlu0 %120 }
  0x89   :  { %2098 = vmatmul.msk.bf16.vlgmr.msra.gmra.mxu3 %vm25_vm0, %v15_v7  ;;  %v126_v41 = vsel %vm25_vm0, %v121_v40, 0  ;;  %v150_v42 = vsel %vm25_vm0, %v145_v39, 0 }
  0x8a   :  { %207 = vmatpush.bf16.xpose.msrb.mxu3 %v198_v38  ;;  %135 = vmatpush.bf16.xpose.msrb.mxu0 %v126_v41 }
  0x8b   :  { %159 = vmatpush.bf16.xpose.msrb.mxu1 %v150_v42  ;;  %377 = vmatpush.bf16.msra.mxu2 %v368_v54 }
  0x90   :  { %v384_v10 = vpop.permute.xlu0 %383  ;;  %v468_v27 = vpop.permute.xlu1 %467 }
  0x91   :  { %2099 = vmatmul.msk.bf16.vlgmr.msrb.gmra.mxu0 %vm25_vm0, %v16_v19  ;;  %2101 = vmatmul.msk.bf16.vlgmr.msrb.gmra.mxu2 %vm25_vm0, %v2446_v0  ;;  %v389_v12 = vsel %vm324_vm2, %v384_v10, 0  ;;  %v473_v28 = vsel %vm324_vm2, %v468_v27, 0 }
  0x92   :  { %2100 = vmatmul.msk.bf16.vlgmr.msrb.gmra.mxu1 %vm25_vm0, %v17_v18  ;;  %461 = vmatpush.bf16.msrb.mxu2 %v452_v56 }
  0x93   :  { %335 = vmatpush.bf16.msra.mxu0 %v326_v61  ;;  %398 = vmatpush.bf16.msra.mxu3 %v389_v12 }
  0x99   :  { %2102 = vmatmul.msk.bf16.vlgmr.msrb.gmra.mxu3 %vm25_vm0, %v2458_v6  ;;  %v342_v6 = vpop.permute.xlu2 %341 }
  0x9a   :  { %v347_v9 = vsel %vm324_vm2, %v342_v6, 0  ;;  %482 = vmatpush.bf16.msrb.mxu3 %v473_v28 }
  0x9b   :  { %356 = vmatpush.bf16.msra.mxu1 %v347_v9 }
  0xa1   :  { %v2583_v29 = vpop.permute.xlu2 %553 }
  0xe7   :  { %v41_v45 = vpop.f32.mrf.mxu0 }
  0xe8   :  { %v2518_v46 = vsel %vm11_vm1, -1e+30, %v41_v45 }
  0xe9   :  { %v223_v47 = vsel %vm25_vm0, %v2518_v46, -inf }
  0xea   :  { %224 = vmax.xlane.f32.xlu2 %v223_v47 }
  0xef   :  { %v65_v48 = vpop.f32.mrf.mxu1  ;;  %v43_v49 = vpop.f32.mrf.mxu0 }
  0xf0   :  { %v2524_v50 = vsel %vm11_vm1, -1e+30, %v65_v48 }
  0xf1   :  { %v226_v51 = vsel %vm25_vm0, %v2524_v50, -inf }
  0xf2   :  { %227 = vmax.xlane.f32.xlu0 %v226_v51 }
  0xf7   :  { %v67_v53 = vpop.f32.mrf.mxu1 }
 0x104   :  { %v89_v57 = vpop.f32.mrf.mxu2 }
 0x105   :  { %v2532_v58 = vsel %vm11_vm1, -1e+30, %v89_v57 }
 0x106   :  { %v229_v59 = vsel %vm25_vm0, %v2532_v58, -inf }
 0x107   :  { %230 = vmax.xlane.f32.xlu2 %v229_v59 }
 0x10c   :  { %v91_v62 = vpop.f32.mrf.mxu2  ;;  %v113_v63 = vpop.f32.mrf.mxu3 }
 0x10d   :  { %v2539_v0 = vsel %vm11_vm1, -1e+30, %v113_v63 }
 0x10e   :  { %v137_v1 = vpop.f32.mrf.mxu0  ;;  %v232_v3 = vsel %vm25_vm0, %v2539_v0, -inf }
 0x10f   :  { %v161_v2 = vpop.f32.mrf.mxu1  ;;  %v2545_v4 = vsel %vm11_vm1, -1e+30, %v137_v1  ;;  %233 = vmax.xlane.f32.xlu0 %v232_v3 }
 0x110   :  { %v2549_v5 = vsel %vm11_vm1, -1e+30, %v161_v2  ;;  %v235_v7 = vsel %vm25_vm0, %v2545_v4, -inf }
 0x111   :  { %v238_v8 = vsel %vm25_vm0, %v2549_v5, -inf  ;;  %236 = vmax.xlane.f32.xlu1 %v235_v7 }
 0x112   :  { %239 = vmax.xlane.f32.xlu2 %v238_v8 }
 0x114   :  { %v115_v11 = vpop.f32.mrf.mxu3  ;;  %v185_v13 = vpop.f32.mrf.mxu2 }
 0x115   :  { %v2559_v14 = vsel %vm11_vm1, -1e+30, %v185_v13 }
 0x116   :  { %v139_v15 = vpop.f32.mrf.mxu0  ;;  %v241_v17 = vsel %vm25_vm0, %v2559_v14, -inf }
 0x117   :  { %v163_v16 = vpop.f32.mrf.mxu1  ;;  %v2174_v15 = vunpack.c.h.b16 %v2209_v60 }
 0x118   :  { %v2208_v16 = vld [vmem:[%s3302_s0 + $0x10] sm:$0xff]  }
 0x119   :  { %242 = vmax.xlane.f32.xlu1 %v241_v17 }
 0x11c   :  { %v209_v18 = vpop.f32.mrf.mxu3  ;;  %v187_v19 = vpop.f32.mrf.mxu2 }
 0x11d   :  { %v2565_v20 = vsel %vm11_vm1, -1e+30, %v209_v18  ;;  %v2652_v18 = vpack.c.b16 %v2174_v15, %v2174_v15  ;;  %v2169_v19 = vunpack.c.l.b16 %v2208_v16 }
 0x11e   :  { %v244_v21 = vsel %vm25_vm0, %v2565_v20, -inf }
 0x11f   :  { %245 = vmax.xlane.f32.xlu2 %v244_v21 }
 0x123   :  { %551 = vrot.lane.b32.xlu0 %v2497_v34, %s2422_s27 }
 0x124   :  { %v211_v25 = vpop.f32.mrf.mxu3 }
 0x125   :  { %v2170_v25 = vunpack.c.h.b16 %v2208_v16 }
 0x12b   :  { %577 = vrot.lane.b32.xlu0 %v2572_v26, %s2422_s27 }
 0x132   :  { %579 = vrot.lane.b32.xlu1 %v2572_v26, %s2421_s26 }
 0x133   :  { %404 = vrot.lane.b32.xlu0 %v2475_v23, %s2420_s23 }
 0x137   :  { %425 = vrot.lane.b32.xlu2 %v2473_v22, %s2420_s23 }
 0x15d   :  { %v225_v30 = vpop.xlane.xlu2 %224 }
 0x15e   :  { %v247_v31 = vsub.f32 %v2518_v46, %v225_v30  ;;  %v2668_v30 = vpack.c.b16 %v2170_v25, %v2170_v25 }
 0x160   :  { %v255_v32 = vmul.f32 1.442695, %v247_v31 }
 0x162   :  { %2290 = vpow2.f32 %v255_v32 }
 0x165   :  { %v228_v33 = vpop.xlane.xlu0 %227 }
 0x166   :  { %v248_v35 = vsub.f32 %v2524_v50, %v228_v33 }
 0x168   :  { %v2587_v36 = vpop.eup %2290  ;;  %v257_v23 = vmul.f32 1.442695, %v248_v35 }
 0x169   :  { %v271_v22 = vsel %vm25_vm0, %v2587_v36, 0.0 }
 0x16a   :  { %2292 = vpow2.f32 %v257_v23  ;;  %272 = vadd.xlane.f32.xlu1 %v271_v22 }
 0x170   :  { %v2591_v37 = vpop.eup %2292 }
 0x171   :  { %v274_v38 = vsel %vm25_vm0, %v2591_v37, 0.0 }
 0x172   :  { %275 = vadd.xlane.f32.xlu0 %v274_v38 }
 0x17a   :  { %v231_v39 = vpop.xlane.xlu2 %230 }
 0x17b   :  { %v249_v40 = vsub.f32 %v2532_v58, %v231_v39 }
 0x17d   :  { %v259_v41 = vmul.f32 1.442695, %v249_v40 }
 0x17f   :  { %2294 = vpow2.f32 %v259_v41 }
 0x182   :  { %v234_v42 = vpop.xlane.xlu0 %233 }
 0x183   :  { %v250_v43 = vsub.f32 %v2539_v0, %v234_v42  ;;  %v2173_v0 = vunpack.c.l.b16 %v2209_v60 }
 0x184   :  { %v237_v45 = vpop.xlane.xlu1 %236 }
 0x185   :  { %v240_v46 = vpop.xlane.xlu2 %239  ;;  %v2597_v47 = vpop.eup %2294  ;;  %v261_v48 = vmul.f32 1.442695, %v250_v43  ;;  %v251_v49 = vsub.f32 %v2545_v4, %v237_v45  ;;  %v2620_v3 = vpack.c.b16 %v2173_v0, %v2173_v0  ;;  %v2160_v4 = vld [vmem:[%s3302_s0] sm:$0xff]  }
 0x186   :  { %v252_v50 = vsub.f32 %v2549_v5, %v240_v46  ;;  %v277_v51 = vsel %vm25_vm0, %v2597_v47, 0.0  ;;  %v2161_v7 = vunpack.c.l.b16 %v2160_v4  ;;  %v2162_v11 = vunpack.c.h.b16 %v2160_v4 }
 0x187   :  { %2296 = vpow2.f32 %v261_v48  ;;  %v263_v52 = vmul.f32 1.442695, %v251_v49  ;;  %278 = vadd.xlane.f32.xlu0 %v277_v51  ;;  %v559_v46 = vsel %vm25_vm0, %v2583_v29, 0 }
 0x188   :  { %v265_v53 = vmul.f32 1.442695, %v252_v50  ;;  %v2631_v9 = vpack.c.b16 %v2161_v7, %v2161_v7  ;;  %v2639_v13 = vpack.c.b16 %v2162_v11, %v2162_v11 }
 0x189   :  { %2298 = vpow2.f32 %v263_v52 }
 0x18a   :  { %2300 = vpow2.f32 %v265_v53 }
 0x18c   :  { %v243_v54 = vpop.xlane.xlu1 %242 }
 0x18d   :  { %v2603_v55 = vpop.eup %2296  ;;  %v253_v56 = vsub.f32 %v2559_v14, %v243_v54 }
 0x18e   :  { %v280_v57 = vsel %vm25_vm0, %v2603_v55, 0.0 }
 0x18f   :  { %v2608_v58 = vpop.eup %2298  ;;  %281 = vadd.xlane.f32.xlu1 %v280_v57  ;;  %v267_v61 = vmul.f32 1.442695, %v253_v56 }
 0x190   :  { %v283_v59 = vsel %vm25_vm0, %v2608_v58, 0.0  ;;  %v2615_v63 = vpop.eup %2300 }
 0x191   :  { %284 = vadd.xlane.f32.xlu2 %v283_v59  ;;  %2302 = vpow2.f32 %v267_v61  ;;  %v286_v2 = vsel %vm25_vm0, %v2615_v63, 0.0 }
 0x192   :  { %v246_v62 = vpop.xlane.xlu2 %245 }
 0x193   :  { %v254_v1 = vsub.f32 %v2565_v20, %v246_v62  ;;  %v2658_v20 = vpack.c.b16 %v2169_v19, %v2169_v19 }
 0x195   :  { %v269_v5 = vmul.f32 1.442695, %v254_v1  ;;  %v2641_v14 = vpop.permute.xlu0 %551 }
 0x197   :  { %287 = vadd.xlane.f32.xlu1 %v286_v2  ;;  %v2625_v6 = vpop.eup %2302  ;;  %2304 = vpow2.f32 %v269_v5 }
 0x198   :  { %v289_v8 = vsel %vm25_vm0, %v2625_v6, 0.0 }
 0x19a   :  { %v426_v27 = vpop.permute.xlu2 %425 }
 0x19b   :  { %657 = vrot.lane.b32.xlu0 %v2620_v3, %s2421_s26  ;;  %v431_v28 = vsel %vm324_vm2, %v426_v27, 0 }
 0x19c   :  { %440 = vmatpush.bf16.msrb.mxu1 %v431_v28 }
 0x19d   :  { %v2633_v10 = vpop.eup %2304  ;;  %v2650_v17 = vpop.permute.xlu0 %577 }
 0x19e   :  { %v292_v12 = vsel %vm25_vm0, %v2633_v10, 0.0 }
 0x19f   :  { %290 = vadd.xlane.f32.xlu1 %v289_v8 }
 0x1a3   :  { %501 = vrot.lane.b32.xlu0 %v2631_v9, %s2421_s26 }
 0x1a4   :  { %v580_v31 = vpop.permute.xlu1 %579 }
 0x1a5   :  { %v405_v21 = vpop.permute.xlu0 %404  ;;  %v585_v54 = vsel %vm25_vm0, %v580_v31, 0 }
 0x1a6   :  { %v410_v24 = vsel %vm324_vm2, %v405_v21, 0 }
 0x1a7   :  { %293 = vadd.xlane.f32.xlu1 %v292_v12  ;;  %419 = vmatpush.bf16.msrb.mxu0 %v410_v24 }
 0x1a9   :  { %655 = vrot.lane.b32.xlu2 %v2620_v3, %s2422_s27 }
 0x1ab   :  { %527 = vrot.lane.b32.xlu0 %v2639_v13, %s2421_s26 }
 0x1b1   :  { %525 = vrot.lane.b32.xlu2 %v2639_v13, %s2422_s27 }
 0x1b3   :  { %681 = vrot.lane.b32.xlu0 %v2652_v18, %s2422_s27 }
 0x1b9   :  { %603 = vrot.lane.b32.xlu2 %v2658_v20, %s2422_s27 }
 0x1bb   :  { %605 = vrot.lane.b32.xlu0 %v2658_v20, %s2421_s26 }
 0x1c0   :  { %683 = vrot.lane.b32.xlu1 %v2652_v18, %s2421_s26 }
 0x1c1   :  { %850 = vrot.lane.b32.xlu2 %v2497_v34, %s2423_s5 }
 0x1c3   :  { %629 = vrot.lane.b32.xlu0 %v2668_v30, %s2422_s27 }
 0x1c8   :  { %499 = vrot.lane.b32.xlu1 %v2631_v9, %s2422_s27 }
 0x1c9   :  { %934 = vrot.lane.b32.xlu2 %v2620_v3, %s2423_s5 }
 0x1cb   :  { %871 = vrot.lane.b32.xlu0 %v2572_v26, %s2423_s5 }
 0x1d0   :  { %631 = vrot.lane.b32.xlu1 %v2668_v30, %s2421_s26 }
 0x1d1   :  { %808 = vrot.lane.b32.xlu2 %v2631_v9, %s2423_s5 }
 0x1d3   :  { %1041 = vrot.lane.b32.xlu0 %v2497_v34, %s2424_s6 }
 0x1d8   :  { %955 = vrot.lane.b32.xlu1 %v2652_v18, %s2423_s5 }
 0x1d9   :  { %829 = vrot.lane.b32.xlu2 %v2639_v13, %s2423_s5 }
 0x1db   :  { %1067 = vrot.lane.b32.xlu0 %v2572_v26, %s2424_s6 }
 0x1dd   :  { %v273_v32 = vpop.xlane.xlu1 %272 }
 0x1de   :  { %2306 = vrcp.f32 %v273_v32 }
 0x1e1   :  { %892 = vrot.lane.b32.xlu2 %v2658_v20, %s2423_s5 }
 0x1e4   :  { %v2307_v33 = vpop.eup %2306 }
 0x1e5   :  { %v303_v35 = vmul.f32 %v2307_v33, %v2587_v36  ;;  %v276_v23 = vpop.xlane.xlu0 %275 }
 0x1e6   :  { %2308 = vrcp.f32 %v276_v23 }
 0x1e7   :  { %v311_v22 = vpack.c.bf16 %v303_v35, %v303_v35 }
 0x1e9   :  { %2103 = vmatmul.msk.bf16.vlgmr.msra.gmra.mxu0 %vm25_vm0, %v311_v22 }
 0x1ec   :  { %v2309_v38 = vpop.eup %2308 }
 0x1ed   :  { %v304_v39 = vmul.f32 %v2309_v38, %v2591_v37 }
 0x1ef   :  { %v312_v40 = vpack.c.bf16 %v304_v39, %v304_v39 }
 0x1f1   :  { %2104 = vmatmul.msk.bf16.vlgmr.msra.gmra.mxu1 %vm25_vm0, %v312_v40 }
 0x1fa   :  { %v279_v36 = vpop.xlane.xlu0 %278 }
 0x1fb   :  { %2310 = vrcp.f32 %v279_v36 }
 0x201   :  { %v2311_v37 = vpop.eup %2310 }
 0x202   :  { %v305_v41 = vmul.f32 %v2311_v37, %v2597_v47  ;;  %v282_v42 = vpop.xlane.xlu1 %281 }
 0x203   :  { %2312 = vrcp.f32 %v282_v42 }
 0x204   :  { %v313_v43 = vpack.c.bf16 %v305_v41, %v305_v41  ;;  %v285_v45 = vpop.xlane.xlu2 %284 }
 0x205   :  { %2314 = vrcp.f32 %v285_v45 }
 0x206   :  { %2105 = vmatmul.msk.bf16.vlgmr.msra.gmra.mxu2 %vm25_vm0, %v313_v43 }
 0x207   :  { %568 = vmatpush.bf16.xpose.msra.mxu2 %v559_v46 }
 0x209   :  { %v2313_v48 = vpop.eup %2312 }
 0x20a   :  { %v306_v49 = vmul.f32 %v2313_v48, %v2603_v55  ;;  %v288_v50 = vpop.xlane.xlu1 %287 }
 0x20b   :  { %v2315_v51 = vpop.eup %2314  ;;  %2316 = vrcp.f32 %v288_v50 }
 0x20c   :  { %v314_v47 = vpack.c.bf16 %v306_v49, %v306_v49  ;;  %v307_v52 = vmul.f32 %v2315_v51, %v2608_v58  ;;  %v656_v62 = vpop.permute.xlu2 %655 }
 0x20d   :  { %v658_v53 = vpop.permute.xlu0 %657 }
 0x20e   :  { %v315_v56 = vpack.c.bf16 %v307_v52, %v307_v52  ;;  %2106 = vmatmul.msk.bf16.vlgmr.msra.gmra.mxu3 %vm25_vm0, %v314_v47  ;;  %v663_v2 = vsel %vm25_vm0, %v658_v53, 0 }
 0x20f   :  { %594 = vmatpush.bf16.xpose.msra.mxu3 %v585_v54 }
 0x210   :  { %2107 = vmatmul.msk.bf16.vlgmr.msrb.gmra.mxu0 %vm25_vm0, %v315_v56 }
 0x211   :  { %v2317_v29 = vpop.eup %2316 }
 0x212   :  { %v308_v57 = vmul.f32 %v2317_v29, %v2615_v63  ;;  %v291_v59 = vpop.xlane.xlu1 %290 }
 0x213   :  { %2318 = vrcp.f32 %v291_v59 }
 0x214   :  { %v316_v55 = vpack.c.bf16 %v308_v57, %v308_v57  ;;  %v526_v11 = vpop.permute.xlu2 %525 }
 0x215   :  { %v502_v60 = vpop.permute.xlu0 %501 }
 0x216   :  { %v507_v61 = vsel %vm25_vm0, %v502_v60, 0  ;;  %2108 = vmatmul.msk.bf16.vlgmr.msrb.gmra.mxu1 %vm25_vm0, %v316_v55 }
 0x217   :  { %516 = vmatpush.bf16.xpose.msra.mxu0 %v507_v61 }
 0x219   :  { %v2319_v58 = vpop.eup %2318 }
 0x21a   :  { %v309_v0 = vmul.f32 %v2319_v58, %v2625_v6  ;;  %v294_v1 = vpop.xlane.xlu1 %293 }
 0x21b   :  { %2320 = vrcp.f32 %v294_v1 }
 0x21c   :  { %v317_v4 = vpack.c.bf16 %v309_v0, %v309_v0  ;;  %v604_v27 = vpop.permute.xlu2 %603 }
 0x21d   :  { %v528_v5 = vpop.permute.xlu0 %527 }
 0x21e   :  { %v533_v63 = vsel %vm25_vm0, %v528_v5, 0  ;;  %2109 = vmatmul.msk.bf16.vlgmr.msrb.gmra.mxu2 %vm25_vm0, %v317_v4 }
 0x21f   :  { %542 = vmatpush.bf16.xpose.msra.mxu1 %v533_v63  ;;  %672 = vmatpush.bf16.xpose.msrb.mxu2 %v663_v2 }
 0x221   :  { %v2321_v7 = vpop.eup %2320 }
 0x222   :  { %v310_v8 = vmul.f32 %v2321_v7, %v2633_v10 }
 0x224   :  { %v318_v12 = vpack.c.bf16 %v310_v8, %v310_v8  ;;  %v851_v49 = vpop.permute.xlu2 %850 }
 0x225   :  { %v682_v15 = vpop.permute.xlu0 %681  ;;  %v856_v50 = vsel %vm324_vm2, %v851_v49, 0 }
 0x226   :  { %2110 = vmatmul.msk.bf16.vlgmr.msrb.gmra.mxu3 %vm25_vm0, %v318_v12  ;;  %2112 = vmatmul.msk.bf16.vlgmr.msra.gmra.mxu1 %vm25_vm0, %v526_v11 }
 0x22c   :  { %v935_v54 = vpop.permute.xlu2 %934 }
 0x22d   :  { %v606_v6 = vpop.permute.xlu0 %605  ;;  %v940_v56 = vsel %vm324_vm2, %v935_v54, 0 }
 0x22e   :  { %2113 = vmatmul.msk.bf16.vlgmr.msra.gmra.mxu2 %vm25_vm0, %v2641_v14  ;;  %v611_v16 = vsel %vm25_vm0, %v606_v6, 0 }
 0x22f   :  { %620 = vmatpush.bf16.xpose.msrb.mxu0 %v611_v16  ;;  %865 = vmatpush.bf16.msra.mxu2 %v856_v50 }
 0x232   :  { %v684_v19 = vpop.permute.xlu1 %683 }
 0x233   :  { %v689_v21 = vsel %vm25_vm0, %v684_v19, 0 }
 0x234   :  { %698 = vmatpush.bf16.xpose.msrb.mxu3 %v689_v21 }
 0x235   :  { %v630_v14 = vpop.permute.xlu0 %629 }
 0x236   :  { %2114 = vmatmul.msk.bf16.vlgmr.msra.gmra.mxu3 %vm25_vm0, %v2650_v17 }
 0x23a   :  { %v500_v10 = vpop.permute.xlu1 %499 }
 0x23b   :  { %2111 = vmatmul.msk.bf16.vlgmr.msra.gmra.mxu0 %vm25_vm0, %v500_v10 }
 0x23d   :  { %v872_v57 = vpop.permute.xlu0 %871 }
 0x23e   :  { %2117 = vmatmul.msk.bf16.vlgmr.msrb.gmra.mxu2 %vm25_vm0, %v656_v62  ;;  %v877_v61 = vsel %vm324_vm2, %v872_v57, 0  ;;  %v809_v62 = vpop.permute.xlu2 %808 }
 0x23f   :  { %949 = vmatpush.bf16.msrb.mxu2 %v940_v56  ;;  %886 = vmatpush.bf16.msra.mxu3 %v877_v61  ;;  %v814_v0 = vsel %vm324_vm2, %v809_v62, 0 }
 0x240   :  { %823 = vmatpush.bf16.msra.mxu0 %v814_v0 }
 0x242   :  { %v632_v24 = vpop.permute.xlu1 %631 }
 0x243   :  { %v637_v25 = vsel %vm25_vm0, %v632_v24, 0 }
 0x244   :  { %646 = vmatpush.bf16.xpose.msrb.mxu1 %v637_v25 }
 0x246   :  { %2118 = vmatmul.msk.bf16.vlgmr.msrb.gmra.mxu3 %vm25_vm0, %v682_v15  ;;  %v830_v11 = vpop.permute.xlu2 %829 }
 0x247   :  { %v835_v12 = vsel %vm324_vm2, %v830_v11, 0 }
 0x24b   :  { %2115 = vmatmul.msk.bf16.vlgmr.msrb.gmra.mxu0 %vm25_vm0, %v604_v27  ;;  %2116 = vmatmul.msk.bf16.vlgmr.msrb.gmra.mxu1 %vm25_vm0, %v630_v14 }
 0x24c   :  { %844 = vmatpush.bf16.msra.mxu1 %v835_v12 }
 0x24e   :  { %v893_v14 = vpop.permute.xlu2 %892 }
 0x24f   :  { %v898_v27 = vsel %vm324_vm2, %v893_v14, 0 }
 0x250   :  { %907 = vmatpush.bf16.msrb.mxu0 %v898_v27 }
 0x266   :  { %v2729_v28 = vpop.f32.mrf.mxu0 }
 0x26e   :  { %v339_v17 = vpop.f32.mrf.mxu0  ;;  %v2731_v31 = vpop.f32.mrf.mxu1 }
 0x26f   :  { %v956_v17 = vpop.permute.xlu1 %955 }
 0x276   :  { %v360_v32 = vpop.f32.mrf.mxu1 }
 0x277   :  { %v961_v32 = vsel %vm324_vm2, %v956_v17, 0 }
 0x278   :  { %970 = vmatpush.bf16.msrb.mxu3 %v961_v32 }
 0x289   :  { %v2733_v33 = vpop.f32.mrf.mxu2 }
 0x28d   :  { %v2735_v35 = vpop.f32.mrf.mxu0 }
 0x291   :  { %v381_v23 = vpop.f32.mrf.mxu2  ;;  %v2737_v22 = vpop.f32.mrf.mxu3 }
 0x293   :  { %v2739_v38 = vpop.f32.mrf.mxu1 }
 0x295   :  { %v423_v39 = vpop.f32.mrf.mxu0 }
 0x299   :  { %v402_v40 = vpop.f32.mrf.mxu3 }
 0x29b   :  { %v444_v36 = vpop.f32.mrf.mxu1 }
 0x2a1   :  { %v2741_v37 = vpop.f32.mrf.mxu2 }
 0x2a3   :  { %v544_v41 = vpop.f32.mrf.mxu1 }
 0x2a4   :  { %v2745_v42 = vsel %vm11_vm1, -1e+30, %v544_v41 }
 0x2a5   :  { %v715_v43 = vsel %vm25_vm0, %v2745_v42, -inf }
 0x2a6   :  { %716 = vmax.xlane.f32.xlu0 %v715_v43  ;;  %v2794_v43 = vpop.permute.xlu0 %1041 }
 0x2a9   :  { %v465_v45 = vpop.f32.mrf.mxu2  ;;  %v2749_v46 = vpop.f32.mrf.mxu3 }
 0x2ab   :  { %v546_v48 = vpop.f32.mrf.mxu1 }
 0x2ae   :  { %v2796_v45 = vpop.permute.xlu0 %1067 }
 0x2b1   :  { %v486_v51 = vpop.f32.mrf.mxu3  ;;  %v570_v47 = vpop.f32.mrf.mxu2 }
 0x2b2   :  { %v2754_v52 = vsel %vm11_vm1, -1e+30, %v570_v47 }
 0x2b3   :  { %v718_v53 = vsel %vm25_vm0, %v2754_v52, -inf }
 0x2b4   :  { %719 = vmax.xlane.f32.xlu1 %v718_v53 }
 0x2b8   :  { %v518_v29 = vpop.f32.mrf.mxu0 }
 0x2b9   :  { %v2761_v59 = vsel %vm11_vm1, -1e+30, %v518_v29  ;;  %v572_v55 = vpop.f32.mrf.mxu2  ;;  %v596_v60 = vpop.f32.mrf.mxu3 }
 0x2ba   :  { %v712_v58 = vsel %vm25_vm0, %v2761_v59, -inf  ;;  %v707_v1 = vsel %vm11_vm1, -1e+30, %v596_v60 }
 0x2bb   :  { %713 = vmax.xlane.f32.xlu2 %v712_v58  ;;  %v721_v7 = vsel %vm25_vm0, %v707_v1, -inf }
 0x2c0   :  { %v520_v2 = vpop.f32.mrf.mxu0 }
 0x2c1   :  { %v598_v4 = vpop.f32.mrf.mxu3  ;;  %v674_v5 = vpop.f32.mrf.mxu2 }
 0x2c2   :  { %v2771_v63 = vsel %vm11_vm1, -1e+30, %v674_v5 }
 0x2c3   :  { %722 = vmax.xlane.f32.xlu2 %v721_v7  ;;  %v730_v8 = vsel %vm25_vm0, %v2771_v63, -inf }
 0x2c4   :  { %731 = vmax.xlane.f32.xlu0 %v730_v8 }
 0x2c8   :  { %v622_v15 = vpop.f32.mrf.mxu0  ;;  %v648_v6 = vpop.f32.mrf.mxu1 }
 0x2c9   :  { %v708_v16 = vsel %vm11_vm1, -1e+30, %v622_v15  ;;  %v709_v19 = vsel %vm11_vm1, -1e+30, %v648_v6  ;;  %v676_v21 = vpop.f32.mrf.mxu2  ;;  %v700_v10 = vpop.f32.mrf.mxu3 }
 0x2ca   :  { %v727_v24 = vsel %vm25_vm0, %v709_v19, -inf  ;;  %v724_v25 = vsel %vm25_vm0, %v708_v16, -inf  ;;  %v711_v23 = vsel %vm11_vm1, -1e+30, %v700_v10 }
 0x2cb   :  { %728 = vmax.xlane.f32.xlu2 %v727_v24  ;;  %725 = vmax.xlane.f32.xlu1 %v724_v25  ;;  %v733_v41 = vsel %vm25_vm0, %v711_v23, -inf }
 0x2d0   :  { %v624_v39 = vpop.f32.mrf.mxu0  ;;  %v650_v40 = vpop.f32.mrf.mxu1 }
 0x2d1   :  { %v702_v36 = vpop.f32.mrf.mxu3 }
 0x2d3   :  { %734 = vmax.xlane.f32.xlu1 %v733_v41 }
 0x2d8   :  { %913 = vrot.lane.b32.xlu0 %v2668_v30, %s2423_s5 }
 0x2e3   :  { %1171 = vrot.lane.b32.xlu2 %v2652_v18, %s2424_s6 }
 0x2ec   :  { %1039 = vrot.lane.b32.xlu1 %v2497_v34, %s2425_s7 }
 0x319   :  { %v717_v48 = vpop.xlane.xlu0 %716 }
 0x31a   :  { %v737_v49 = vsub.f32 %v2745_v42, %v717_v48 }
 0x31c   :  { %v746_v50 = vmul.f32 1.442695, %v737_v49 }
 0x31e   :  { %2322 = vpow2.f32 %v746_v50 }
 0x324   :  { %v2799_v51 = vpop.eup %2322 }
 0x325   :  { %v763_v47 = vsel %vm25_vm0, %v2799_v51, 0.0 }
 0x326   :  { %764 = vadd.xlane.f32.xlu0 %v763_v47 }
 0x327   :  { %v720_v53 = vpop.xlane.xlu1 %719 }
 0x328   :  { %v738_v54 = vsub.f32 %v2754_v52, %v720_v53 }
 0x32a   :  { %v748_v56 = vmul.f32 1.442695, %v738_v54 }
 0x32c   :  { %2324 = vpow2.f32 %v748_v56 }
 0x32e   :  { %v714_v29 = vpop.xlane.xlu2 %713 }
 0x32f   :  { %v736_v57 = vsub.f32 %v2761_v59, %v714_v29 }
 0x331   :  { %v744_v55 = vmul.f32 1.442695, %v736_v57 }
 0x332   :  { %v2805_v60 = vpop.eup %2324 }
 0x333   :  { %2326 = vpow2.f32 %v744_v55  ;;  %v766_v42 = vsel %vm25_vm0, %v2805_v60, 0.0 }
 0x334   :  { %767 = vadd.xlane.f32.xlu0 %v766_v42 }
 0x336   :  { %v723_v61 = vpop.xlane.xlu2 %722 }
 0x337   :  { %v739_v58 = vsub.f32 %v707_v1, %v723_v61  ;;  %v732_v4 = vpop.xlane.xlu0 %731  ;;  %v1073_v61 = vsel %vm25_vm0, %v2796_v45, 0 }
 0x338   :  { %v742_v15 = vsub.f32 %v2771_v63, %v732_v4 }
 0x339   :  { %v2809_v62 = vpop.eup %2326  ;;  %v750_v0 = vmul.f32 1.442695, %v739_v58 }
 0x33a   :  { %v760_v52 = vsel %vm25_vm0, %v2809_v62, 0.0  ;;  %v756_v6 = vmul.f32 1.442695, %v742_v15 }
 0x33b   :  { %2328 = vpow2.f32 %v750_v0  ;;  %761 = vadd.xlane.f32.xlu1 %v760_v52 }
 0x33e   :  { %v726_v2 = vpop.xlane.xlu1 %725  ;;  %v729_v59 = vpop.xlane.xlu2 %728 }
 0x33f   :  { %v740_v5 = vsub.f32 %v708_v16, %v726_v2  ;;  %v741_v7 = vsub.f32 %v709_v19, %v729_v59 }
 0x341   :  { %v2813_v8 = vpop.eup %2328  ;;  %v752_v11 = vmul.f32 1.442695, %v740_v5  ;;  %v754_v12 = vmul.f32 1.442695, %v741_v7 }
 0x342   :  { %v769_v1 = vsel %vm25_vm0, %v2813_v8, 0.0 }
 0x343   :  { %2330 = vpow2.f32 %v752_v11  ;;  %770 = vadd.xlane.f32.xlu1 %v769_v1 }
 0x344   :  { %2332 = vpow2.f32 %v754_v12 }
 0x345   :  { %2334 = vpow2.f32 %v756_v6 }
 0x346   :  { %v735_v21 = vpop.xlane.xlu1 %734  ;;  %v1172_v47 = vpop.permute.xlu2 %1171 }
 0x347   :  { %v743_v19 = vsub.f32 %v711_v23, %v735_v21 }
 0x348   :  { %1065 = vrot.lane.b32.xlu0 %v2572_v26, %s2425_s7 }
 0x349   :  { %v2820_v10 = vpop.eup %2330  ;;  %v758_v25 = vmul.f32 1.442695, %v743_v19 }
 0x34a   :  { %v2822_v16 = vpop.eup %2332  ;;  %v772_v63 = vsel %vm25_vm0, %v2820_v10, 0.0  ;;  %v914_v23 = vpop.permute.xlu0 %913 }
 0x34b   :  { %773 = vadd.xlane.f32.xlu2 %v772_v63  ;;  %v775_v24 = vsel %vm25_vm0, %v2822_v16, 0.0  ;;  %v2828_v14 = vpop.eup %2334  ;;  %2336 = vpow2.f32 %v758_v25  ;;  %v919_v39 = vsel %vm324_vm2, %v914_v23, 0  ;;  %v1177_v63 = vsel %vm25_vm0, %v1172_v47, 0 }
 0x34c   :  { %776 = vadd.xlane.f32.xlu1 %v775_v24  ;;  %v778_v27 = vsel %vm25_vm0, %v2828_v14, 0.0  ;;  %928 = vmatpush.bf16.msrb.mxu1 %v919_v39 }
 0x350   :  { %1145 = vrot.lane.b32.xlu0 %v2620_v3, %s2424_s6 }
 0x351   :  { %v2834_v17 = vpop.eup %2336 }
 0x352   :  { %v781_v32 = vsel %vm25_vm0, %v2834_v17, 0.0 }
 0x354   :  { %779 = vadd.xlane.f32.xlu1 %v778_v27 }
 0x358   :  { %989 = vrot.lane.b32.xlu0 %v2631_v9, %s2424_s6 }
 0x35c   :  { %782 = vadd.xlane.f32.xlu1 %v781_v32 }
 0x35e   :  { %v2869_v49 = vpop.permute.xlu1 %1039 }
 0x360   :  { %1169 = vrot.lane.b32.xlu0 %v2652_v18, %s2425_s7 }
 0x363   :  { %1143 = vrot.lane.b32.xlu2 %v2620_v3, %s2425_s7 }
 0x368   :  { %1093 = vrot.lane.b32.xlu0 %v2658_v20, %s2424_s6 }
 0x36b   :  { %1013 = vrot.lane.b32.xlu2 %v2639_v13, %s2425_s7 }
 0x370   :  { %1117 = vrot.lane.b32.xlu0 %v2668_v30, %s2425_s7 }
 0x373   :  { %1091 = vrot.lane.b32.xlu2 %v2658_v20, %s2425_s7 }
 0x375   :  { %1015 = vrot.lane.b32.xlu1 %v2639_v13, %s2424_s6 }
 0x378   :  { %1359 = vrot.lane.b32.xlu0 %v2572_v26, %s2426_s8 }
 0x37b   :  { %1317 = vrot.lane.b32.xlu2 %v2639_v13, %s2426_s8 }
 0x37d   :  { %987 = vrot.lane.b32.xlu1 %v2631_v9, %s2425_s7 }
 0x380   :  { %1380 = vrot.lane.b32.xlu0 %v2658_v20, %s2426_s8 }
 0x385   :  { %1119 = vrot.lane.b32.xlu1 %v2668_v30, %s2424_s6 }
 0x388   :  { %1401 = vrot.lane.b32.xlu0 %v2668_v30, %s2426_s8 }
 0x38d   :  { %1338 = vrot.lane.b32.xlu1 %v2497_v34, %s2426_s8 }
 0x390   :  { %1555 = vrot.lane.b32.xlu0 %v2572_v26, %s2427_s9 }
 0x395   :  { %1296 = vrot.lane.b32.xlu1 %v2631_v9, %s2426_s8 }
 0x398   :  { %1553 = vrot.lane.b32.xlu0 %v2572_v26, %s2428_s10 }
 0x399   :  { %v765_v40 = vpop.xlane.xlu0 %764 }
 0x39a   :  { %2338 = vrcp.f32 %v765_v40 }
 0x39d   :  { %1422 = vrot.lane.b32.xlu1 %v2620_v3, %s2426_s8 }
 0x3a0   :  { %v2339_v36 = vpop.eup %2338  ;;  %1477 = vrot.lane.b32.xlu0 %v2631_v9, %s2427_s9 }
 0x3a1   :  { %v793_v41 = vmul.f32 %v2339_v36, %v2799_v51  ;;  %v1047_v51 = vsel %vm25_vm0, %v2794_v43, 0 }
 0x3a3   :  { %v801_v48 = vpack.c.bf16 %v793_v41, %v793_v41 }
 0x3a5   :  { %2120 = vmatmul.msk.bf16.vlgmr.msra.gmra.mxu1 %vm25_vm0, %v801_v48  ;;  %1443 = vrot.lane.b32.xlu1 %v2652_v18, %s2426_s8  ;;  %v2418_v48 = vld [vmem:[%s3302_s0 + $0x8] sm:$0xff]  }
 0x3a7   :  { %v768_v20 = vpop.xlane.xlu0 %767 }
 0x3a8   :  { %2340 = vrcp.f32 %v768_v20 }
 0x3ae   :  { %v2341_v34 = vpop.eup %2340  ;;  %v762_v30 = vpop.xlane.xlu1 %761 }
 0x3af   :  { %v794_v3 = vmul.f32 %v2341_v34, %v2805_v60  ;;  %2342 = vrcp.f32 %v762_v30 }
 0x3b1   :  { %v802_v50 = vpack.c.bf16 %v794_v3, %v794_v3 }
 0x3b3   :  { %2121 = vmatmul.msk.bf16.vlgmr.msra.gmra.mxu2 %vm25_vm0, %v802_v50 }
 0x3b4   :  { %1056 = vmatpush.bf16.xpose.msra.mxu2 %v1047_v51 }
 0x3b5   :  { %v2343_v18 = vpop.eup %2342 }
 0x3b6   :  { %v792_v53 = vmul.f32 %v2343_v18, %v2809_v62  ;;  %v771_v54 = vpop.xlane.xlu1 %770 }
 0x3b7   :  { %2344 = vrcp.f32 %v771_v54 }
 0x3b8   :  { %v800_v56 = vpack.c.bf16 %v792_v53, %v792_v53 }
 0x3ba   :  { %2119 = vmatmul.msk.bf16.vlgmr.msra.gmra.mxu0 %vm25_vm0, %v800_v56  ;;  %v1066_v29 = vpop.permute.xlu0 %1065 }
 0x3bd   :  { %v2345_v57 = vpop.eup %2344 }
 0x3be   :  { %v795_v43 = vmul.f32 %v2345_v57, %v2813_v8  ;;  %v774_v55 = vpop.xlane.xlu2 %773 }
 0x3bf   :  { %v777_v60 = vpop.xlane.xlu1 %776  ;;  %2346 = vrcp.f32 %v774_v55 }
 0x3c0   :  { %v803_v42 = vpack.c.bf16 %v795_v43, %v795_v43  ;;  %2348 = vrcp.f32 %v777_v60 }
 0x3c2   :  { %2122 = vmatmul.msk.bf16.vlgmr.msra.gmra.mxu3 %vm25_vm0, %v803_v42  ;;  %v1146_v58 = vpop.permute.xlu0 %1145 }
 0x3c3   :  { %1082 = vmatpush.bf16.xpose.msra.mxu3 %v1073_v61  ;;  %v1151_v1 = vsel %vm25_vm0, %v1146_v58, 0 }
 0x3c5   :  { %v2347_v62 = vpop.eup %2346 }
 0x3c6   :  { %v2349_v0 = vpop.eup %2348  ;;  %v796_v52 = vmul.f32 %v2347_v62, %v2820_v10  ;;  %v1144_v25 = vpop.permute.xlu2 %1143 }
 0x3c7   :  { %v797_v2 = vmul.f32 %v2349_v0, %v2822_v16  ;;  %v780_v59 = vpop.xlane.xlu1 %779 }
 0x3c8   :  { %v804_v4 = vpack.c.bf16 %v796_v52, %v796_v52  ;;  %2350 = vrcp.f32 %v780_v59 }
 0x3c9   :  { %v805_v5 = vpack.c.bf16 %v797_v2, %v797_v2 }
 0x3ca   :  { %2123 = vmatmul.msk.bf16.vlgmr.msrb.gmra.mxu0 %vm25_vm0, %v804_v4  ;;  %v990_v7 = vpop.permute.xlu0 %989 }
 0x3cb   :  { %2124 = vmatmul.msk.bf16.vlgmr.msrb.gmra.mxu1 %vm25_vm0, %v805_v5  ;;  %v995_v45 = vsel %vm25_vm0, %v990_v7, 0 }
 0x3cc   :  { %1004 = vmatpush.bf16.xpose.msra.mxu0 %v995_v45 }
 0x3ce   :  { %v2351_v8 = vpop.eup %2350 }
 0x3cf   :  { %v798_v11 = vmul.f32 %v2351_v8, %v2828_v14  ;;  %v783_v12 = vpop.xlane.xlu1 %782 }
 0x3d0   :  { %2352 = vrcp.f32 %v783_v12 }
 0x3d1   :  { %v806_v15 = vpack.c.bf16 %v798_v11, %v798_v11 }
 0x3d2   :  { %v1170_v6 = vpop.permute.xlu0 %1169 }
 0x3d3   :  { %2125 = vmatmul.msk.bf16.vlgmr.msrb.gmra.mxu2 %vm25_vm0, %v806_v15 }
 0x3d4   :  { %1160 = vmatpush.bf16.xpose.msrb.mxu2 %v1151_v1 }
 0x3d6   :  { %v2353_v21 = vpop.eup %2352 }
 0x3d7   :  { %v799_v10 = vmul.f32 %v2353_v21, %v2834_v17  ;;  %v1014_v17 = vpop.permute.xlu2 %1013 }
 0x3d9   :  { %v807_v16 = vpack.c.bf16 %v799_v10, %v799_v10 }
 0x3da   :  { %v1094_v19 = vpop.permute.xlu0 %1093 }
 0x3db   :  { %2126 = vmatmul.msk.bf16.vlgmr.msrb.gmra.mxu3 %vm25_vm0, %v807_v16  ;;  %v1099_v24 = vsel %vm25_vm0, %v1094_v19, 0 }
 0x3dc   :  { %1186 = vmatpush.bf16.xpose.msrb.mxu3 %v1177_v63  ;;  %1108 = vmatpush.bf16.xpose.msrb.mxu0 %v1099_v24 }
 0x3df   :  { %v1092_v36 = vpop.permute.xlu2 %1091 }
 0x3e2   :  { %v1118_v40 = vpop.permute.xlu0 %1117 }
 0x3e3   :  { %2129 = vmatmul.msk.bf16.vlgmr.msra.gmra.mxu2 %vm25_vm0, %v2869_v49  ;;  %v2197_v49 = vunpack.c.l.b16 %v2418_v48 }
 0x3e5   :  { %v2915_v20 = vpack.c.b16 %v2197_v49, %v2197_v49 }
 0x3e7   :  { %v1016_v14 = vpop.permute.xlu1 %1015  ;;  %1527 = vrot.lane.b32.xlu2 %v2915_v20, %s2428_s10  ;;  %1529 = vrot.lane.b32.xlu1 %v2915_v20, %s2427_s9 }
 0x3e8   :  { %v1021_v27 = vsel %vm25_vm0, %v1016_v14, 0 }
 0x3e9   :  { %1030 = vmatpush.bf16.xpose.msra.mxu1 %v1021_v27 }
 0x3ea   :  { %v1360_v12 = vpop.permute.xlu0 %1359 }
 0x3eb   :  { %2130 = vmatmul.msk.bf16.vlgmr.msra.gmra.mxu3 %vm25_vm0, %v1066_v29  ;;  %v1365_v1 = vsel %vm324_vm2, %v1360_v12, 0 }
 0x3ec   :  { %1374 = vmatpush.bf16.msra.mxu3 %v1365_v1 }
 0x3ef   :  { %v988_v32 = vpop.permute.xlu1 %987 }
 0x3f0   :  { %2127 = vmatmul.msk.bf16.vlgmr.msra.gmra.mxu0 %vm25_vm0, %v988_v32  ;;  %2128 = vmatmul.msk.bf16.vlgmr.msra.gmra.mxu1 %vm25_vm0, %v1014_v17 }
 0x3f3   :  { %2133 = vmatmul.msk.bf16.vlgmr.msrb.gmra.mxu2 %vm25_vm0, %v1144_v25  ;;  %v1381_v25 = vpop.permute.xlu0 %1380 }
 0x3f4   :  { %v1386_v27 = vsel %vm324_vm2, %v1381_v25, 0 }
 0x3f7   :  { %v1120_v23 = vpop.permute.xlu1 %1119 }
 0x3f8   :  { %v1125_v39 = vsel %vm25_vm0, %v1120_v23, 0 }
 0x3f9   :  { %1134 = vmatpush.bf16.xpose.msrb.mxu1 %v1125_v39 }
 0x3fb   :  { %2134 = vmatmul.msk.bf16.vlgmr.msrb.gmra.mxu3 %vm25_vm0, %v1170_v6  ;;  %v1318_v6 = vpop.permute.xlu2 %1317 }
 0x3fc   :  { %v1323_v21 = vsel %vm324_vm2, %v1318_v6, 0 }
 0x3ff   :  { %v1339_v11 = vpop.permute.xlu1 %1338 }
 0x400   :  { %2131 = vmatmul.msk.bf16.vlgmr.msrb.gmra.mxu0 %vm25_vm0, %v1092_v36  ;;  %2132 = vmatmul.msk.bf16.vlgmr.msrb.gmra.mxu1 %vm25_vm0, %v1118_v40  ;;  %v1344_v15 = vsel %vm324_vm2, %v1339_v11, 0 }
 0x401   :  { %1353 = vmatpush.bf16.msra.mxu2 %v1344_v15  ;;  %1332 = vmatpush.bf16.msra.mxu1 %v1323_v21 }
 0x407   :  { %v1297_v24 = vpop.permute.xlu1 %1296 }
 0x408   :  { %v1302_v14 = vsel %vm324_vm2, %v1297_v24, 0 }
 0x409   :  { %1311 = vmatpush.bf16.msra.mxu0 %v1302_v14 }
 0x40d   :  { %1395 = vmatpush.bf16.msrb.mxu0 %v1386_v27 }
 0x422   :  { %v2910_v41 = vpop.f32.mrf.mxu1 }
 0x42a   :  { %v848_v34 = vpop.f32.mrf.mxu1 }
 0x436   :  { %v2921_v30 = vpop.f32.mrf.mxu2 }
 0x437   :  { %v2923_v3 = vpop.f32.mrf.mxu0 }
 0x438   :  { %v2230_v50 = vpack.i.bf16 %v2910_v41, %v2923_v3 }
 0x43e   :  { %v869_v51 = vpop.f32.mrf.mxu2 }
 0x43f   :  { %v827_v18 = vpop.f32.mrf.mxu0 }
 0x440   :  { %v1402_v18 = vpop.permute.xlu0 %1401 }
 0x441   :  { %v2993_v6 = vpop.permute.xlu2 %1527 }
 0x445   :  { %v2927_v47 = vpop.f32.mrf.mxu3 }
 0x446   :  { %v2235_v53 = vpack.i.bf16 %v2927_v47, %v2921_v30 }
 0x447   :  { %v2931_v54 = vpop.f32.mrf.mxu0 }
 0x448   :  { %v2933_v56 = vpop.f32.mrf.mxu1 }
 0x449   :  { %v2240_v29 = vpack.i.bf16 %v2933_v56, %v2931_v54 }
 0x44d   :  { %v890_v57 = vpop.f32.mrf.mxu3 }
 0x44e   :  { %v1423_v57 = vpop.permute.xlu1 %1422 }
 0x44f   :  { %v911_v43 = vpop.f32.mrf.mxu0 }
 0x450   :  { %v932_v55 = vpop.f32.mrf.mxu1  ;;  %v1407_v43 = vsel %vm324_vm2, %v1402_v18, 0 }
 0x451   :  { %v1428_v55 = vsel %vm324_vm2, %v1423_v57, 0  ;;  %1416 = vmatpush.bf16.msrb.mxu1 %v1407_v43 }
 0x452   :  { %1437 = vmatpush.bf16.msrb.mxu2 %v1428_v55 }
 0x456   :  { %v2937_v60 = vpop.f32.mrf.mxu2  ;;  %v1444_v11 = vpop.permute.xlu1 %1443 }
 0x457   :  { %v1449_v12 = vsel %vm324_vm2, %v1444_v11, 0 }
 0x458   :  { %1458 = vmatpush.bf16.msrb.mxu3 %v1449_v12  ;;  %v2215_v12 = vld [vmem:[%s3302_s0 + $0x18] sm:$0xff]  }
 0x45e   :  { %v953_v42 = vpop.f32.mrf.mxu2  ;;  %v2939_v61 = vpop.f32.mrf.mxu3 }
 0x45f   :  { %v2245_v58 = vpack.i.bf16 %v2939_v61, %v2937_v60  ;;  %v2999_v14 = vpop.permute.xlu1 %1529 }
 0x466   :  { %v974_v62 = vpop.f32.mrf.mxu3  ;;  %v1058_v0 = vpop.f32.mrf.mxu2 }
 0x467   :  { %v1194_v42 = vsel %vm11_vm1, -1e+30, %v1058_v0 }
 0x46d   :  { %v1006_v52 = vpop.f32.mrf.mxu0  ;;  %v1032_v2 = vpop.f32.mrf.mxu1 }
 0x46e   :  { %v2945_v59 = vsel %vm11_vm1, -1e+30, %v1006_v52  ;;  %v2949_v4 = vsel %vm11_vm1, -1e+30, %v1032_v2  ;;  %v1060_v5 = vpop.f32.mrf.mxu2  ;;  %v1084_v7 = vpop.f32.mrf.mxu3 }
 0x46f   :  { %v1200_v45 = vsel %vm25_vm0, %v2945_v59, -inf  ;;  %v1203_v8 = vsel %vm25_vm0, %v2949_v4, -inf  ;;  %v1195_v62 = vsel %vm11_vm1, -1e+30, %v1084_v7  ;;  %v2989_v7 = vpop.permute.xlu0 %1555 }
 0x470   :  { %1201 = vmax.xlane.f32.xlu0 %v1200_v45  ;;  %1204 = vmax.xlane.f32.xlu2 %v1203_v8  ;;  %v1206_v45 = vsel %vm25_vm0, %v1194_v42, -inf  ;;  %v1209_v8 = vsel %vm25_vm0, %v1195_v62, -inf }
 0x475   :  { %v1008_v10 = vpop.f32.mrf.mxu0  ;;  %v1034_v16 = vpop.f32.mrf.mxu1 }
 0x476   :  { %v1086_v19 = vpop.f32.mrf.mxu3  ;;  %v1162_v63 = vpop.f32.mrf.mxu2 }
 0x477   :  { %v2983_v15 = vsel %vm11_vm1, -1e+30, %v1162_v63  ;;  %v2991_v1 = vpop.permute.xlu0 %1553 }
 0x478   :  { %v1218_v0 = vsel %vm25_vm0, %v2983_v15, -inf }
 0x47d   :  { %v1110_v17 = vpop.f32.mrf.mxu0  ;;  %v1136_v32 = vpop.f32.mrf.mxu1 }
 0x47e   :  { %v1196_v23 = vsel %vm11_vm1, -1e+30, %v1110_v17  ;;  %v1197_v39 = vsel %vm11_vm1, -1e+30, %v1136_v32  ;;  %v1164_v40 = vpop.f32.mrf.mxu2  ;;  %v1188_v36 = vpop.f32.mrf.mxu3 }
 0x47f   :  { %v2966_v48 = vsel %vm11_vm1, -1e+30, %v1188_v36  ;;  %v1215_v49 = vsel %vm25_vm0, %v1197_v39, -inf  ;;  %v1212_v34 = vsel %vm25_vm0, %v1196_v23, -inf  ;;  %v2995_v21 = vpop.permute.xlu0 %1477 }
 0x480   :  { %1216 = vmax.xlane.f32.xlu1 %v1215_v49  ;;  %1213 = vmax.xlane.f32.xlu2 %v1212_v34  ;;  %v1221_v51 = vsel %vm25_vm0, %v2966_v48, -inf }
 0x481   :  { %1222 = vmax.xlane.f32.xlu0 %v1221_v51 }
 0x485   :  { %v1138_v52 = vpop.f32.mrf.mxu1  ;;  %v1112_v2 = vpop.f32.mrf.mxu0 }
 0x486   :  { %v1190_v5 = vpop.f32.mrf.mxu3 }
 0x488   :  { %1207 = vmax.xlane.f32.xlu1 %v1206_v45  ;;  %1210 = vmax.xlane.f32.xlu2 %v1209_v8 }
 0x490   :  { %1219 = vmax.xlane.f32.xlu1 %v1218_v0  ;;  %v2205_v0 = vunpack.c.l.b16 %v2215_v12 }
 0x4a9   :  { %1503 = vrot.lane.b32.xlu1 %v2639_v13, %s2427_s9 }
 0x4e3   :  { %v1202_v10 = vpop.xlane.xlu0 %1201  ;;  %v1205_v16 = vpop.xlane.xlu2 %1204 }
 0x4e4   :  { %v1224_v19 = vsub.f32 %v2945_v59, %v1202_v10  ;;  %v1225_v24 = vsub.f32 %v2949_v4, %v1205_v16  ;;  %v3028_v10 = vpack.c.b16 %v2205_v0, %v2205_v0  ;;  %v2206_v16 = vunpack.c.h.b16 %v2215_v12 }
 0x4e6   :  { %v1232_v63 = vmul.f32 1.442695, %v1224_v19  ;;  %v1234_v25 = vmul.f32 1.442695, %v1225_v24  ;;  %v3034_v19 = vpack.c.b16 %v2206_v16, %v2206_v16 }
 0x4e8   :  { %2354 = vpow2.f32 %v1232_v63 }
 0x4e9   :  { %2356 = vpow2.f32 %v1234_v25 }
 0x4ee   :  { %v3001_v27 = vpop.eup %2354 }
 0x4ef   :  { %v1248_v17 = vsel %vm25_vm0, %v3001_v27, 0.0  ;;  %v3005_v36 = vpop.eup %2356 }
 0x4f0   :  { %1249 = vadd.xlane.f32.xlu2 %v1248_v17  ;;  %v1251_v4 = vsel %vm25_vm0, %v3005_v36, 0.0 }
 0x4f3   :  { %v1217_v32 = vpop.xlane.xlu1 %1216  ;;  %v1214_v40 = vpop.xlane.xlu2 %1213 }
 0x4f4   :  { %v1229_v49 = vsub.f32 %v1197_v39, %v1217_v32  ;;  %v1228_v59 = vsub.f32 %v1196_v23, %v1214_v40  ;;  %v1223_v63 = vpop.xlane.xlu0 %1222  ;;  %v2214_v40 = vld [vmem:[%s3302_s0 + $0x10] sm:$0xff]   ;;  %s2429_s0 = smov 40  }
 0x4f5   :  { %v1231_v24 = vsub.f32 %v2966_v48, %v1223_v63 }
 0x4f6   :  { %v1242_v34 = vmul.f32 1.442695, %v1229_v49  ;;  %v1240_v51 = vmul.f32 1.442695, %v1228_v59  ;;  %v2201_v49 = vunpack.c.l.b16 %v2214_v40 }
 0x4f7   :  { %v1246_v17 = vmul.f32 1.442695, %v1231_v24 }
 0x4f8   :  { %2358 = vpow2.f32 %v1242_v34  ;;  %1252 = vadd.xlane.f32.xlu2 %v1251_v4  ;;  %v3045_v34 = vpack.c.b16 %v2201_v49, %v2201_v49 }
 0x4f9   :  { %2360 = vpow2.f32 %v1240_v51 }
 0x4fb   :  { %v1208_v18 = vpop.xlane.xlu1 %1207  ;;  %v1211_v57 = vpop.xlane.xlu2 %1210 }
 0x4fc   :  { %v1226_v43 = vsub.f32 %v1194_v42, %v1208_v18  ;;  %v1227_v55 = vsub.f32 %v1195_v62, %v1211_v57  ;;  %v2202_v18 = vunpack.c.h.b16 %v2214_v40 }
 0x4fe   :  { %v3009_v52 = vpop.eup %2358  ;;  %v1236_v2 = vmul.f32 1.442695, %v1226_v43  ;;  %v1238_v5 = vmul.f32 1.442695, %v1227_v55  ;;  %v3063_v43 = vpack.c.b16 %v2202_v18, %v2202_v18 }
 0x4ff   :  { %v3011_v45 = vpop.eup %2360  ;;  %v1263_v23 = vsel %vm25_vm0, %v3009_v52, 0.0 }
 0x500   :  { %2362 = vpow2.f32 %v1236_v2  ;;  %1264 = vadd.xlane.f32.xlu2 %v1263_v23  ;;  %v1260_v39 = vsel %vm25_vm0, %v3011_v45, 0.0 }
 0x501   :  { %2364 = vpow2.f32 %v1238_v5  ;;  %1261 = vadd.xlane.f32.xlu1 %v1260_v39 }
 0x502   :  { %2366 = vpow2.f32 %v1246_v17 }
 0x503   :  { %v1220_v25 = vpop.xlane.xlu1 %1219 }
 0x504   :  { %v1230_v32 = vsub.f32 %v2983_v15, %v1220_v25 }
 0x506   :  { %v3017_v8 = vpop.eup %2362  ;;  %v1244_v59 = vmul.f32 1.442695, %v1230_v32 }
 0x507   :  { %v3019_v42 = vpop.eup %2364  ;;  %v1254_v62 = vsel %vm25_vm0, %v3017_v8, 0.0 }
 0x508   :  { %1255 = vadd.xlane.f32.xlu0 %v1254_v62  ;;  %v1257_v11 = vsel %vm25_vm0, %v3019_v42, 0.0  ;;  %2368 = vpow2.f32 %v1244_v59  ;;  %v3049_v51 = vpop.eup %2366  ;;  %v1483_v62 = vsel %vm25_vm0, %v2995_v21, 0 }
 0x509   :  { %1258 = vadd.xlane.f32.xlu2 %v1257_v11  ;;  %v1269_v48 = vsel %vm25_vm0, %v3049_v51, 0.0 }
 0x50e   :  { %v3053_v4 = vpop.eup %2368 }
 0x50f   :  { %v1266_v15 = vsel %vm25_vm0, %v3053_v4, 0.0 }
 0x51a   :  { %1475 = vrot.lane.b32.xlu1 %v2631_v9, %s2428_s10 }
 0x51b   :  { %v1504_v23 = vpop.permute.xlu1 %1503 }
 0x51c   :  { %1633 = vrot.lane.b32.xlu0 %v3028_v10, %s2427_s9  ;;  %v1509_v24 = vsel %vm25_vm0, %v1504_v23, 0 }
 0x521   :  { %1659 = vrot.lane.b32.xlu2 %v3034_v19, %s2427_s9 }
 0x522   :  { %1657 = vrot.lane.b32.xlu1 %v3034_v19, %s2428_s10 }
 0x52a   :  { %1579 = vrot.lane.b32.xlu1 %v3045_v34, %s2428_s10 }
 0x546   :  { %1270 = vadd.xlane.f32.xlu0 %v1269_v48 }
 0x54a   :  { %1267 = vadd.xlane.f32.xlu2 %v1266_v15 }
 0x55a   :  { %1501 = vrot.lane.b32.xlu0 %v2639_v13, %s2428_s10 }
 0x562   :  { %1581 = vrot.lane.b32.xlu0 %v3045_v34, %s2427_s9  ;;  %1631 = vrot.lane.b32.xlu2 %v3028_v10, %s2428_s10 }
 0x563   :  { %v1250_v57 = vpop.xlane.xlu2 %1249 }
 0x564   :  { %2370 = vrcp.f32 %v1250_v57 }
 0x56a   :  { %v2371_v55 = vpop.eup %2370  ;;  %1605 = vrot.lane.b32.xlu0 %v3063_v43, %s2428_s10  ;;  %1607 = vrot.lane.b32.xlu2 %v3063_v43, %s2427_s9 }
 0x56b   :  { %v1280_v2 = vmul.f32 %v2371_v55, %v3001_v27  ;;  %v1253_v5 = vpop.xlane.xlu2 %1252 }
 0x56c   :  { %2372 = vrcp.f32 %v1253_v5 }
 0x56d   :  { %v1288_v39 = vpack.c.bf16 %v1280_v2, %v1280_v2  ;;  %v1561_v2 = vsel %vm25_vm0, %v2989_v7, 0 }
 0x56f   :  { %2135 = vmatmul.msk.bf16.vlgmr.msra.gmra.mxu0 %vm25_vm0, %v1288_v39 }
 0x570   :  { %1492 = vmatpush.bf16.xpose.msra.mxu0 %v1483_v62 }
 0x572   :  { %v2373_v11 = vpop.eup %2372  ;;  %1826 = vrot.lane.b32.xlu2 %v2915_v20, %s2429_s0 }
 0x573   :  { %v1281_v12 = vmul.f32 %v2373_v11, %v3005_v36  ;;  %v1265_v0 = vpop.xlane.xlu2 %1264 }
 0x574   :  { %v1262_v16 = vpop.xlane.xlu1 %1261 }
 0x575   :  { %v1289_v63 = vpack.c.bf16 %v1281_v12, %v1281_v12  ;;  %2374 = vrcp.f32 %v1262_v16 }
 0x576   :  { %2376 = vrcp.f32 %v1265_v0 }
 0x577   :  { %2136 = vmatmul.msk.bf16.vlgmr.msra.gmra.mxu1 %vm25_vm0, %v1289_v63 }
 0x578   :  { %1518 = vmatpush.bf16.xpose.msra.mxu1 %v1509_v24 }
 0x57b   :  { %v2375_v27 = vpop.eup %2374  ;;  %v1256_v25 = vpop.xlane.xlu0 %1255 }
 0x57c   :  { %v1284_v21 = vmul.f32 %v2375_v27, %v3011_v45  ;;  %2378 = vrcp.f32 %v1256_v25  ;;  %v1259_v17 = vpop.xlane.xlu2 %1258  ;;  %v2377_v32 = vpop.eup %2376  ;;  %v1535_v45 = vsel %vm25_vm0, %v2999_v14, 0 }
 0x57d   :  { %2380 = vrcp.f32 %v1259_v17  ;;  %v1285_v36 = vmul.f32 %v2377_v32, %v3009_v52 }
 0x57e   :  { %v1292_v40 = vpack.c.bf16 %v1284_v21, %v1284_v21 }
 0x57f   :  { %v1293_v18 = vpack.c.bf16 %v1285_v36, %v1285_v36 }
 0x580   :  { %2139 = vmatmul.msk.bf16.vlgmr.msrb.gmra.mxu0 %vm25_vm0, %v1292_v40 }
 0x582   :  { %v2379_v49 = vpop.eup %2378 }
 0x583   :  { %v2381_v59 = vpop.eup %2380  ;;  %v1282_v48 = vmul.f32 %v2379_v49, %v3017_v8 }
 0x584   :  { %v1283_v15 = vmul.f32 %v2381_v59, %v3019_v42  ;;  %v1660_v14 = vpop.permute.xlu2 %1659 }
 0x585   :  { %v1290_v57 = vpack.c.bf16 %v1282_v48, %v1282_v48  ;;  %v1665_v11 = vsel %vm25_vm0, %v1660_v14, 0 }
 0x586   :  { %v1291_v55 = vpack.c.bf16 %v1283_v15, %v1283_v15 }
 0x587   :  { %2137 = vmatmul.msk.bf16.vlgmr.msra.gmra.mxu2 %vm25_vm0, %v1290_v57  ;;  %2140 = vmatmul.msk.bf16.vlgmr.msrb.gmra.mxu1 %vm25_vm0, %v1293_v18 }
 0x588   :  { %2138 = vmatmul.msk.bf16.vlgmr.msra.gmra.mxu3 %vm25_vm0, %v1291_v55  ;;  %1544 = vmatpush.bf16.xpose.msra.mxu2 %v1535_v45 }
 0x589   :  { %1570 = vmatpush.bf16.xpose.msra.mxu3 %v1561_v2 }
 0x58c   :  { %v1476_v52 = vpop.permute.xlu1 %1475 }
 0x58e   :  { %v1634_v8 = vpop.permute.xlu0 %1633 }
 0x58f   :  { %v1639_v16 = vsel %vm25_vm0, %v1634_v8, 0 }
 0x590   :  { %2143 = vmatmul.msk.bf16.vlgmr.msra.gmra.mxu0 %vm25_vm0, %v1476_v52 }
 0x594   :  { %v1658_v27 = vpop.permute.xlu1 %1657 }
 0x59c   :  { %v1580_v21 = vpop.permute.xlu1 %1579 }
 0x5b9   :  { %v1271_v42 = vpop.xlane.xlu0 %1270 }
 0x5ba   :  { %2382 = vrcp.f32 %v1271_v42 }
 0x5bd   :  { %v1268_v5 = vpop.xlane.xlu2 %1267 }
 0x5be   :  { %2384 = vrcp.f32 %v1268_v5 }
 0x5c0   :  { %v2383_v23 = vpop.eup %2382 }
 0x5c1   :  { %v1287_v7 = vmul.f32 %v2383_v23, %v3049_v51 }
 0x5c3   :  { %v1295_v39 = vpack.c.bf16 %v1287_v7, %v1287_v7 }
 0x5c4   :  { %v2385_v62 = vpop.eup %2384 }
 0x5c5   :  { %v1286_v12 = vmul.f32 %v2385_v62, %v3053_v4  ;;  %2142 = vmatmul.msk.bf16.vlgmr.msrb.gmra.mxu3 %vm25_vm0, %v1295_v39  ;;  %v1632_v0 = vpop.permute.xlu2 %1631 }
 0x5c6   :  { %1674 = vmatpush.bf16.xpose.msrb.mxu3 %v1665_v11 }
 0x5c7   :  { %v1294_v20 = vpack.c.bf16 %v1286_v12, %v1286_v12 }
 0x5c9   :  { %2141 = vmatmul.msk.bf16.vlgmr.msrb.gmra.mxu2 %vm25_vm0, %v1294_v20 }
 0x5ca   :  { %1648 = vmatpush.bf16.xpose.msrb.mxu2 %v1639_v16 }
 0x5cc   :  { %v1502_v63 = vpop.permute.xlu0 %1501 }
 0x5cd   :  { %2144 = vmatmul.msk.bf16.vlgmr.msra.gmra.mxu1 %vm25_vm0, %v1502_v63  ;;  %v1608_v51 = vpop.permute.xlu2 %1607 }
 0x5ce   :  { %v1613_v24 = vsel %vm25_vm0, %v1608_v51, 0 }
 0x5cf   :  { %1622 = vmatpush.bf16.xpose.msrb.mxu1 %v1613_v24 }
 0x5d4   :  { %v1582_v25 = vpop.permute.xlu0 %1581 }
 0x5d5   :  { %v1587_v4 = vsel %vm25_vm0, %v1582_v25, 0  ;;  %2146 = vmatmul.msk.bf16.vlgmr.msra.gmra.mxu3 %vm25_vm0, %v2991_v1 }
 0x5d6   :  { %1596 = vmatpush.bf16.xpose.msrb.mxu0 %v1587_v4 }
 0x5d9   :  { %2145 = vmatmul.msk.bf16.vlgmr.msra.gmra.mxu2 %vm25_vm0, %v2993_v6 }
 0x5dc   :  { %v1606_v17 = vpop.permute.xlu0 %1605 }
 0x5dd   :  { %2147 = vmatmul.msk.bf16.vlgmr.msrb.gmra.mxu0 %vm25_vm0, %v1580_v21  ;;  %2148 = vmatmul.msk.bf16.vlgmr.msrb.gmra.mxu1 %vm25_vm0, %v1606_v17 }
 0x5e5   :  { %2150 = vmatmul.msk.bf16.vlgmr.msrb.gmra.mxu3 %vm25_vm0, %v1658_v27 }
 0x5e9   :  { %2149 = vmatmul.msk.bf16.vlgmr.msrb.gmra.mxu2 %vm25_vm0, %v1632_v0 }
 0x5ec   :  { %v3108_v32 = vpop.f32.mrf.mxu0 }
 0x5f4   :  { %v1315_v40 = vpop.f32.mrf.mxu0  ;;  %v3110_v36 = vpop.f32.mrf.mxu1 }
 0x5f5   :  { %v2250_v1 = vpack.i.bf16 %v3110_v36, %v3108_v32 }
 0x5fc   :  { %v1336_v49 = vpop.f32.mrf.mxu1 }
 0x5fd   :  { %v3114_v6 = vpop.f32.mrf.mxu0 }
 0x604   :  { %v3116_v59 = vpop.f32.mrf.mxu1 }
 0x605   :  { %v1399_v48 = vpop.f32.mrf.mxu0  ;;  %v2260_v15 = vpack.i.bf16 %v3116_v59, %v3114_v6 }
 0x60a   :  { %v3120_v18 = vpop.f32.mrf.mxu2 }
 0x60b   :  { %v3122_v57 = vpop.f32.mrf.mxu3 }
 0x60c   :  { %v2255_v55 = vpack.i.bf16 %v3122_v57, %v3120_v18  ;;  %v1420_v45 = vpop.f32.mrf.mxu1 }
 0x60d   :  { %v1494_v2 = vpop.f32.mrf.mxu0 }
 0x60e   :  { %v1680_v52 = vsel %vm11_vm1, -1e+30, %v1494_v2 }
 0x60f   :  { %v1688_v8 = vsel %vm25_vm0, %v1680_v52, -inf }
 0x610   :  { %1689 = vmax.xlane.f32.xlu0 %v1688_v8 }
 0x612   :  { %v1357_v14 = vpop.f32.mrf.mxu2 }
 0x613   :  { %v1378_v42 = vpop.f32.mrf.mxu3 }
 0x615   :  { %v1496_v5 = vpop.f32.mrf.mxu0 }
 0x616   :  { %v1827_v5 = vpop.permute.xlu2 %1826 }
 0x624   :  { %1784 = vrot.lane.b32.xlu0 %v2631_v9, %s2429_s0 }
 0x648   :  { %v3131_v23 = vpop.f32.mrf.mxu3 }
 0x64a   :  { %v1520_v7 = vpop.f32.mrf.mxu1 }
 0x64b   :  { %v1681_v39 = vsel %vm11_vm1, -1e+30, %v1520_v7 }
 0x64c   :  { %v3135_v62 = vpop.f32.mrf.mxu2  ;;  %v1691_v11 = vsel %vm25_vm0, %v1681_v39, -inf }
 0x64d   :  { %v2265_v12 = vpack.i.bf16 %v3131_v23, %v3135_v62  ;;  %1692 = vmax.xlane.f32.xlu2 %v1691_v11  ;;  %v1832_v11 = vsel %vm324_vm2, %v1827_v5, 0 }
 0x64e   :  { %1841 = vmatpush.bf16.msra.mxu2 %v1832_v11 }
 0x650   :  { %v1462_v0 = vpop.f32.mrf.mxu3 }
 0x652   :  { %v1522_v20 = vpop.f32.mrf.mxu1 }
 0x654   :  { %v1441_v16 = vpop.f32.mrf.mxu2 }
 0x658   :  { %v1572_v63 = vpop.f32.mrf.mxu3 }
 0x659   :  { %v1683_v40 = vsel %vm11_vm1, -1e+30, %v1572_v63 }
 0x65a   :  { %v1598_v51 = vpop.f32.mrf.mxu0  ;;  %v1624_v9 = vpop.f32.mrf.mxu1  ;;  %v1697_v14 = vsel %vm25_vm0, %v1683_v40, -inf }
 0x65b   :  { %v1684_v24 = vsel %vm11_vm1, -1e+30, %v1598_v51  ;;  %v1685_v27 = vsel %vm11_vm1, -1e+30, %v1624_v9 }
 0x65c   :  { %v1546_v25 = vpop.f32.mrf.mxu2  ;;  %v1700_v4 = vsel %vm25_vm0, %v1684_v24, -inf  ;;  %v1703_v21 = vsel %vm25_vm0, %v1685_v27, -inf }
 0x65d   :  { %1701 = vmax.xlane.f32.xlu2 %v1700_v4  ;;  %1704 = vmax.xlane.f32.xlu1 %v1703_v21  ;;  %v1682_v49 = vsel %vm11_vm1, -1e+30, %v1546_v25 }
 0x65e   :  { %v1694_v8 = vsel %vm25_vm0, %v1682_v49, -inf }
 0x660   :  { %v1574_v17 = vpop.f32.mrf.mxu3 }
 0x662   :  { %v1600_v48 = vpop.f32.mrf.mxu0  ;;  %v1626_v45 = vpop.f32.mrf.mxu1 }
 0x664   :  { %v1548_v2 = vpop.f32.mrf.mxu2 }
 0x665   :  { %1695 = vmax.xlane.f32.xlu2 %v1694_v8  ;;  %1698 = vmax.xlane.f32.xlu1 %v1697_v14 }
 0x668   :  { %v1676_v42 = vpop.f32.mrf.mxu3 }
 0x669   :  { %v1687_v7 = vsel %vm11_vm1, -1e+30, %v1676_v42 }
 0x66a   :  { %v1709_v0 = vsel %vm25_vm0, %v1687_v7, -inf }
 0x66b   :  { %1710 = vmax.xlane.f32.xlu0 %v1709_v0 }
 0x66c   :  { %v1650_v20 = vpop.f32.mrf.mxu2 }
 0x66d   :  { %v1686_v16 = vsel %vm11_vm1, -1e+30, %v1650_v20 }
 0x66e   :  { %v1706_v63 = vsel %vm25_vm0, %v1686_v16, -inf }
 0x66f   :  { %1707 = vmax.xlane.f32.xlu1 %v1706_v63 }
 0x670   :  { %v1678_v51 = vpop.f32.mrf.mxu3 }
 0x674   :  { %v1652_v9 = vpop.f32.mrf.mxu2 }
 0x67d   :  { %1805 = vrot.lane.b32.xlu2 %v2639_v13, %s2429_s0 }
 0x683   :  { %v1690_v25 = vpop.xlane.xlu0 %1689 }
 0x684   :  { %v1712_v17 = vsub.f32 %v1680_v52, %v1690_v25 }
 0x686   :  { %v1720_v48 = vmul.f32 1.442695, %v1712_v17 }
 0x688   :  { %1847 = vrot.lane.b32.xlu1 %v2572_v26, %s2429_s0  ;;  %2386 = vpow2.f32 %v1720_v48 }
 0x68e   :  { %v3164_v44 = vpop.eup %2386 }
 0x68f   :  { %v1736_v45 = vsel %vm25_vm0, %v3164_v44, 0.0 }
 0x696   :  { %v1785_v4 = vpop.permute.xlu0 %1784 }
 0x697   :  { %v1790_v21 = vsel %vm324_vm2, %v1785_v4, 0 }
 0x698   :  { %1799 = vmatpush.bf16.msra.mxu0 %v1790_v21 }
 0x6b2   :  { %1737 = vadd.xlane.f32.xlu1 %v1736_v45 }
 0x6c0   :  { %v1693_v2 = vpop.xlane.xlu2 %1692 }
 0x6c1   :  { %v1713_v8 = vsub.f32 %v1681_v39, %v1693_v2 }
 0x6c3   :  { %v1722_v13 = vmul.f32 1.442695, %v1713_v8 }
 0x6c5   :  { %2388 = vpow2.f32 %v1722_v13 }
 0x6cb   :  { %v3168_v14 = vpop.eup %2388 }
 0x6cc   :  { %v1739_v26 = vsel %vm25_vm0, %v3168_v14, 0.0 }
 0x6cd   :  { %1740 = vadd.xlane.f32.xlu0 %v1739_v26 }
 0x6d0   :  { %v1705_v42 = vpop.xlane.xlu1 %1704  ;;  %v1702_v52 = vpop.xlane.xlu2 %1701 }
 0x6d1   :  { %v1717_v5 = vsub.f32 %v1685_v27, %v1705_v42  ;;  %v1716_v11 = vsub.f32 %v1684_v24, %v1702_v52 }
 0x6d3   :  { %v1730_v0 = vmul.f32 1.442695, %v1717_v5  ;;  %v1728_v20 = vmul.f32 1.442695, %v1716_v11 }
 0x6d5   :  { %2390 = vpow2.f32 %v1730_v0 }
 0x6d6   :  { %2392 = vpow2.f32 %v1728_v20 }
 0x6d8   :  { %v1699_v63 = vpop.xlane.xlu1 %1698  ;;  %v1696_v51 = vpop.xlane.xlu2 %1695 }
 0x6d9   :  { %v1715_v9 = vsub.f32 %v1683_v40, %v1699_v63  ;;  %v1714_v39 = vsub.f32 %v1682_v49, %v1696_v51 }
 0x6db   :  { %v3172_v25 = vpop.eup %2390  ;;  %v1726_v4 = vmul.f32 1.442695, %v1715_v9  ;;  %v1724_v21 = vmul.f32 1.442695, %v1714_v39 }
 0x6dc   :  { %v3174_v17 = vpop.eup %2392  ;;  %v1751_v48 = vsel %vm25_vm0, %v3172_v25, 0.0 }
 0x6dd   :  { %2394 = vpow2.f32 %v1726_v4  ;;  %1752 = vadd.xlane.f32.xlu0 %v1751_v48  ;;  %v1748_v24 = vsel %vm25_vm0, %v3174_v17, 0.0 }
 0x6de   :  { %2396 = vpow2.f32 %v1724_v21  ;;  %1749 = vadd.xlane.f32.xlu2 %v1748_v24  ;;  %v1711_v27 = vpop.xlane.xlu0 %1710 }
 0x6df   :  { %v1719_v45 = vsub.f32 %v1687_v7, %v1711_v27 }
 0x6e1   :  { %v1734_v40 = vmul.f32 1.442695, %v1719_v45 }
 0x6e2   :  { %v1708_v49 = vpop.xlane.xlu1 %1707 }
 0x6e3   :  { %v2395_v2 = vpop.eup %2394  ;;  %2398 = vpow2.f32 %v1734_v40  ;;  %v1718_v8 = vsub.f32 %v1686_v16, %v1708_v49  ;;  %v1806_v16 = vpop.permute.xlu2 %1805 }
 0x6e4   :  { %v2397_v13 = vpop.eup %2396  ;;  %v1745_v26 = vsel %vm25_vm0, %v2395_v2, 0.0  ;;  %v1811_v20 = vsel %vm324_vm2, %v1806_v16, 0 }
 0x6e5   :  { %v1732_v42 = vmul.f32 1.442695, %v1718_v8  ;;  %v1742_v52 = vsel %vm25_vm0, %v2397_v13, 0.0  ;;  %1820 = vmatpush.bf16.msra.mxu1 %v1811_v20 }
 0x6e6   :  { %1746 = vadd.xlane.f32.xlu2 %v1745_v26  ;;  %1743 = vadd.xlane.f32.xlu0 %v1742_v52 }
 0x6e7   :  { %2400 = vpow2.f32 %v1732_v42 }
 0x6e9   :  { %v2399_v5 = vpop.eup %2398 }
 0x6ea   :  { %v1757_v11 = vsel %vm25_vm0, %v2399_v5, 0.0 }
 0x6eb   :  { %1758 = vadd.xlane.f32.xlu1 %v1757_v11 }
 0x6ed   :  { %v3183_v0 = vpop.eup %2400 }
 0x6ee   :  { %v1754_v7 = vsel %vm25_vm0, %v3183_v0, 0.0 }
 0x6ef   :  { %1755 = vadd.xlane.f32.xlu0 %v1754_v7 }
 0x6fa   :  { %v1848_v63 = vpop.permute.xlu1 %1847 }
 0x6fb   :  { %v1853_v51 = vsel %vm324_vm2, %v1848_v63, 0 }
 0x6fc   :  { %1862 = vmatpush.bf16.msra.mxu3 %v1853_v51 }
 0x6fe   :  { %1931 = vrot.lane.b32.xlu2 %v3034_v19, %s2429_s0 }
 0x703   :  { %1868 = vrot.lane.b32.xlu0 %v3045_v34, %s2429_s0 }
 0x704   :  { %1910 = vrot.lane.b32.xlu1 %v3028_v10, %s2429_s0 }
 0x706   :  { %2236 = vrot.lane.b32.xlu2 %v2235_v53, %s2430_s17 }
 0x70b   :  { %1889 = vrot.lane.b32.xlu0 %v3063_v43, %s2429_s0 }
 0x70c   :  { %2231 = vrot.lane.b32.xlu1 %v2230_v50, %s2430_s17 }
 0x70e   :  { %2251 = vrot.lane.b32.xlu2 %v2250_v1, %s2431_s18 }
 0x713   :  { %2241 = vrot.lane.b32.xlu0 %v2240_v29, %s2430_s17 }
 0x714   :  { %2246 = vrot.lane.b32.xlu1 %v2245_v58, %s2430_s17 }
 0x716   :  { %2266 = vrot.lane.b32.xlu2 %v2265_v12, %s2431_s18 }
 0x71b   :  { %2256 = vrot.lane.b32.xlu0 %v2255_v55, %s2431_s18 }
 0x71c   :  { %2261 = vrot.lane.b32.xlu1 %v2260_v15, %s2431_s18 }
 0x725   :  { %v1738_v41 = vpop.xlane.xlu1 %1737 }
 0x726   :  { %2402 = vrcp.f32 %v1738_v41 }
 0x72c   :  { %v2403_v30 = vpop.eup %2402 }
 0x72d   :  { %v1768_v3 = vmul.f32 %v2403_v30, %v3164_v44 }
 0x72f   :  { %v1776_v50 = vpack.c.bf16 %v1768_v3, %v1768_v3 }
 0x731   :  { %2151 = vmatmul.msk.bf16.vlgmr.msra.gmra.mxu0 %vm25_vm0, %v1776_v50 }
 0x740   :  { %v1741_v47 = vpop.xlane.xlu0 %1740 }
 0x741   :  { %2404 = vrcp.f32 %v1741_v47 }
 0x747   :  { %v2405_v53 = vpop.eup %2404 }
 0x748   :  { %v1769_v54 = vmul.f32 %v2405_v53, %v3168_v14 }
 0x74a   :  { %v1777_v56 = vpack.c.bf16 %v1769_v54, %v1769_v54 }
 0x74c   :  { %2152 = vmatmul.msk.bf16.vlgmr.msra.gmra.mxu1 %vm25_vm0, %v1777_v56 }
 0x750   :  { %v1753_v29 = vpop.xlane.xlu0 %1752 }
 0x751   :  { %v1750_v60 = vpop.xlane.xlu2 %1749 }
 0x759   :  { %v1744_v61 = vpop.xlane.xlu0 %1743  ;;  %v1747_v58 = vpop.xlane.xlu2 %1746 }
 0x75a   :  { %2406 = vrcp.f32 %v1744_v61 }
 0x75b   :  { %2408 = vrcp.f32 %v1747_v58 }
 0x75e   :  { %v1759_v59 = vpop.xlane.xlu1 %1758 }
 0x75f   :  { %2410 = vrcp.f32 %v1759_v59 }
 0x760   :  { %v2407_v10 = vpop.eup %2406  ;;  %2412 = vrcp.f32 %v1750_v60 }
 0x761   :  { %v2409_v19 = vpop.eup %2408  ;;  %v1770_v34 = vmul.f32 %v2407_v10, %v2397_v13  ;;  %v1932_v43 = vpop.permute.xlu2 %1931 }
 0x762   :  { %v1771_v32 = vmul.f32 %v2409_v19, %v2395_v2  ;;  %v1937_v36 = vsel %vm324_vm2, %v1932_v43, 0  ;;  %v1756_v15 = vpop.xlane.xlu0 %1755 }
 0x763   :  { %v1778_v1 = vpack.c.bf16 %v1770_v34, %v1770_v34  ;;  %1946 = vmatpush.bf16.msrb.mxu3 %v1937_v36  ;;  %2414 = vrcp.f32 %v1756_v15 }
 0x764   :  { %v1779_v6 = vpack.c.bf16 %v1771_v32, %v1771_v32  ;;  %2416 = vrcp.f32 %v1753_v29 }
 0x765   :  { %2153 = vmatmul.msk.bf16.vlgmr.msra.gmra.mxu2 %vm25_vm0, %v1778_v1  ;;  %v2411_v18 = vpop.eup %2410 }
 0x766   :  { %2154 = vmatmul.msk.bf16.vlgmr.msra.gmra.mxu3 %vm25_vm0, %v1779_v6  ;;  %v1775_v57 = vmul.f32 %v2411_v18, %v2399_v5  ;;  %v2413_v55 = vpop.eup %2412 }
 0x767   :  { %v1772_v62 = vmul.f32 %v2413_v55, %v3174_v17 }
 0x768   :  { %v1783_v12 = vpack.c.bf16 %v1775_v57, %v1775_v57 }
 0x769   :  { %v2415_v23 = vpop.eup %2414  ;;  %v1780_v21 = vpack.c.bf16 %v1772_v62, %v1772_v62  ;;  %v2237_v53 = vpop.permute.xlu2 %2236 }
 0x76a   :  { %v1774_v44 = vmul.f32 %v2415_v23, %v3183_v0  ;;  %v2417_v48 = vpop.eup %2416 }
 0x76b   :  { %v1773_v17 = vmul.f32 %v2417_v48, %v3172_v25 }
 0x76c   :  { %v1782_v24 = vpack.c.bf16 %v1774_v44, %v1774_v44  ;;  %v2238_v44 = vunpack.i.l.bf16 %v2237_v53 }
 0x76d   :  { %v1781_v40 = vpack.c.bf16 %v1773_v17, %v1773_v17 }
 0x771   :  { %v2252_v61 = vpop.permute.xlu2 %2251 }
 0x772   :  { %v2254_v19 = vunpack.i.h.bf16 %v2252_v61  ;;  %v2253_v34 = vunpack.i.l.bf16 %v2252_v61 }
 0x775   :  { %v1869_v14 = vpop.permute.xlu0 %1868 }
 0x776   :  { %v1874_v9 = vsel %vm324_vm2, %v1869_v14, 0  ;;  %2158 = vmatmul.msk.bf16.vlgmr.msrb.gmra.mxu3 %vm25_vm0, %v1783_v12  ;;  %v1911_v39 = vpop.permute.xlu1 %1910  ;;  %v2239_v12 = vunpack.i.h.bf16 %v2237_v53 }
 0x777   :  { %v1916_v4 = vsel %vm324_vm2, %v1911_v39, 0  ;;  %1883 = vmatpush.bf16.msrb.mxu0 %v1874_v9 }
 0x778   :  { %1925 = vmatpush.bf16.msrb.mxu2 %v1916_v4 }
 0x779   :  { %v2267_v57 = vpop.permute.xlu2 %2266 }
 0x77a   :  { %2155 = vmatmul.msk.bf16.vlgmr.msrb.gmra.mxu0 %vm25_vm0, %v1780_v21 }
 0x77b   :  { %2157 = vmatmul.msk.bf16.vlgmr.msrb.gmra.mxu2 %vm25_vm0, %v1782_v24 }
 0x77d   :  { %v1890_v27 = vpop.permute.xlu0 %1889 }
 0x77e   :  { %v1895_v45 = vsel %vm324_vm2, %v1890_v27, 0  ;;  %v2232_v54 = vpop.permute.xlu1 %2231 }
 0x77f   :  { %1904 = vmatpush.bf16.msrb.mxu1 %v1895_v45  ;;  %v2234_v29 = vunpack.i.h.bf16 %v2232_v54  ;;  %v2233_v60 = vunpack.i.l.bf16 %v2232_v54  ;;  %v2051_v45 = vsel %vm25_vm0, %v2737_v22, %v2239_v12 }
 0x781   :  { %v2049_v58 = vsel %vm25_vm0, %v2731_v31, %v2234_v29  ;;  %v2048_v10 = vsel %vm25_vm0, %v2729_v28, %v2233_v60 }
 0x782   :  { %2156 = vmatmul.msk.bf16.vlgmr.msrb.gmra.mxu1 %vm25_vm0, %v1781_v40  ;;  %v2057_v1 = vsel %vm2056_vm3, %v2048_v10, %v2253_v34  ;;  %v2058_v6 = vsel %vm2056_vm3, %v2049_v58, %v2254_v19  ;;  %v2050_v40 = vsel %vm25_vm0, %v2733_v33, %v2238_v44 }
 0x785   :  { %v2242_v47 = vpop.permute.xlu0 %2241 }
 0x786   :  { %v2247_v28 = vpop.permute.xlu1 %2246  ;;  %v2244_v23 = vunpack.i.h.bf16 %v2242_v47  ;;  %v2243_v62 = vunpack.i.l.bf16 %v2242_v47 }
 0x788   :  { %v2053_v48 = vsel %vm25_vm0, %v2739_v38, %v2244_v23  ;;  %v2052_v24 = vsel %vm25_vm0, %v2735_v35, %v2243_v62 }
 0x78d   :  { %v2257_v56 = vpop.permute.xlu0 %2256 }
 0x78e   :  { %v2262_v55 = vpop.permute.xlu1 %2261  ;;  %v2259_v39 = vunpack.i.h.bf16 %v2257_v56  ;;  %v2258_v4 = vunpack.i.l.bf16 %v2257_v56 }
 0x78f   :  { %v2264_v14 = vunpack.i.h.bf16 %v2262_v55  ;;  %v2263_v9 = vunpack.i.l.bf16 %v2262_v55 }
 0x790   :  { %v2059_v35 = vsel %vm2056_vm3, %v2050_v40, %v2258_v4 }
 0x7ae   :  { %v1801_v49 = vpop.f32.mrf.mxu0 }
 0x7b6   :  { %v1803_v2 = vpop.f32.mrf.mxu0 }
 0x7b7   :  { %v2062_v2 = vsel %vm2056_vm3, %v2053_v48, %v2264_v14 }
 0x7c9   :  { %v1822_v8 = vpop.f32.mrf.mxu1 }
 0x7ca   :  { %v2270_v13 = vpack.i.bf16 %v1822_v8, %v1801_v49  ;;  %v2061_v49 = vsel %vm2056_vm3, %v2052_v24, %v2263_v9 }
 0x7cc   :  { %2271 = vrot.lane.b32.xlu0 %v2270_v13, %s2432_s19 }
 0x7d1   :  { %v1824_v26 = vpop.f32.mrf.mxu1 }
 0x7e8   :  { %v1843_v42 = vpop.f32.mrf.mxu2 }
 0x7e9   :  { %v1864_v52 = vpop.f32.mrf.mxu3 }
 0x7ea   :  { %v2275_v5 = vpack.i.bf16 %v1864_v52, %v1843_v42  ;;  %v2060_v52 = vsel %vm2056_vm3, %v2051_v45, %v2259_v39 }
 0x7ec   :  { %2276 = vrot.lane.b32.xlu1 %v2275_v5, %s2432_s19 }
 0x7f0   :  { %v1845_v11 = vpop.f32.mrf.mxu2 }
 0x7f1   :  { %v1866_v25 = vpop.f32.mrf.mxu3 }
 0x7f7   :  { %v1885_v0 = vpop.f32.mrf.mxu0 }
 0x7f9   :  { %v1948_v7 = vpop.f32.mrf.mxu3 }
 0x7fe   :  { %v1927_v16 = vpop.f32.mrf.mxu2 }
 0x7ff   :  { %v1887_v20 = vpop.f32.mrf.mxu0  ;;  %v1906_v63 = vpop.f32.mrf.mxu1  ;;  %v2285_v51 = vpack.i.bf16 %v1948_v7, %v1927_v16  ;;  %v2249_v7 = vunpack.i.h.bf16 %v2247_v28  ;;  %v2248_v16 = vunpack.i.l.bf16 %v2247_v28 }
 0x800   :  { %v2280_v41 = vpack.i.bf16 %v1906_v63, %v1885_v0 }
 0x801   :  { %v1950_v30 = vpop.f32.mrf.mxu3  ;;  %2286 = vrot.lane.b32.xlu0 %v2285_v51, %s2432_s19  ;;  %v2055_v20 = vsel %vm25_vm0, %v2749_v46, %v2249_v7  ;;  %v2054_v63 = vsel %vm25_vm0, %v2741_v37, %v2248_v16  ;;  %v2269_v51 = vunpack.i.h.bf16 %v2267_v57 }
 0x802   :  { %2281 = vrot.lane.b32.xlu2 %v2280_v41, %s2432_s19  ;;  %v2268_v41 = vunpack.i.l.bf16 %v2267_v57 }
 0x803   :  { %v2064_v53 = vsel %vm2056_vm3, %v2055_v20, %v2269_v51 }
 0x804   :  { %v2063_v47 = vsel %vm2056_vm3, %v2054_v63, %v2268_v41 }
 0x806   :  { %v1929_v3 = vpop.f32.mrf.mxu2 }
 0x807   :  { %v1908_v50 = vpop.f32.mrf.mxu1 }
 0x83e   :  { %v2272_v43 = vpop.permute.xlu0 %2271 }
 0x83f   :  { %v2274_v32 = vunpack.i.h.bf16 %v2272_v43  ;;  %v2273_v36 = vunpack.i.l.bf16 %v2272_v43 }
 0x841   :  { %v2066_v59 = vsel %vm2065_vm4, %v2057_v1, %v2273_v36  ;;  %v2067_v15 = vsel %vm2065_vm4, %v2058_v6, %v2274_v32 }
 0x842   :  { %v2074_v31 = vpack.c.bf16 %v2066_v59, %v2066_v59  ;;  %v2075_v18 = vpack.c.bf16 %v2067_v15, %v2067_v15 }
 0x844   :  { %2083 = vst.msk [vmem:[%s3303_s1] sm:$0xf] %vm2082_vm5, %v2074_v31 }
 0x845   :  { %2084 = vst.msk [vmem:[%s3303_s1 + $0x4] sm:$0xf] %vm2082_vm5, %v2075_v18 }
 0x85c   :  { %v2282_v21 = vpop.permute.xlu2 %2281 }
 0x85d   :  { %v2284_v17 = vunpack.i.h.bf16 %v2282_v21  ;;  %v2283_v27 = vunpack.i.l.bf16 %v2282_v21 }
 0x85e   :  { %v2277_v8 = vpop.permute.xlu1 %2276 }
 0x85f   :  { %v2071_v13 = vsel %vm2065_vm4, %v2062_v2, %v2284_v17  ;;  %v2070_v38 = vsel %vm2065_vm4, %v2061_v49, %v2283_v27  ;;  %v2279_v26 = vunpack.i.h.bf16 %v2277_v8  ;;  %v2278_v42 = vunpack.i.l.bf16 %v2277_v8 }
 0x860   :  { %v2079_v5 = vpack.c.bf16 %v2071_v13, %v2071_v13  ;;  %v2078_v22 = vpack.c.bf16 %v2070_v38, %v2070_v38 }
 0x861   :  { %v2068_v11 = vsel %vm2065_vm4, %v2059_v35, %v2278_v42  ;;  %v2069_v33 = vsel %vm2065_vm4, %v2060_v52, %v2279_v26 }
 0x862   :  { %2088 = vst.msk [vmem:[%s3303_s1 + $0x14] sm:$0xf] %vm2082_vm5, %v2079_v5  ;;  %v2076_v25 = vpack.c.bf16 %v2068_v11, %v2068_v11  ;;  %v2077_v0 = vpack.c.bf16 %v2069_v33, %v2069_v33 }
 0x863   :  { %2087 = vst.msk [vmem:[%s3303_s1 + $0x10] sm:$0xf] %vm2082_vm5, %v2078_v22 }
 0x864   :  { %2085 = vst.msk [vmem:[%s3303_s1 + $0x8] sm:$0xf] %vm2082_vm5, %v2076_v25 }
 0x865   :  { %2086 = vst.msk [vmem:[%s3303_s1 + $0xc] sm:$0xf] %vm2082_vm5, %v2077_v0 }
 0x873   :  { %v2287_v30 = vpop.permute.xlu0 %2286 }
 0x874   :  { %v2289_v3 = vunpack.i.h.bf16 %v2287_v30  ;;  %v2288_v50 = vunpack.i.l.bf16 %v2287_v30 }
 0x876   :  { %v2072_v54 = vsel %vm2065_vm4, %v2063_v47, %v2288_v50  ;;  %v2073_v56 = vsel %vm2065_vm4, %v2064_v53, %v2289_v3 }
 0x877   :  { %v2080_v29 = vpack.c.bf16 %v2072_v54, %v2072_v54  ;;  %v2081_v60 = vpack.c.bf16 %v2073_v56, %v2073_v56 }
 0x879   :  { %2089 = vst.msk [vmem:[%s3303_s1 + $0x18] sm:$0xf] %vm2082_vm5, %v2080_v29 }
 0x87a   :  { %2090 = vst.msk [vmem:[%s3303_s1 + $0x1c] sm:$0xf] %vm2082_vm5, %v2081_v60 }

// kernel: timesformer_forward.26
= control target key start
LH: loop header
LB: loop body
LE: loop exit
PB: predicated region body
PF: predicated region fallthrough
CT: control target
= control target key end

     0   :  { %vm46_vm0 = vcmask 261120   ;;  %vm74_vm1 = vcmask 257024   ;;  %vm77_vm2 = vcmask 254976   ;;  %s147_s1 = inlined_call_operand.vmem [shape: bf16[32,32], index: 1, kind: input, shape index: {}]   ;;  %s148_s0 = inlined_call_operand.vmem [shape: bf16[20,32], index: 0, kind: input, shape index: {}]   ;;  %s149_s2 = inlined_call_operand.vmem [shape: f32[1,32], index: 2, kind: input, shape index: {}]   ;;  %s150_s3 = inlined_call_operand.vmem [shape: bf16[20,32], index: 3, kind: output, shape index: {}]  }
   0x1   :  { %v99_v0 = vld [vmem:[%s147_s1 + $0x8] sm:$0xff]  ;;  %v98_v2 = vld [vmem:[%s147_s1] sm:$0xff] }
   0x2   :  { %v17_v1 = vld [vmem:[%s148_s0 + $0x8] sm:$0x3]  ;;  %59 = vmatpush.bf16.msra.mxu0 %v99_v0  ;;  %100 = vmatpush.bf16.msra.mxu1 %v99_v0  ;;  %v97_v4 = vld [vmem:[%s148_s0] sm:$0xff] }
   0x3   :  { %v31_v3 = vunpack.c.l.b16 %v17_v1  ;;  %v102_v6 = vld [vmem:[%s149_s2] ss:$0 sm:$0xff] }
   0x5   :  { %v33_v5 = vpack.c.b16 %v31_v3, %v31_v3 }
   0x6   :  { %60 = vmatpush.bf16.msra.mxu0 %v98_v2  ;;  %101 = vmatpush.bf16.msra.mxu1 %v98_v2 }
   0x9   :  { %95 = vmatmul.msk.bf16.vlgmr.msra.gmra.mxu0 %vm46_vm0, %v97_v4  ;;  %96 = vmatmul.msk.bf16.vlgmr.msra.gmra.mxu1 %vm46_vm0, %v33_v5 }
  0x86   :  { %v62_v7 = vpop.f32.mrf.mxu0  ;;  %v67_v8 = vpop.f32.mrf.mxu1 }
  0x87   :  { %v63_v9 = vadd.f32 %v102_v6, %v62_v7  ;;  %v68_v10 = vadd.f32 %v102_v6, %v67_v8 }
  0x89   :  { %v71_v11 = vpack.c.bf16 %v63_v9, %v63_v9  ;;  %v73_v12 = vpack.c.bf16 %v68_v10, %v68_v10 }
  0x8b   :  { %75 = vst.msk [vmem:[%s150_s3] sm:$0xf] %vm74_vm1, %v71_v11 }
  0x8c   :  { %78 = vst.msk [vmem:[%s150_s3 + $0x8] sm:$0x3] %vm77_vm2, %v73_v12 }
  0x8e   :  { %v64_v13 = vpop.f32.mrf.mxu0  ;;  %v69_v14 = vpop.f32.mrf.mxu1 }
  0x8f   :  { %v65_v15 = vadd.f32 %v102_v6, %v64_v13 }
  0x91   :  { %v72_v16 = vpack.c.bf16 %v65_v15, %v65_v15 }
  0x93   :  { %76 = vst.msk [vmem:[%s150_s3 + $0x4] sm:$0xf] %vm74_vm1, %v72_v16 }

// kernel: timesformer_forward.24
= control target key start
LH: loop header
LB: loop body
LE: loop exit
PB: predicated region body
PF: predicated region fallthrough
CT: control target
= control target key end

     0   :  { %vm27_vm0 = vcmask 261120   ;;  %vm34_vm1 = vcmask 257024   ;;  %v204_v8 = vmov 32.0   ;;  %vm165_vm12 = vcmask 781312   ;;  %s278_s0 = inlined_call_operand.vmem [shape: bf16[20,32], index: 0, kind: input, shape index: {}]   ;;  %s279_s3 = inlined_call_operand.vmem [shape: f32[1,32], index: 3, kind: input, shape index: {}]   ;;  %s280_s4 = inlined_call_operand.vmem [shape: f32[1,32], index: 4, kind: input, shape index: {}]   ;;  %s281_s2 = inlined_call_operand.vmem [shape: f32[1,96], index: 2, kind: input, shape index: {}]   ;;  %s282_s1 = inlined_call_operand.vmem [shape: bf16[32,96], index: 1, kind: input, shape index: {}]   ;;  %s283_s5 = inlined_call_operand.vmem [shape: bf16[20,96], index: 5, kind: output, shape index: {}]  }
   0x1   :  { %v187_v0 = vld [vmem:[%s278_s0] sm:$0xff]   ;;  %v23_v1 = vld [vmem:[%s278_s0 + $0x8] sm:$0x3]  ;;  %196 = vrcp.f32 %v204_v8  ;;  %vm168_vm13 = vcmask 779264  }
   0x2   :  { %v188_v2 = vunpack.c.l.bf16 %v187_v0  ;;  %v26_v3 = vunpack.c.l.bf16 %v23_v1  ;;  %v189_v6 = vunpack.c.h.bf16 %v187_v0  ;;  %v185_v30 = vld [vmem:[%s282_s1 + $0x8] sm:$0xff]  ;;  %v184_v33 = vld [vmem:[%s282_s1] sm:$0xff] }
   0x3   :  { %150 = vmatpush.bf16.msra.mxu0 %v185_v30  ;;  %190 = vmatpush.bf16.msra.mxu1 %v185_v30  ;;  %v193_v55 = vld [vmem:[%s279_s3] ss:$0 sm:$0xff] }
   0x4   :  { %v28_v4 = vsel %vm27_vm0, %v188_v2, 0.0  ;;  %v35_v5 = vsel %vm34_vm1, %v26_v3, 0.0  ;;  %v31_v7 = vsel %vm27_vm0, %v189_v6, 0.0  ;;  %v194_v62 = vld [vmem:[%s280_s4] ss:$0 sm:$0xff] }
   0x5   :  { %29 = vadd.xlane.f32.xlu0 %v28_v4  ;;  %36 = vadd.xlane.f32.xlu1 %v35_v5 }
   0x7   :  { %v197_v9 = vpop.eup %196  ;;  %151 = vmatpush.bf16.msra.mxu0 %v184_v33  ;;  %191 = vmatpush.bf16.msra.mxu1 %v184_v33 }
   0x8   :  { %v39_v10 = vmul.f32 32.0, %v197_v9  ;;  %vm43_vm2 = vweird.f32 %v197_v9 }
   0xa   :  { %v40_v11 = vsub.f32 1.0, %v39_v10 }
   0xc   :  { %v41_v12 = vmul.f32 %v197_v9, %v40_v11  ;;  %v195_v11 = vld [vmem:[%s281_s2] ss:$0 sm:$0xff] }
   0xd   :  { %32 = vadd.xlane.f32.xlu0 %v31_v7 }
   0xe   :  { %v42_v13 = vadd.f32 %v197_v9, %v41_v12 }
  0x10   :  { %v44_v14 = vsel %vm43_vm2, %v197_v9, %v42_v13 }
  0x78   :  { %v30_v15 = vpop.xlane.xlu0 %29  ;;  %v37_v19 = vpop.xlane.xlu1 %36 }
  0x79   :  { %v45_v16 = vmul.f32 %v44_v14, %v30_v15  ;;  %v47_v23 = vmul.f32 %v44_v14, %v37_v19 }
  0x7b   :  { %v48_v17 = vsub.f32 %v188_v2, %v45_v16  ;;  %v245_v25 = vsub.f32 %v26_v3, %v47_v23 }
  0x7d   :  { %v51_v18 = vmul.f32 %v48_v17, %v48_v17  ;;  %v53_v28 = vmul.f32 %v245_v25, %v245_v25 }
  0x7f   :  { %v54_v20 = vsel %vm27_vm0, %v51_v18, 0.0  ;;  %v60_v29 = vsel %vm34_vm1, %v53_v28, 0.0 }
  0x80   :  { %55 = vadd.xlane.f32.xlu1 %v54_v20  ;;  %v33_v21 = vpop.xlane.xlu0 %32 }
  0x81   :  { %v46_v22 = vmul.f32 %v44_v14, %v33_v21 }
  0x83   :  { %v49_v24 = vsub.f32 %v189_v6, %v46_v22 }
  0x85   :  { %v52_v26 = vmul.f32 %v49_v24, %v49_v24 }
  0x87   :  { %v57_v27 = vsel %vm27_vm0, %v52_v26, 0.0 }
  0x88   :  { %58 = vadd.xlane.f32.xlu2 %v57_v27 }
  0x90   :  { %61 = vadd.xlane.f32.xlu2 %v60_v29 }
  0xf3   :  { %v56_v31 = vpop.xlane.xlu1 %55 }
  0xf4   :  { %v63_v32 = vmul.f32 %v56_v31, %v44_v14 }
  0xf6   :  { %v66_v34 = vadd.f32 1e-06, %v63_v32 }
  0xf8   :  { %198 = vrsqrt.f32 %v66_v34  ;;  %vm75_vm4 = vweird.f32 %v66_v34 }
  0xfb   :  { %v59_v35 = vpop.xlane.xlu2 %58 }
  0xfc   :  { %v64_v36 = vmul.f32 %v59_v35, %v44_v14 }
  0xfe   :  { %v199_v37 = vpop.eup %198  ;;  %v67_v38 = vadd.f32 1e-06, %v64_v36 }
  0xff   :  { %v70_v39 = vmul.f32 %v199_v37, %v66_v34  ;;  %vm76_vm3 = vweird.f32 %v199_v37 }
 0x100   :  { %200 = vrsqrt.f32 %v67_v38  ;;  %vm77_vm5 = vmor %vm75_vm4, %vm76_vm3  ;;  %vm85_vm7 = vweird.f32 %v67_v38 }
 0x101   :  { %v71_v40 = vmul.f32 %v199_v37, %v70_v39 }
 0x103   :  { %v72_v41 = vmul.f32 0.5, %v71_v40  ;;  %v62_v42 = vpop.xlane.xlu2 %61 }
 0x104   :  { %v65_v43 = vmul.f32 %v62_v42, %v44_v14 }
 0x105   :  { %v73_v44 = vsub.f32 1.5, %v72_v41 }
 0x106   :  { %v201_v45 = vpop.eup %200  ;;  %v68_v46 = vadd.f32 1e-06, %v65_v43 }
 0x107   :  { %v74_v47 = vmul.f32 %v199_v37, %v73_v44  ;;  %v80_v48 = vmul.f32 %v201_v45, %v67_v38  ;;  %vm86_vm6 = vweird.f32 %v201_v45 }
 0x108   :  { %202 = vrsqrt.f32 %v68_v46  ;;  %vm87_vm8 = vmor %vm85_vm7, %vm86_vm6  ;;  %vm95_vm10 = vweird.f32 %v68_v46 }
 0x109   :  { %v81_v49 = vmul.f32 %v201_v45, %v80_v48  ;;  %v78_v50 = vsel %vm77_vm5, %v199_v37, %v74_v47 }
 0x10a   :  { %v99_v54 = vmul.f32 %v78_v50, %v48_v17 }
 0x10b   :  { %v82_v51 = vmul.f32 0.5, %v81_v49 }
 0x10c   :  { %v106_v61 = vmul.f32 %v193_v55, %v99_v54 }
 0x10d   :  { %v83_v52 = vsub.f32 1.5, %v82_v51 }
 0x10e   :  { %v203_v53 = vpop.eup %202  ;;  %v113_v2 = vadd.f32 %v194_v62, %v106_v61 }
 0x10f   :  { %v84_v56 = vmul.f32 %v201_v45, %v83_v52  ;;  %v90_v57 = vmul.f32 %v203_v53, %v68_v46  ;;  %vm96_vm9 = vweird.f32 %v203_v53 }
 0x110   :  { %vm97_vm11 = vmor %vm95_vm10, %vm96_vm9 }
 0x111   :  { %v88_v58 = vsel %vm87_vm8, %v201_v45, %v84_v56  ;;  %v91_v59 = vmul.f32 %v203_v53, %v90_v57 }
 0x112   :  { %v100_v60 = vmul.f32 %v88_v58, %v49_v24 }
 0x113   :  { %v92_v63 = vmul.f32 0.5, %v91_v59 }
 0x114   :  { %v107_v0 = vmul.f32 %v193_v55, %v100_v60 }
 0x115   :  { %v93_v1 = vsub.f32 1.5, %v92_v63 }
 0x116   :  { %v114_v3 = vadd.f32 %v194_v62, %v107_v0 }
 0x117   :  { %v94_v4 = vmul.f32 %v203_v53, %v93_v1 }
 0x118   :  { %v116_v5 = vpack.c.bf16 %v114_v3, %v113_v2 }
 0x119   :  { %v98_v6 = vsel %vm97_vm11, %v203_v53, %v94_v4 }
 0x11a   :  { %182 = vmatmul.msk.bf16.vlgmr.msra.gmra.mxu0 %vm27_vm0, %v116_v5  ;;  %v101_v7 = vmul.f32 %v98_v6, %v245_v25 }
 0x11c   :  { %v108_v8 = vmul.f32 %v193_v55, %v101_v7 }
 0x11e   :  { %v115_v9 = vadd.f32 %v194_v62, %v108_v8 }
 0x120   :  { %v117_v10 = vpack.c.bf16 %v115_v9, %v115_v9 }
 0x122   :  { %183 = vmatmul.msk.bf16.vlgmr.msra.gmra.mxu1 %vm27_vm0, %v117_v10 }
 0x197   :  { %v153_v12 = vpop.f32.mrf.mxu0 }
 0x198   :  { %v154_v13 = vadd.f32 %v195_v11, %v153_v12 }
 0x19a   :  { %v162_v14 = vpack.c.bf16 %v154_v13, %v154_v13 }
 0x19c   :  { %166 = vst.msk [vmem:[%s283_s5] sm:$0xf] %vm165_vm12, %v162_v14 }
 0x19f   :  { %v155_v15 = vpop.f32.mrf.mxu0  ;;  %v158_v16 = vpop.f32.mrf.mxu1 }
 0x1a0   :  { %v156_v17 = vadd.f32 %v195_v11, %v155_v15  ;;  %v159_v18 = vadd.f32 %v195_v11, %v158_v16 }
 0x1a2   :  { %v163_v19 = vpack.c.bf16 %v156_v17, %v156_v17  ;;  %v164_v20 = vpack.c.bf16 %v159_v18, %v159_v18 }
 0x1a4   :  { %167 = vst.msk [vmem:[%s283_s5 + $0x4] sm:$0xf] %vm165_vm12, %v163_v19 }
 0x1a5   :  { %169 = vst.msk [vmem:[%s283_s5 + $0x8] sm:$0x3] %vm168_vm13, %v164_v20 }
 0x1a7   :  { %v160_v21 = vpop.f32.mrf.mxu1 }

// kernel: timesformer_forward.25
= control target key start
LH: loop header
LB: loop body
LE: loop exit
PB: predicated region body
PF: predicated region fallthrough
CT: control target
= control target key end

     0   :  { %s1226_s14 = smov 96   ;;  %s1227_s15 = smov 64   ;;  %vm21_vm0 = vcmask 64512   ;;  %v9_v20 = vlaneseq  ;;  %vm172_vm1 = vcmask 1043456   ;;  %vm1041_vm3 = vcmask 195584   ;;  %s1561_s0 = inlined_call_operand.vmem [shape: bf16[4,8,96], index: 0, kind: input, shape index: {}]   ;;  %s1562_s1 = inlined_call_operand.vmem [shape: bf16[4,8,32], index: 1, kind: output, shape index: {}]  }
   0x1   :  { %v14_v0 = vld [vmem:[%s1561_s0 + $0x8] sm:$0xf]  ;;  %v12_v1 = vld [vmem:[%s1561_s0] sm:$0xf]  ;;  %v15_v4 = vld [vmem:[%s1561_s0 + $0xc] sm:$0xf] }
   0x2   :  { %v66_v2 = vunpack.c.l.b16 %v14_v0  ;;  %v17_v3 = vunpack.c.l.b16 %v12_v1  ;;  %v13_v5 = vld [vmem:[%s1561_s0 + $0x4] sm:$0xf]  ;;  %v90_v8 = vunpack.c.l.b16 %v15_v4  ;;  %v1278_v23 = vand.u32 127, %v9_v20  ;;  %v1115_v34 = vld [vmem:[%s1561_s0 + $0x8] sm:$0xff]   ;;  %s1228_s18 = smov 88   ;;  %s1229_s19 = smov 120  }
   0x3   :  { %v42_v9 = vunpack.c.l.b16 %v13_v5  ;;  %v1097_v38 = vunpack.c.l.b16 %v1115_v34  ;;  %v1098_v43 = vunpack.c.h.b16 %v1115_v34  ;;  %v1092_v45 = vld [vmem:[%s1561_s0] sm:$0xff]   ;;  %s1230_s0 = smov 56   ;;  %s1231_s22 = smov 80   ;;  %vm1036_vm4 = vcmask 130048  }
   0x4   :  { %v67_v6 = vpack.c.b16 %v66_v2, %v66_v2  ;;  %v1262_v7 = vpack.c.b16 %v17_v3, %v17_v3  ;;  %v91_v10 = vpack.c.b16 %v90_v8, %v90_v8  ;;  %vm11_vm2 = vcmp.ge.s32.totalorder %v1278_v23, 5  ;;  %s1232_s23 = smov 112   ;;  %s1233_s24 = smov 48  }
   0x5   :  { %v1265_v11 = vpack.c.b16 %v42_v9, %v42_v9  ;;  %v1296_v41 = vpack.c.b16 %v1097_v38, %v1097_v38  ;;  %v1300_v44 = vpack.c.b16 %v1098_v43, %v1098_v43  ;;  %v1093_v46 = vunpack.c.l.b16 %v1092_v45  ;;  %s1234_s25 = smov 72   ;;  %s1235_s26 = smov 104  }
   0x6   :  { %68 = vrot.lane.b32.xlu0 %v67_v6, %s1226_s14  ;;  %19 = vrot.lane.b32.xlu1 %v1262_v7, %s1226_s14  ;;  %v1094_v56 = vunpack.c.h.b16 %v1092_v45  ;;  %s1236_s27 = smov 40   ;;  %s1237_s28 = smov 8   ;;  %vm1050_vm5 = vcmask 257024  }
   0x7   :  { %210 = vrot.lane.b32.xlu2 %v67_v6, %s1227_s15  ;;  %v1314_v47 = vpack.c.b16 %v1093_v46, %v1093_v46  ;;  %s1238_s29 = smov 16   ;;  %s1239_s30 = smov 24  }
   0x8   :  { %v1318_v59 = vpack.c.b16 %v1094_v56, %v1094_v56 }
   0xe   :  { %92 = vrot.lane.b32.xlu0 %v91_v10, %s1226_s14  ;;  %44 = vrot.lane.b32.xlu1 %v1265_v11, %s1226_s14 }
  0x61   :  { %v211_v21 = vpop.permute.xlu2 %210 }
  0x62   :  { %v216_v22 = vsel %vm172_vm1, %v211_v21, 0 }
  0x78   :  { %v69_v12 = vpop.permute.xlu0 %68  ;;  %v20_v13 = vpop.permute.xlu1 %19 }
  0x79   :  { %v26_v14 = vsel %vm21_vm0, %v20_v13, 0  ;;  %v74_v15 = vsel %vm21_vm0, %v69_v12, 0 }
  0x7a   :  { %35 = vmatpush.bf16.xpose.msra.mxu0 %v26_v14  ;;  %83 = vmatpush.bf16.xpose.msra.mxu2 %v74_v15 }
  0x80   :  { %v93_v16 = vpop.permute.xlu0 %92  ;;  %v45_v17 = vpop.permute.xlu1 %44 }
  0x81   :  { %1059 = vmatmul.msk.bf16.vlgmr.msra.gmra.mxu0 %vm21_vm0, %v12_v1  ;;  %1061 = vmatmul.msk.bf16.vlgmr.msra.gmra.mxu2 %vm21_vm0, %v14_v0  ;;  %v50_v18 = vsel %vm21_vm0, %v45_v17, 0  ;;  %v98_v19 = vsel %vm21_vm0, %v93_v16, 0 }
  0x82   :  { %59 = vmatpush.bf16.xpose.msra.mxu1 %v50_v18  ;;  %107 = vmatpush.bf16.xpose.msra.mxu3 %v98_v19 }
  0x83   :  { %225 = vmatpush.bf16.msrb.mxu2 %v216_v22 }
  0x89   :  { %1060 = vmatmul.msk.bf16.vlgmr.msra.gmra.mxu1 %vm21_vm0, %v13_v5  ;;  %1062 = vmatmul.msk.bf16.vlgmr.msra.gmra.mxu3 %vm21_vm0, %v15_v4 }
  0xfe   :  { %v37_v24 = vpop.f32.mrf.mxu0 }
  0xff   :  { %v115_v25 = vsel %vm11_vm2, -1e+30, %v37_v24 }
 0x100   :  { %v119_v26 = vsel %vm21_vm0, %v115_v25, -inf }
 0x101   :  { %120 = vmax.xlane.f32.xlu0 %v119_v26 }
 0x104   :  { %v85_v27 = vpop.f32.mrf.mxu2 }
 0x105   :  { %v117_v28 = vsel %vm11_vm2, -1e+30, %v85_v27 }
 0x106   :  { %v39_v29 = vpop.f32.mrf.mxu0  ;;  %v61_v30 = vpop.f32.mrf.mxu1  ;;  %v125_v31 = vsel %vm21_vm0, %v117_v28, -inf }
 0x107   :  { %v116_v32 = vsel %vm11_vm2, -1e+30, %v61_v30  ;;  %126 = vmax.xlane.f32.xlu2 %v125_v31 }
 0x108   :  { %v122_v33 = vsel %vm21_vm0, %v116_v32, -inf }
 0x109   :  { %123 = vmax.xlane.f32.xlu1 %v122_v33 }
 0x10c   :  { %v87_v35 = vpop.f32.mrf.mxu2  ;;  %v109_v36 = vpop.f32.mrf.mxu3 }
 0x10d   :  { %v118_v37 = vsel %vm11_vm2, -1e+30, %v109_v36 }
 0x10e   :  { %v128_v39 = vsel %vm21_vm0, %v118_v37, -inf  ;;  %v63_v40 = vpop.f32.mrf.mxu1 }
 0x10f   :  { %129 = vmax.xlane.f32.xlu2 %v128_v39 }
 0x114   :  { %v111_v42 = vpop.f32.mrf.mxu3 }
 0x115   :  { %313 = vrot.lane.b32.xlu0 %v1296_v41, %s1228_s18 }
 0x122   :  { %339 = vrot.lane.b32.xlu1 %v1300_v44, %s1228_s18 }
 0x127   :  { %231 = vrot.lane.b32.xlu2 %v91_v10, %s1227_s15 }
 0x12a   :  { %311 = vrot.lane.b32.xlu1 %v1296_v41, %s1229_s19 }
 0x132   :  { %337 = vrot.lane.b32.xlu1 %v1300_v44, %s1229_s19 }
 0x13a   :  { %167 = vrot.lane.b32.xlu1 %v1262_v7, %s1227_s15 }
 0x142   :  { %261 = vrot.lane.b32.xlu1 %v1314_v47, %s1228_s18 }
 0x14a   :  { %287 = vrot.lane.b32.xlu1 %v1318_v59, %s1228_s18 }
 0x152   :  { %285 = vrot.lane.b32.xlu1 %v1318_v59, %s1229_s19 }
 0x174   :  { %v121_v48 = vpop.xlane.xlu0 %120 }
 0x175   :  { %v131_v49 = vsub.f32 %v115_v25, %v121_v48 }
 0x177   :  { %v135_v50 = vmul.f32 1.442695, %v131_v49 }
 0x179   :  { %1162 = vpow2.f32 %v135_v50 }
 0x17a   :  { %v127_v51 = vpop.xlane.xlu2 %126 }
 0x17b   :  { %v133_v52 = vsub.f32 %v117_v28, %v127_v51 }
 0x17c   :  { %v124_v53 = vpop.xlane.xlu1 %123 }
 0x17d   :  { %v139_v54 = vmul.f32 1.442695, %v133_v52  ;;  %v132_v55 = vsub.f32 %v116_v32, %v124_v53 }
 0x17f   :  { %v1163_v57 = vpop.eup %1162  ;;  %1164 = vpow2.f32 %v139_v54  ;;  %v137_v58 = vmul.f32 1.442695, %v132_v55 }
 0x180   :  { %v143_v60 = vsel %vm21_vm0, %v1163_v57, 0.0 }
 0x181   :  { %1166 = vpow2.f32 %v137_v58  ;;  %144 = vadd.xlane.f32.xlu2 %v143_v60 }
 0x182   :  { %v130_v61 = vpop.xlane.xlu2 %129 }
 0x183   :  { %v134_v62 = vsub.f32 %v118_v37, %v130_v61 }
 0x185   :  { %v1165_v63 = vpop.eup %1164  ;;  %v141_v0 = vmul.f32 1.442695, %v134_v62 }
 0x186   :  { %v149_v2 = vsel %vm21_vm0, %v1165_v63, 0.0 }
 0x187   :  { %v1167_v1 = vpop.eup %1166  ;;  %1168 = vpow2.f32 %v141_v0  ;;  %v314_v4 = vpop.permute.xlu0 %313 }
 0x188   :  { %v146_v3 = vsel %vm21_vm0, %v1167_v1, 0.0  ;;  %v319_v6 = vsel %vm21_vm0, %v314_v4, 0 }
 0x189   :  { %150 = vadd.xlane.f32.xlu2 %v149_v2  ;;  %147 = vadd.xlane.f32.xlu0 %v146_v3 }
 0x18a   :  { %v232_v5 = vpop.permute.xlu2 %231  ;;  %328 = vmatpush.bf16.xpose.msra.mxu2 %v319_v6 }
 0x18b   :  { %v237_v7 = vsel %vm172_vm1, %v232_v5, 0 }
 0x18c   :  { %246 = vmatpush.bf16.msrb.mxu3 %v237_v7 }
 0x18d   :  { %v1169_v8 = vpop.eup %1168 }
 0x18e   :  { %v152_v9 = vsel %vm21_vm0, %v1169_v8, 0.0 }
 0x191   :  { %153 = vadd.xlane.f32.xlu2 %v152_v9 }
 0x194   :  { %v340_v10 = vpop.permute.xlu1 %339 }
 0x195   :  { %v345_v12 = vsel %vm21_vm0, %v340_v10, 0 }
 0x196   :  { %354 = vmatpush.bf16.xpose.msra.mxu3 %v345_v12 }
 0x19c   :  { %v312_v13 = vpop.permute.xlu1 %311 }
 0x19d   :  { %259 = vrot.lane.b32.xlu0 %v1314_v47, %s1229_s19 }
 0x1a4   :  { %v338_v14 = vpop.permute.xlu1 %337 }
 0x1a9   :  { %189 = vrot.lane.b32.xlu2 %v1265_v11, %s1227_s15 }
 0x1ac   :  { %v168_v15 = vpop.permute.xlu1 %167 }
 0x1ad   :  { %v174_v16 = vsel %vm172_vm1, %v168_v15, 0 }
 0x1ae   :  { %183 = vmatpush.bf16.msrb.mxu0 %v174_v16 }
 0x1b4   :  { %v262_v17 = vpop.permute.xlu1 %261 }
 0x1b5   :  { %v267_v18 = vsel %vm21_vm0, %v262_v17, 0 }
 0x1b6   :  { %276 = vmatpush.bf16.xpose.msra.mxu0 %v267_v18 }
 0x1bc   :  { %v288_v30 = vpop.permute.xlu1 %287 }
 0x1bd   :  { %v293_v35 = vsel %vm21_vm0, %v288_v30, 0 }
 0x1c4   :  { %v286_v40 = vpop.permute.xlu1 %285 }
 0x1f4   :  { %v145_v19 = vpop.xlane.xlu2 %144 }
 0x1f5   :  { %1170 = vrcp.f32 %v145_v19 }
 0x1fb   :  { %v1171_v20 = vpop.eup %1170 }
 0x1fc   :  { %v159_v21 = vmul.f32 %v1171_v20, %v1163_v57  ;;  %v151_v22 = vpop.xlane.xlu2 %150  ;;  %v148_v25 = vpop.xlane.xlu0 %147 }
 0x1fd   :  { %1172 = vrcp.f32 %v151_v22 }
 0x1fe   :  { %v163_v24 = vpack.c.bf16 %v159_v21, %v159_v21  ;;  %1174 = vrcp.f32 %v148_v25 }
 0x200   :  { %1063 = vmatmul.msk.bf16.vlgmr.msrb.gmra.mxu0 %vm21_vm0, %v163_v24 }
 0x203   :  { %v1173_v11 = vpop.eup %1172 }
 0x204   :  { %v161_v26 = vmul.f32 %v1173_v11, %v1165_v63  ;;  %v154_v27 = vpop.xlane.xlu2 %153  ;;  %v1175_v29 = vpop.eup %1174 }
 0x205   :  { %1176 = vrcp.f32 %v154_v27  ;;  %v160_v32 = vmul.f32 %v1175_v29, %v1167_v1 }
 0x206   :  { %v165_v28 = vpack.c.bf16 %v161_v26, %v161_v26 }
 0x207   :  { %v164_v39 = vpack.c.bf16 %v160_v32, %v160_v32 }
 0x208   :  { %1065 = vmatmul.msk.bf16.vlgmr.msrb.gmra.mxu2 %vm21_vm0, %v165_v28 }
 0x20b   :  { %v1177_v31 = vpop.eup %1176 }
 0x20c   :  { %v162_v33 = vmul.f32 %v1177_v31, %v1169_v8  ;;  %v190_v34 = vpop.permute.xlu2 %189 }
 0x20d   :  { %v195_v36 = vsel %vm172_vm1, %v190_v34, 0 }
 0x20e   :  { %204 = vmatpush.bf16.msrb.mxu1 %v195_v36  ;;  %v166_v37 = vpack.c.bf16 %v162_v33, %v162_v33 }
 0x20f   :  { %v260_v38 = vpop.permute.xlu0 %259 }
 0x210   :  { %1066 = vmatmul.msk.bf16.vlgmr.msrb.gmra.mxu3 %vm21_vm0, %v166_v37  ;;  %1067 = vmatmul.msk.bf16.vlgmr.msra.gmra.mxu0 %vm21_vm0, %v260_v38 }
 0x211   :  { %1064 = vmatmul.msk.bf16.vlgmr.msrb.gmra.mxu1 %vm21_vm0, %v164_v39 }
 0x212   :  { %302 = vmatpush.bf16.xpose.msra.mxu1 %v293_v35 }
 0x218   :  { %1069 = vmatmul.msk.bf16.vlgmr.msra.gmra.mxu2 %vm21_vm0, %v312_v13 }
 0x220   :  { %1070 = vmatmul.msk.bf16.vlgmr.msra.gmra.mxu3 %vm21_vm0, %v338_v14 }
 0x221   :  { %1068 = vmatmul.msk.bf16.vlgmr.msra.gmra.mxu1 %vm21_vm0, %v286_v40 }
 0x27d   :  { %v1347_v42 = vpop.f32.mrf.mxu0 }
 0x285   :  { %v187_v43 = vpop.f32.mrf.mxu0 }
 0x28b   :  { %v1349_v45 = vpop.f32.mrf.mxu2 }
 0x28d   :  { %v278_v46 = vpop.f32.mrf.mxu0 }
 0x28e   :  { %v360_v48 = vsel %vm11_vm2, -1e+30, %v278_v46  ;;  %v1353_v49 = vpop.f32.mrf.mxu1 }
 0x28f   :  { %v364_v50 = vsel %vm21_vm0, %v360_v48, -inf }
 0x290   :  { %365 = vmax.xlane.f32.xlu0 %v364_v50 }
 0x293   :  { %v229_v51 = vpop.f32.mrf.mxu2  ;;  %v1356_v52 = vpop.f32.mrf.mxu3 }
 0x295   :  { %v280_v53 = vpop.f32.mrf.mxu0 }
 0x296   :  { %v208_v54 = vpop.f32.mrf.mxu1 }
 0x29b   :  { %v250_v55 = vpop.f32.mrf.mxu3  ;;  %v330_v56 = vpop.f32.mrf.mxu2 }
 0x29c   :  { %v362_v57 = vsel %vm11_vm2, -1e+30, %v330_v56 }
 0x29d   :  { %v370_v58 = vsel %vm21_vm0, %v362_v57, -inf }
 0x29e   :  { %371 = vmax.xlane.f32.xlu2 %v370_v58  ;;  %v304_v60 = vpop.f32.mrf.mxu1 }
 0x29f   :  { %v361_v61 = vsel %vm11_vm2, -1e+30, %v304_v60 }
 0x2a0   :  { %v367_v0 = vsel %vm21_vm0, %v361_v61, -inf }
 0x2a3   :  { %v332_v62 = vpop.f32.mrf.mxu2  ;;  %v356_v63 = vpop.f32.mrf.mxu3 }
 0x2a4   :  { %v363_v1 = vsel %vm11_vm2, -1e+30, %v356_v63  ;;  %475 = vrot.lane.b32.xlu0 %v1300_v44, %s1230_s0 }
 0x2a5   :  { %v373_v2 = vsel %vm21_vm0, %v363_v1, -inf }
 0x2a6   :  { %374 = vmax.xlane.f32.xlu1 %v373_v2  ;;  %368 = vmax.xlane.f32.xlu2 %v367_v0  ;;  %v306_v3 = vpop.f32.mrf.mxu1 }
 0x2ab   :  { %v358_v4 = vpop.f32.mrf.mxu3 }
 0x2ac   :  { %557 = vrot.lane.b32.xlu0 %v1296_v41, %s1231_s22 }
 0x2b4   :  { %433 = vrot.lane.b32.xlu0 %v1318_v59, %s1230_s0 }
 0x2bc   :  { %581 = vrot.lane.b32.xlu0 %v1300_v44, %s1232_s23 }
 0x2bf   :  { %454 = vrot.lane.b32.xlu1 %v1296_v41, %s1230_s0 }
 0x2c4   :  { %531 = vrot.lane.b32.xlu0 %v1318_v59, %s1231_s22 }
 0x303   :  { %v366_v5 = vpop.xlane.xlu0 %365 }
 0x304   :  { %v376_v6 = vsub.f32 %v360_v48, %v366_v5 }
 0x306   :  { %v380_v7 = vmul.f32 1.442695, %v376_v6 }
 0x308   :  { %1178 = vpow2.f32 %v380_v7 }
 0x30e   :  { %v1379_v8 = vpop.eup %1178 }
 0x30f   :  { %v388_v9 = vsel %vm21_vm0, %v1379_v8, 0.0 }
 0x310   :  { %389 = vadd.xlane.f32.xlu2 %v388_v9 }
 0x311   :  { %v372_v10 = vpop.xlane.xlu2 %371 }
 0x312   :  { %v378_v12 = vsub.f32 %v362_v57, %v372_v10 }
 0x314   :  { %v384_v13 = vmul.f32 1.442695, %v378_v12 }
 0x316   :  { %1180 = vpow2.f32 %v384_v13  ;;  %v476_v28 = vpop.permute.xlu0 %475 }
 0x317   :  { %v481_v29 = vsel %vm172_vm1, %v476_v28, 0 }
 0x318   :  { %490 = vmatpush.bf16.msrb.mxu3 %v481_v29 }
 0x319   :  { %v369_v14 = vpop.xlane.xlu2 %368  ;;  %v375_v15 = vpop.xlane.xlu1 %374 }
 0x31a   :  { %v377_v16 = vsub.f32 %v361_v61, %v369_v14  ;;  %v379_v19 = vsub.f32 %v363_v1, %v375_v15 }
 0x31c   :  { %v1181_v17 = vpop.eup %1180  ;;  %v382_v18 = vmul.f32 1.442695, %v377_v16  ;;  %v386_v21 = vmul.f32 1.442695, %v379_v19 }
 0x31d   :  { %v394_v20 = vsel %vm21_vm0, %v1181_v17, 0.0 }
 0x31e   :  { %395 = vadd.xlane.f32.xlu1 %v394_v20  ;;  %1182 = vpow2.f32 %v382_v18  ;;  %v558_v30 = vpop.permute.xlu0 %557 }
 0x31f   :  { %1184 = vpow2.f32 %v386_v21  ;;  %v563_v31 = vsel %vm21_vm0, %v558_v30, 0 }
 0x324   :  { %v1183_v22 = vpop.eup %1182 }
 0x325   :  { %v391_v24 = vsel %vm21_vm0, %v1183_v22, 0.0  ;;  %v1185_v25 = vpop.eup %1184 }
 0x326   :  { %392 = vadd.xlane.f32.xlu2 %v391_v24  ;;  %v397_v11 = vsel %vm21_vm0, %v1185_v25, 0.0  ;;  %v434_v32 = vpop.permute.xlu0 %433 }
 0x327   :  { %v439_v33 = vsel %vm172_vm1, %v434_v32, 0 }
 0x328   :  { %448 = vmatpush.bf16.msrb.mxu1 %v439_v33 }
 0x32e   :  { %398 = vadd.xlane.f32.xlu2 %v397_v11  ;;  %v582_v35 = vpop.permute.xlu0 %581 }
 0x331   :  { %v455_v26 = vpop.permute.xlu1 %454 }
 0x332   :  { %v460_v27 = vsel %vm172_vm1, %v455_v26, 0 }
 0x333   :  { %469 = vmatpush.bf16.msrb.mxu2 %v460_v27 }
 0x336   :  { %v532_v40 = vpop.permute.xlu0 %531 }
 0x337   :  { %412 = vrot.lane.b32.xlu1 %v1314_v47, %s1230_s0  ;;  %572 = vmatpush.bf16.xpose.msra.mxu2 %v563_v31  ;;  %v537_v46 = vsel %vm21_vm0, %v532_v40, 0 }
 0x338   :  { %546 = vmatpush.bf16.xpose.msra.mxu1 %v537_v46 }
 0x33f   :  { %555 = vrot.lane.b32.xlu1 %v1296_v41, %s1232_s23 }
 0x346   :  { %583 = vrot.lane.b32.xlu2 %v1300_v44, %s1231_s22 }
 0x347   :  { %505 = vrot.lane.b32.xlu1 %v1314_v47, %s1231_s22 }
 0x34e   :  { %503 = vrot.lane.b32.xlu2 %v1314_v47, %s1232_s23 }
 0x34f   :  { %529 = vrot.lane.b32.xlu1 %v1318_v59, %s1232_s23 }
 0x383   :  { %v390_v36 = vpop.xlane.xlu2 %389 }
 0x391   :  { %v396_v34 = vpop.xlane.xlu1 %395 }
 0x392   :  { %1186 = vrcp.f32 %v396_v34 }
 0x398   :  { %v1187_v37 = vpop.eup %1186 }
 0x399   :  { %v406_v38 = vmul.f32 %v1187_v37, %v1181_v17  ;;  %v393_v39 = vpop.xlane.xlu2 %392 }
 0x39a   :  { %1188 = vrcp.f32 %v393_v39 }
 0x39b   :  { %v410_v43 = vpack.c.bf16 %v406_v38, %v406_v38  ;;  %1190 = vrcp.f32 %v390_v36 }
 0x39d   :  { %1073 = vmatmul.msk.bf16.vlgmr.msrb.gmra.mxu2 %vm21_vm0, %v410_v43 }
 0x3a0   :  { %v1189_v48 = vpop.eup %1188 }
 0x3a1   :  { %v405_v50 = vmul.f32 %v1189_v48, %v1183_v22  ;;  %v399_v51 = vpop.xlane.xlu2 %398  ;;  %v1191_v54 = vpop.eup %1190 }
 0x3a2   :  { %1192 = vrcp.f32 %v399_v51  ;;  %v404_v55 = vmul.f32 %v1191_v54, %v1379_v8 }
 0x3a3   :  { %v409_v53 = vpack.c.bf16 %v405_v50, %v405_v50 }
 0x3a4   :  { %v408_v63 = vpack.c.bf16 %v404_v55, %v404_v55 }
 0x3a5   :  { %1072 = vmatmul.msk.bf16.vlgmr.msrb.gmra.mxu1 %vm21_vm0, %v409_v53 }
 0x3a8   :  { %v1193_v56 = vpop.eup %1192 }
 0x3a9   :  { %v413_v57 = vpop.permute.xlu1 %412  ;;  %v407_v58 = vmul.f32 %v1193_v56, %v1185_v25  ;;  %v584_v61 = vpop.permute.xlu2 %583 }
 0x3aa   :  { %v418_v60 = vsel %vm172_vm1, %v413_v57, 0  ;;  %v589_v62 = vsel %vm21_vm0, %v584_v61, 0 }
 0x3ab   :  { %427 = vmatpush.bf16.msrb.mxu0 %v418_v60  ;;  %v411_v0 = vpack.c.bf16 %v407_v58, %v407_v58  ;;  %598 = vmatpush.bf16.xpose.msra.mxu3 %v589_v62 }
 0x3ad   :  { %1074 = vmatmul.msk.bf16.vlgmr.msrb.gmra.mxu3 %vm21_vm0, %v411_v0 }
 0x3ae   :  { %1071 = vmatmul.msk.bf16.vlgmr.msrb.gmra.mxu0 %vm21_vm0, %v408_v63 }
 0x3b1   :  { %v556_v1 = vpop.permute.xlu1 %555  ;;  %v504_v4 = vpop.permute.xlu2 %503 }
 0x3b2   :  { %1077 = vmatmul.msk.bf16.vlgmr.msra.gmra.mxu2 %vm21_vm0, %v556_v1 }
 0x3b9   :  { %v506_v2 = vpop.permute.xlu1 %505 }
 0x3ba   :  { %v511_v3 = vsel %vm21_vm0, %v506_v2, 0 }
 0x3bb   :  { %520 = vmatpush.bf16.xpose.msra.mxu0 %v511_v3 }
 0x3bd   :  { %1078 = vmatmul.msk.bf16.vlgmr.msra.gmra.mxu3 %vm21_vm0, %v582_v35 }
 0x3c1   :  { %v530_v5 = vpop.permute.xlu1 %529 }
 0x3c2   :  { %1075 = vmatmul.msk.bf16.vlgmr.msra.gmra.mxu0 %vm21_vm0, %v504_v4  ;;  %1076 = vmatmul.msk.bf16.vlgmr.msra.gmra.mxu1 %vm21_vm0, %v530_v5 }
 0x420   :  { %v1415_v6 = vpop.f32.mrf.mxu2 }
 0x422   :  { %v1417_v7 = vpop.f32.mrf.mxu1 }
 0x428   :  { %v473_v8 = vpop.f32.mrf.mxu2 }
 0x42a   :  { %v452_v9 = vpop.f32.mrf.mxu1 }
 0x42b   :  { %v1419_v10 = vpop.f32.mrf.mxu0 }
 0x42c   :  { %v1132_v12 = vpack.i.bf16 %v1417_v7, %v1419_v10 }
 0x430   :  { %v1423_v13 = vpop.f32.mrf.mxu3 }
 0x431   :  { %v1137_v14 = vpack.i.bf16 %v1423_v13, %v1415_v6 }
 0x433   :  { %v431_v15 = vpop.f32.mrf.mxu0 }
 0x435   :  { %v574_v16 = vpop.f32.mrf.mxu2 }
 0x436   :  { %v606_v17 = vsel %vm11_vm2, -1e+30, %v574_v16 }
 0x437   :  { %v614_v18 = vsel %vm21_vm0, %v606_v17, -inf }
 0x438   :  { %615 = vmax.xlane.f32.xlu0 %v614_v18  ;;  %v494_v19 = vpop.f32.mrf.mxu3 }
 0x43d   :  { %v576_v20 = vpop.f32.mrf.mxu2 }
 0x43f   :  { %v522_v21 = vpop.f32.mrf.mxu0  ;;  %v548_v22 = vpop.f32.mrf.mxu1 }
 0x440   :  { %v604_v24 = vsel %vm11_vm2, -1e+30, %v522_v21  ;;  %v600_v25 = vpop.f32.mrf.mxu3  ;;  %v605_v28 = vsel %vm11_vm2, -1e+30, %v548_v22 }
 0x441   :  { %v608_v11 = vsel %vm21_vm0, %v604_v24, -inf  ;;  %v607_v26 = vsel %vm11_vm2, -1e+30, %v600_v25  ;;  %v611_v32 = vsel %vm21_vm0, %v605_v28, -inf }
 0x442   :  { %609 = vmax.xlane.f32.xlu1 %v608_v11  ;;  %v617_v27 = vsel %vm21_vm0, %v607_v26, -inf }
 0x443   :  { %618 = vmax.xlane.f32.xlu2 %v617_v27 }
 0x447   :  { %v524_v29 = vpop.f32.mrf.mxu0  ;;  %v550_v30 = vpop.f32.mrf.mxu1 }
 0x448   :  { %v602_v31 = vpop.f32.mrf.mxu3 }
 0x44b   :  { %612 = vmax.xlane.f32.xlu2 %v611_v32 }
 0x44c   :  { %719 = vrot.lane.b32.xlu0 %v1300_v44, %s1233_s24 }
 0x454   :  { %656 = vrot.lane.b32.xlu0 %v1314_v47, %s1233_s24 }
 0x45b   :  { %677 = vrot.lane.b32.xlu1 %v1318_v59, %s1233_s24 }
 0x45c   :  { %827 = vrot.lane.b32.xlu0 %v1300_v44, %s1234_s25 }
 0x463   :  { %698 = vrot.lane.b32.xlu2 %v1296_v41, %s1233_s24 }
 0x464   :  { %825 = vrot.lane.b32.xlu0 %v1300_v44, %s1235_s26 }
 0x46b   :  { %801 = vrot.lane.b32.xlu2 %v1296_v41, %s1234_s25 }
 0x473   :  { %799 = vrot.lane.b32.xlu2 %v1296_v41, %s1235_s26 }
 0x47b   :  { %749 = vrot.lane.b32.xlu2 %v1314_v47, %s1234_s25 }
 0x483   :  { %773 = vrot.lane.b32.xlu2 %v1318_v59, %s1235_s26 }
 0x4ab   :  { %v616_v33 = vpop.xlane.xlu0 %615 }
 0x4ac   :  { %v622_v34 = vsub.f32 %v606_v17, %v616_v33 }
 0x4ae   :  { %v628_v35 = vmul.f32 1.442695, %v622_v34 }
 0x4b0   :  { %1194 = vpow2.f32 %v628_v35 }
 0x4b5   :  { %v610_v36 = vpop.xlane.xlu1 %609 }
 0x4b6   :  { %v1195_v37 = vpop.eup %1194  ;;  %v620_v38 = vsub.f32 %v604_v24, %v610_v36  ;;  %v619_v39 = vpop.xlane.xlu2 %618 }
 0x4b7   :  { %v638_v40 = vsel %vm21_vm0, %v1195_v37, 0.0  ;;  %v623_v53 = vsub.f32 %v607_v26, %v619_v39 }
 0x4b8   :  { %v624_v43 = vmul.f32 1.442695, %v620_v38  ;;  %639 = vadd.xlane.f32.xlu0 %v638_v40 }
 0x4b9   :  { %v630_v55 = vmul.f32 1.442695, %v623_v53 }
 0x4ba   :  { %1196 = vpow2.f32 %v624_v43 }
 0x4be   :  { %v613_v46 = vpop.xlane.xlu2 %612  ;;  %v720_v58 = vpop.permute.xlu0 %719 }
 0x4bf   :  { %v621_v50 = vsub.f32 %v605_v28, %v613_v46  ;;  %v725_v61 = vsel %vm172_vm1, %v720_v58, 0 }
 0x4c0   :  { %v1197_v48 = vpop.eup %1196  ;;  %734 = vmatpush.bf16.msrb.mxu3 %v725_v61 }
 0x4c1   :  { %v632_v51 = vsel %vm21_vm0, %v1197_v48, 0.0  ;;  %v626_v54 = vmul.f32 1.442695, %v621_v50 }
 0x4c2   :  { %633 = vadd.xlane.f32.xlu1 %v632_v51 }
 0x4c3   :  { %1198 = vpow2.f32 %v626_v54 }
 0x4c4   :  { %1200 = vpow2.f32 %v630_v55 }
 0x4c6   :  { %v657_v1 = vpop.permute.xlu0 %656  ;;  %v699_v5 = vpop.permute.xlu2 %698 }
 0x4c7   :  { %v662_v2 = vsel %vm172_vm1, %v657_v1, 0  ;;  %v704_v8 = vsel %vm172_vm1, %v699_v5, 0 }
 0x4c8   :  { %671 = vmatpush.bf16.msrb.mxu0 %v662_v2  ;;  %713 = vmatpush.bf16.msrb.mxu2 %v704_v8 }
 0x4c9   :  { %v1199_v56 = vpop.eup %1198 }
 0x4ca   :  { %v635_v57 = vsel %vm21_vm0, %v1199_v56, 0.0  ;;  %v1201_v63 = vpop.eup %1200 }
 0x4cb   :  { %636 = vadd.xlane.f32.xlu1 %v635_v57  ;;  %v641_v0 = vsel %vm21_vm0, %v1201_v63, 0.0 }
 0x4cc   :  { %775 = vrot.lane.b32.xlu0 %v1318_v59, %s1234_s25 }
 0x4cd   :  { %v678_v60 = vpop.permute.xlu1 %677 }
 0x4ce   :  { %v683_v62 = vsel %vm172_vm1, %v678_v60, 0  ;;  %v828_v3 = vpop.permute.xlu0 %827  ;;  %v802_v9 = vpop.permute.xlu2 %801 }
 0x4cf   :  { %692 = vmatpush.bf16.msrb.mxu1 %v683_v62  ;;  %v833_v4 = vsel %vm21_vm0, %v828_v3, 0  ;;  %v807_v15 = vsel %vm21_vm0, %v802_v9, 0 }
 0x4d0   :  { %842 = vmatpush.bf16.xpose.msra.mxu3 %v833_v4  ;;  %816 = vmatpush.bf16.xpose.msra.mxu2 %v807_v15 }
 0x4d3   :  { %642 = vadd.xlane.f32.xlu1 %v641_v0 }
 0x4d6   :  { %v826_v16 = vpop.permute.xlu0 %825  ;;  %v800_v17 = vpop.permute.xlu2 %799 }
 0x4de   :  { %v750_v19 = vpop.permute.xlu2 %749 }
 0x4df   :  { %v755_v21 = vsel %vm21_vm0, %v750_v19, 0 }
 0x4e0   :  { %764 = vmatpush.bf16.xpose.msra.mxu0 %v755_v21 }
 0x4e6   :  { %v774_v38 = vpop.permute.xlu2 %773 }
 0x4ec   :  { %747 = vrot.lane.b32.xlu1 %v1314_v47, %s1235_s26 }
 0x52b   :  { %v640_v18 = vpop.xlane.xlu0 %639 }
 0x52c   :  { %1202 = vrcp.f32 %v640_v18 }
 0x532   :  { %v1203_v20 = vpop.eup %1202 }
 0x533   :  { %v650_v22 = vmul.f32 %v1203_v20, %v1195_v37 }
 0x535   :  { %v654_v24 = vpack.c.bf16 %v650_v22, %v650_v22  ;;  %v634_v25 = vpop.xlane.xlu1 %633 }
 0x536   :  { %1204 = vrcp.f32 %v634_v25 }
 0x537   :  { %1081 = vmatmul.msk.bf16.vlgmr.msrb.gmra.mxu2 %vm21_vm0, %v654_v24 }
 0x53c   :  { %v1205_v11 = vpop.eup %1204 }
 0x53d   :  { %v648_v26 = vmul.f32 %v1205_v11, %v1197_v48 }
 0x53e   :  { %v776_v27 = vpop.permute.xlu0 %775  ;;  %v637_v29 = vpop.xlane.xlu1 %636 }
 0x53f   :  { %v652_v28 = vpack.c.bf16 %v648_v26, %v648_v26  ;;  %v781_v30 = vsel %vm21_vm0, %v776_v27, 0  ;;  %1206 = vrcp.f32 %v637_v29 }
 0x540   :  { %790 = vmatpush.bf16.xpose.msra.mxu1 %v781_v30 }
 0x541   :  { %1079 = vmatmul.msk.bf16.vlgmr.msrb.gmra.mxu0 %vm21_vm0, %v652_v28 }
 0x545   :  { %v1207_v31 = vpop.eup %1206 }
 0x546   :  { %v649_v32 = vmul.f32 %v1207_v31, %v1199_v56  ;;  %v643_v33 = vpop.xlane.xlu1 %642 }
 0x547   :  { %1085 = vmatmul.msk.bf16.vlgmr.msra.gmra.mxu2 %vm21_vm0, %v800_v17  ;;  %1208 = vrcp.f32 %v643_v33 }
 0x548   :  { %v653_v34 = vpack.c.bf16 %v649_v32, %v649_v32 }
 0x54a   :  { %1080 = vmatmul.msk.bf16.vlgmr.msrb.gmra.mxu1 %vm21_vm0, %v653_v34 }
 0x54d   :  { %v1209_v35 = vpop.eup %1208 }
 0x54e   :  { %v651_v36 = vmul.f32 %v1209_v35, %v1201_v63 }
 0x550   :  { %v655_v37 = vpack.c.bf16 %v651_v36, %v651_v36 }
 0x552   :  { %1082 = vmatmul.msk.bf16.vlgmr.msrb.gmra.mxu3 %vm21_vm0, %v655_v37 }
 0x55a   :  { %1084 = vmatmul.msk.bf16.vlgmr.msra.gmra.mxu1 %vm21_vm0, %v774_v38 }
 0x55e   :  { %v748_v39 = vpop.permute.xlu1 %747 }
 0x55f   :  { %1083 = vmatmul.msk.bf16.vlgmr.msra.gmra.mxu0 %vm21_vm0, %v748_v39 }
 0x562   :  { %1086 = vmatmul.msk.bf16.vlgmr.msra.gmra.mxu3 %vm21_vm0, %v826_v16 }
 0x5ba   :  { %v1479_v40 = vpop.f32.mrf.mxu2 }
 0x5be   :  { %v1481_v43 = vpop.f32.mrf.mxu0 }
 0x5c2   :  { %v717_v46 = vpop.f32.mrf.mxu2 }
 0x5c6   :  { %v675_v48 = vpop.f32.mrf.mxu0 }
 0x5c7   :  { %v1483_v50 = vpop.f32.mrf.mxu1 }
 0x5c8   :  { %v1142_v51 = vpack.i.bf16 %v1483_v50, %v1481_v43 }
 0x5ca   :  { %v818_v53 = vpop.f32.mrf.mxu2 }
 0x5cb   :  { %v850_v54 = vsel %vm11_vm2, -1e+30, %v818_v53 }
 0x5cc   :  { %v858_v55 = vsel %vm21_vm0, %v850_v54, -inf }
 0x5cd   :  { %859 = vmax.xlane.f32.xlu0 %v858_v55 }
 0x5cf   :  { %v696_v56 = vpop.f32.mrf.mxu1 }
 0x5d2   :  { %v820_v57 = vpop.f32.mrf.mxu2 }
 0x5d5   :  { %v736_v58 = vpop.f32.mrf.mxu3 }
 0x5d6   :  { %v1147_v60 = vpack.i.bf16 %v736_v58, %v1479_v40 }
 0x5d7   :  { %v792_v61 = vpop.f32.mrf.mxu1 }
 0x5d8   :  { %v849_v62 = vsel %vm11_vm2, -1e+30, %v792_v61 }
 0x5d9   :  { %v855_v63 = vsel %vm21_vm0, %v849_v62, -inf }
 0x5da   :  { %856 = vmax.xlane.f32.xlu0 %v855_v63 }
 0x5dc   :  { %v766_v0 = vpop.f32.mrf.mxu0 }
 0x5dd   :  { %v848_v1 = vsel %vm11_vm2, -1e+30, %v766_v0  ;;  %v738_v2 = vpop.f32.mrf.mxu3 }
 0x5de   :  { %v852_v3 = vsel %vm21_vm0, %v848_v1, -inf }
 0x5df   :  { %853 = vmax.xlane.f32.xlu2 %v852_v3  ;;  %v794_v4 = vpop.f32.mrf.mxu1 }
 0x5e4   :  { %v768_v5 = vpop.f32.mrf.mxu0 }
 0x5e5   :  { %v844_v8 = vpop.f32.mrf.mxu3 }
 0x5e6   :  { %v851_v9 = vsel %vm11_vm2, -1e+30, %v844_v8 }
 0x5e7   :  { %v861_v15 = vsel %vm21_vm0, %v851_v9, -inf }
 0x5e8   :  { %862 = vmax.xlane.f32.xlu1 %v861_v15 }
 0x5ed   :  { %v846_v16 = vpop.f32.mrf.mxu3 }
 0x5f7   :  { %942 = vrot.lane.b32.xlu2 %v1296_v41, %s1236_s27 }
 0x640   :  { %v860_v17 = vpop.xlane.xlu0 %859 }
 0x641   :  { %v866_v20 = vsub.f32 %v850_v54, %v860_v17 }
 0x643   :  { %v872_v25 = vmul.f32 1.442695, %v866_v20 }
 0x64d   :  { %v857_v18 = vpop.xlane.xlu0 %856 }
 0x64e   :  { %v865_v19 = vsub.f32 %v849_v62, %v857_v18 }
 0x650   :  { %v870_v21 = vmul.f32 1.442695, %v865_v19 }
 0x652   :  { %1210 = vpow2.f32 %v870_v21  ;;  %v854_v22 = vpop.xlane.xlu2 %853 }
 0x653   :  { %v864_v24 = vsub.f32 %v848_v1, %v854_v22 }
 0x655   :  { %v868_v11 = vmul.f32 1.442695, %v864_v24 }
 0x657   :  { %1212 = vpow2.f32 %v868_v11 }
 0x658   :  { %v1211_v23 = vpop.eup %1210  ;;  %1214 = vpow2.f32 %v872_v25 }
 0x659   :  { %v879_v26 = vsel %vm21_vm0, %v1211_v23, 0.0 }
 0x65a   :  { %880 = vadd.xlane.f32.xlu1 %v879_v26  ;;  %v943_v35 = vpop.permute.xlu2 %942 }
 0x65b   :  { %v863_v27 = vpop.xlane.xlu1 %862  ;;  %v948_v36 = vsel %vm172_vm1, %v943_v35, 0 }
 0x65c   :  { %v867_v28 = vsub.f32 %v851_v9, %v863_v27  ;;  %957 = vmatpush.bf16.msrb.mxu2 %v948_v36 }
 0x65d   :  { %v1213_v29 = vpop.eup %1212 }
 0x65e   :  { %v1215_v41 = vpop.eup %1214  ;;  %v874_v30 = vmul.f32 1.442695, %v867_v28  ;;  %v876_v31 = vsel %vm21_vm0, %v1213_v29, 0.0 }
 0x65f   :  { %877 = vadd.xlane.f32.xlu0 %v876_v31  ;;  %v882_v32 = vsel %vm21_vm0, %v1215_v41, 0.0 }
 0x660   :  { %1216 = vpow2.f32 %v874_v30 }
 0x662   :  { %883 = vadd.xlane.f32.xlu1 %v882_v32 }
 0x666   :  { %v1217_v33 = vpop.eup %1216 }
 0x667   :  { %v885_v34 = vsel %vm21_vm0, %v1217_v33, 0.0 }
 0x668   :  { %886 = vadd.xlane.f32.xlu2 %v885_v34 }
 0x673   :  { %963 = vrot.lane.b32.xlu0 %v1300_v44, %s1236_s27 }
 0x67b   :  { %1133 = vrot.lane.b32.xlu0 %v1132_v12, %s1237_s28  ;;  %900 = vrot.lane.b32.xlu1 %v1314_v47, %s1236_s27 }
 0x680   :  { %921 = vrot.lane.b32.xlu2 %v1318_v59, %s1236_s27 }
 0x683   :  { %1148 = vrot.lane.b32.xlu0 %v1147_v60, %s1238_s29  ;;  %1138 = vrot.lane.b32.xlu1 %v1137_v14, %s1237_s28 }
 0x688   :  { %1143 = vrot.lane.b32.xlu2 %v1142_v51, %s1238_s29 }
 0x6cd   :  { %v881_v44 = vpop.xlane.xlu1 %880 }
 0x6d2   :  { %v878_v47 = vpop.xlane.xlu0 %877 }
 0x6d5   :  { %v884_v37 = vpop.xlane.xlu1 %883 }
 0x6d6   :  { %1218 = vrcp.f32 %v884_v37 }
 0x6d7   :  { %1220 = vrcp.f32 %v881_v44 }
 0x6db   :  { %v887_v7 = vpop.xlane.xlu2 %886 }
 0x6dc   :  { %v1219_v10 = vpop.eup %1218  ;;  %1222 = vrcp.f32 %v887_v7 }
 0x6dd   :  { %v894_v12 = vmul.f32 %v1219_v10, %v1215_v41  ;;  %v1221_v59 = vpop.eup %1220  ;;  %1224 = vrcp.f32 %v878_v47 }
 0x6de   :  { %v893_v6 = vmul.f32 %v1221_v59, %v1211_v23 }
 0x6df   :  { %v898_v38 = vpack.c.bf16 %v894_v12, %v894_v12 }
 0x6e0   :  { %v897_v46 = vpack.c.bf16 %v893_v6, %v893_v6 }
 0x6e1   :  { %1089 = vmatmul.msk.bf16.vlgmr.msrb.gmra.mxu2 %vm21_vm0, %v898_v38 }
 0x6e2   :  { %v1223_v39 = vpop.eup %1222 }
 0x6e3   :  { %v922_v13 = vpop.permute.xlu2 %921  ;;  %v895_v14 = vmul.f32 %v1223_v39, %v1217_v33  ;;  %v1225_v51 = vpop.eup %1224 }
 0x6e4   :  { %v927_v40 = vsel %vm172_vm1, %v922_v13, 0  ;;  %v892_v53 = vmul.f32 %v1225_v51, %v1213_v29 }
 0x6e5   :  { %936 = vmatpush.bf16.msrb.mxu1 %v927_v40  ;;  %v964_v43 = vpop.permute.xlu0 %963  ;;  %v899_v50 = vpack.c.bf16 %v895_v14, %v895_v14 }
 0x6e6   :  { %v969_v48 = vsel %vm172_vm1, %v964_v43, 0  ;;  %v896_v56 = vpack.c.bf16 %v892_v53, %v892_v53 }
 0x6e7   :  { %978 = vmatpush.bf16.msrb.mxu3 %v969_v48 }
 0x6e8   :  { %1088 = vmatmul.msk.bf16.vlgmr.msrb.gmra.mxu1 %vm21_vm0, %v897_v46 }
 0x6ea   :  { %1090 = vmatmul.msk.bf16.vlgmr.msrb.gmra.mxu3 %vm21_vm0, %v899_v50 }
 0x6eb   :  { %v1144_v5 = vpop.permute.xlu2 %1143 }
 0x6ec   :  { %v1146_v30 = vunpack.i.h.bf16 %v1144_v5  ;;  %v1145_v31 = vunpack.i.l.bf16 %v1144_v5 }
 0x6ed   :  { %v901_v54 = vpop.permute.xlu1 %900  ;;  %v1134_v4 = vpop.permute.xlu0 %1133 }
 0x6ee   :  { %v906_v55 = vsel %vm172_vm1, %v901_v54, 0 }
 0x6ef   :  { %915 = vmatpush.bf16.msrb.mxu0 %v906_v55 }
 0x6f2   :  { %1087 = vmatmul.msk.bf16.vlgmr.msrb.gmra.mxu0 %vm21_vm0, %v896_v56 }
 0x6f5   :  { %v1139_v8 = vpop.permute.xlu1 %1138  ;;  %v1149_v16 = vpop.permute.xlu0 %1148 }
 0x6f6   :  { %v1141_v9 = vunpack.i.h.bf16 %v1139_v8  ;;  %v1140_v15 = vunpack.i.l.bf16 %v1139_v8  ;;  %v1151_v17 = vunpack.i.h.bf16 %v1149_v16  ;;  %v1150_v18 = vunpack.i.l.bf16 %v1149_v16 }
 0x6f8   :  { %v1035_v19 = vsel %vm21_vm0, %v1356_v52, %v1141_v9  ;;  %v1034_v20 = vsel %vm21_vm0, %v1349_v45, %v1140_v15  ;;  %v1136_v45 = vunpack.i.h.bf16 %v1134_v4  ;;  %v1135_v52 = vunpack.i.l.bf16 %v1134_v4 }
 0x6f9   :  { %v1040_v25 = vsel %vm1036_vm4, %v1035_v19, %v1151_v17  ;;  %v1039_v11 = vsel %vm1036_vm4, %v1034_v20, %v1150_v18 }
 0x6fa   :  { %v1033_v29 = vsel %vm21_vm0, %v1353_v49, %v1136_v45  ;;  %v1032_v41 = vsel %vm21_vm0, %v1347_v42, %v1135_v52 }
 0x6fb   :  { %v1037_v35 = vsel %vm1036_vm4, %v1032_v41, %v1145_v31  ;;  %v1038_v36 = vsel %vm1036_vm4, %v1033_v29, %v1146_v30 }
 0x764   :  { %v959_v57 = vpop.f32.mrf.mxu2 }
 0x765   :  { %v938_v58 = vpop.f32.mrf.mxu1 }
 0x76c   :  { %v961_v60 = vpop.f32.mrf.mxu2 }
 0x76d   :  { %v940_v61 = vpop.f32.mrf.mxu1  ;;  %v980_v62 = vpop.f32.mrf.mxu3 }
 0x76e   :  { %v1157_v63 = vpack.i.bf16 %v980_v62, %v959_v57 }
 0x76f   :  { %v917_v0 = vpop.f32.mrf.mxu0 }
 0x770   :  { %v1152_v1 = vpack.i.bf16 %v938_v58, %v917_v0  ;;  %1158 = vrot.lane.b32.xlu2 %v1157_v63, %s1239_s30 }
 0x772   :  { %1153 = vrot.lane.b32.xlu1 %v1152_v1, %s1239_s30 }
 0x775   :  { %v982_v2 = vpop.f32.mrf.mxu3 }
 0x777   :  { %v919_v3 = vpop.f32.mrf.mxu0 }
 0x7ca   :  { %v1159_v21 = vpop.permute.xlu2 %1158 }
 0x7cb   :  { %v1161_v22 = vunpack.i.h.bf16 %v1159_v21  ;;  %v1160_v24 = vunpack.i.l.bf16 %v1159_v21 }
 0x7cd   :  { %v1044_v23 = vsel %vm1041_vm3, %v1039_v11, %v1160_v24  ;;  %v1045_v26 = vsel %vm1041_vm3, %v1040_v25, %v1161_v22 }
 0x7ce   :  { %v1048_v27 = vpack.c.bf16 %v1044_v23, %v1044_v23  ;;  %v1049_v28 = vpack.c.bf16 %v1045_v26, %v1045_v26 }
 0x7d0   :  { %1053 = vst.msk [vmem:[%s1562_s1 + $0x8] sm:$0xf] %vm1050_vm5, %v1048_v27 }
 0x7d1   :  { %1054 = vst.msk [vmem:[%s1562_s1 + $0xc] sm:$0xf] %vm1050_vm5, %v1049_v28 }
 0x7e4   :  { %v1154_v32 = vpop.permute.xlu1 %1153 }
 0x7e5   :  { %v1156_v33 = vunpack.i.h.bf16 %v1154_v32  ;;  %v1155_v34 = vunpack.i.l.bf16 %v1154_v32 }
 0x7e7   :  { %v1043_v44 = vsel %vm1041_vm3, %v1038_v36, %v1156_v33  ;;  %v1042_v37 = vsel %vm1041_vm3, %v1037_v35, %v1155_v34 }
 0x7e8   :  { %v1047_v7 = vpack.c.bf16 %v1043_v44, %v1043_v44  ;;  %v1046_v10 = vpack.c.bf16 %v1042_v37, %v1042_v37 }
 0x7ea   :  { %1052 = vst.msk [vmem:[%s1562_s1 + $0x4] sm:$0xf] %vm1050_vm5, %v1047_v7 }
 0x7eb   :  { %1051 = vst.msk [vmem:[%s1562_s1] sm:$0xf] %vm1050_vm5, %v1046_v10 }

// kernel: timesformer_forward.27
= control target key start
LH: loop header
LB: loop body
LE: loop exit
PB: predicated region body
PF: predicated region fallthrough
CT: control target
= control target key end

     0   :  { %vm27_vm0 = vcmask 261120   ;;  %vm34_vm1 = vcmask 254976   ;;  %v237_v8 = vmov 32.0   ;;  %vm192_vm12 = vcmask 519168   ;;  %s311_s0 = inlined_call_operand.vmem [shape: bf16[18,32], index: 0, kind: input, shape index: {}]   ;;  %s312_s3 = inlined_call_operand.vmem [shape: f32[1,32], index: 3, kind: input, shape index: {}]   ;;  %s313_s4 = inlined_call_operand.vmem [shape: f32[1,32], index: 4, kind: input, shape index: {}]   ;;  %s314_s2 = inlined_call_operand.vmem [shape: f32[1,64], index: 2, kind: input, shape index: {}]   ;;  %s315_s1 = inlined_call_operand.vmem [shape: bf16[32,64], index: 1, kind: input, shape index: {}]   ;;  %s316_s5 = inlined_call_operand.vmem [shape: bf16[18,64], index: 5, kind: output, shape index: {}]  }
   0x1   :  { %v214_v0 = vld [vmem:[%s311_s0] sm:$0xff]   ;;  %v23_v1 = vld [vmem:[%s311_s0 + $0x8] sm:$0x1]  ;;  %223 = vrcp.f32 %v237_v8  ;;  %vm195_vm13 = vcmask 516096  }
   0x2   :  { %v215_v2 = vunpack.c.l.bf16 %v214_v0  ;;  %v26_v3 = vunpack.c.l.bf16 %v23_v1  ;;  %v216_v6 = vunpack.c.h.bf16 %v214_v0  ;;  %v212_v30 = vld [vmem:[%s315_s1 + $0x8] sm:$0xff]  ;;  %v211_v33 = vld [vmem:[%s315_s1] sm:$0xff] }
   0x3   :  { %150 = vmatpush.bf16.msra.mxu0 %v212_v30  ;;  %217 = vmatpush.bf16.msra.mxu1 %v212_v30  ;;  %v220_v55 = vld [vmem:[%s312_s3] ss:$0 sm:$0xff] }
   0x4   :  { %v28_v4 = vsel %vm27_vm0, %v215_v2, 0.0  ;;  %v35_v5 = vsel %vm34_vm1, %v26_v3, 0.0  ;;  %v31_v7 = vsel %vm27_vm0, %v216_v6, 0.0  ;;  %v221_v62 = vld [vmem:[%s313_s4] ss:$0 sm:$0xff] }
   0x5   :  { %29 = vadd.xlane.f32.xlu0 %v28_v4  ;;  %36 = vadd.xlane.f32.xlu1 %v35_v5 }
   0x7   :  { %v224_v9 = vpop.eup %223  ;;  %151 = vmatpush.bf16.msra.mxu0 %v211_v33  ;;  %218 = vmatpush.bf16.msra.mxu1 %v211_v33 }
   0x8   :  { %v39_v10 = vmul.f32 32.0, %v224_v9  ;;  %vm43_vm2 = vweird.f32 %v224_v9 }
   0xa   :  { %v40_v11 = vsub.f32 1.0, %v39_v10 }
   0xc   :  { %v41_v12 = vmul.f32 %v224_v9, %v40_v11  ;;  %v222_v11 = vld [vmem:[%s314_s2] ss:$0 sm:$0xff] }
   0xd   :  { %32 = vadd.xlane.f32.xlu0 %v31_v7 }
   0xe   :  { %v42_v13 = vadd.f32 %v224_v9, %v41_v12 }
  0x10   :  { %v44_v14 = vsel %vm43_vm2, %v224_v9, %v42_v13 }
  0x78   :  { %v30_v15 = vpop.xlane.xlu0 %29  ;;  %v37_v19 = vpop.xlane.xlu1 %36 }
  0x79   :  { %v45_v16 = vmul.f32 %v44_v14, %v30_v15  ;;  %v47_v23 = vmul.f32 %v44_v14, %v37_v19 }
  0x7b   :  { %v48_v17 = vsub.f32 %v215_v2, %v45_v16  ;;  %v278_v25 = vsub.f32 %v26_v3, %v47_v23 }
  0x7d   :  { %v51_v18 = vmul.f32 %v48_v17, %v48_v17  ;;  %v53_v28 = vmul.f32 %v278_v25, %v278_v25 }
  0x7f   :  { %v54_v20 = vsel %vm27_vm0, %v51_v18, 0.0  ;;  %v60_v29 = vsel %vm34_vm1, %v53_v28, 0.0 }
  0x80   :  { %55 = vadd.xlane.f32.xlu1 %v54_v20  ;;  %v33_v21 = vpop.xlane.xlu0 %32 }
  0x81   :  { %v46_v22 = vmul.f32 %v44_v14, %v33_v21 }
  0x83   :  { %v49_v24 = vsub.f32 %v216_v6, %v46_v22 }
  0x85   :  { %v52_v26 = vmul.f32 %v49_v24, %v49_v24 }
  0x87   :  { %v57_v27 = vsel %vm27_vm0, %v52_v26, 0.0 }
  0x88   :  { %58 = vadd.xlane.f32.xlu2 %v57_v27 }
  0x90   :  { %61 = vadd.xlane.f32.xlu2 %v60_v29 }
  0xf3   :  { %v56_v31 = vpop.xlane.xlu1 %55 }
  0xf4   :  { %v63_v32 = vmul.f32 %v56_v31, %v44_v14 }
  0xf6   :  { %v66_v34 = vadd.f32 1e-06, %v63_v32 }
  0xf8   :  { %225 = vrsqrt.f32 %v66_v34  ;;  %vm75_vm4 = vweird.f32 %v66_v34 }
  0xfb   :  { %v59_v35 = vpop.xlane.xlu2 %58 }
  0xfc   :  { %v64_v36 = vmul.f32 %v59_v35, %v44_v14 }
  0xfe   :  { %v226_v37 = vpop.eup %225  ;;  %v67_v38 = vadd.f32 1e-06, %v64_v36 }
  0xff   :  { %v70_v39 = vmul.f32 %v226_v37, %v66_v34  ;;  %vm76_vm3 = vweird.f32 %v226_v37 }
 0x100   :  { %227 = vrsqrt.f32 %v67_v38  ;;  %vm77_vm5 = vmor %vm75_vm4, %vm76_vm3  ;;  %vm85_vm7 = vweird.f32 %v67_v38 }
 0x101   :  { %v71_v40 = vmul.f32 %v226_v37, %v70_v39 }
 0x103   :  { %v72_v41 = vmul.f32 0.5, %v71_v40  ;;  %v62_v42 = vpop.xlane.xlu2 %61 }
 0x104   :  { %v65_v43 = vmul.f32 %v62_v42, %v44_v14 }
 0x105   :  { %v73_v44 = vsub.f32 1.5, %v72_v41 }
 0x106   :  { %v228_v45 = vpop.eup %227  ;;  %v68_v46 = vadd.f32 1e-06, %v65_v43 }
 0x107   :  { %v74_v47 = vmul.f32 %v226_v37, %v73_v44  ;;  %v80_v48 = vmul.f32 %v228_v45, %v67_v38  ;;  %vm86_vm6 = vweird.f32 %v228_v45 }
 0x108   :  { %229 = vrsqrt.f32 %v68_v46  ;;  %vm87_vm8 = vmor %vm85_vm7, %vm86_vm6  ;;  %vm95_vm10 = vweird.f32 %v68_v46 }
 0x109   :  { %v81_v49 = vmul.f32 %v228_v45, %v80_v48  ;;  %v78_v50 = vsel %vm77_vm5, %v226_v37, %v74_v47 }
 0x10a   :  { %v99_v54 = vmul.f32 %v78_v50, %v48_v17 }
 0x10b   :  { %v82_v51 = vmul.f32 0.5, %v81_v49 }
 0x10c   :  { %v106_v61 = vmul.f32 %v220_v55, %v99_v54 }
 0x10d   :  { %v83_v52 = vsub.f32 1.5, %v82_v51 }
 0x10e   :  { %v230_v53 = vpop.eup %229  ;;  %v113_v2 = vadd.f32 %v221_v62, %v106_v61 }
 0x10f   :  { %v84_v56 = vmul.f32 %v228_v45, %v83_v52  ;;  %v90_v57 = vmul.f32 %v230_v53, %v68_v46  ;;  %vm96_vm9 = vweird.f32 %v230_v53 }
 0x110   :  { %vm97_vm11 = vmor %vm95_vm10, %vm96_vm9 }
 0x111   :  { %v88_v58 = vsel %vm87_vm8, %v228_v45, %v84_v56  ;;  %v91_v59 = vmul.f32 %v230_v53, %v90_v57 }
 0x112   :  { %v100_v60 = vmul.f32 %v88_v58, %v49_v24 }
 0x113   :  { %v92_v63 = vmul.f32 0.5, %v91_v59 }
 0x114   :  { %v107_v0 = vmul.f32 %v220_v55, %v100_v60 }
 0x115   :  { %v93_v1 = vsub.f32 1.5, %v92_v63 }
 0x116   :  { %v114_v3 = vadd.f32 %v221_v62, %v107_v0 }
 0x117   :  { %v94_v4 = vmul.f32 %v230_v53, %v93_v1 }
 0x118   :  { %v116_v5 = vpack.c.bf16 %v114_v3, %v113_v2 }
 0x119   :  { %v98_v6 = vsel %vm97_vm11, %v230_v53, %v94_v4 }
 0x11a   :  { %209 = vmatmul.msk.bf16.vlgmr.msra.gmra.mxu0 %vm27_vm0, %v116_v5  ;;  %v101_v7 = vmul.f32 %v98_v6, %v278_v25 }
 0x11c   :  { %v108_v8 = vmul.f32 %v220_v55, %v101_v7 }
 0x11e   :  { %v115_v9 = vadd.f32 %v221_v62, %v108_v8 }
 0x120   :  { %v117_v10 = vpack.c.bf16 %v115_v9, %v115_v9 }
 0x122   :  { %210 = vmatmul.msk.bf16.vlgmr.msra.gmra.mxu1 %vm27_vm0, %v117_v10 }
 0x197   :  { %v153_v12 = vpop.f32.mrf.mxu0 }
 0x198   :  { %v154_v13 = vadd.f32 %v222_v11, %v153_v12 }
 0x19a   :  { %v162_v14 = vmul.f32 %v154_v13, %v154_v13 }
 0x19c   :  { %v165_v15 = vmul.f32 %v162_v14, %v154_v13 }
 0x19e   :  { %v168_v16 = vmul.f32 0.044715, %v165_v15 }
 0x19f   :  { %v155_v17 = vpop.f32.mrf.mxu0  ;;  %v158_v18 = vpop.f32.mrf.mxu1 }
 0x1a0   :  { %v171_v19 = vadd.f32 %v168_v16, %v154_v13  ;;  %v156_v20 = vadd.f32 %v222_v11, %v155_v17  ;;  %v159_v21 = vadd.f32 %v222_v11, %v158_v18 }
 0x1a2   :  { %v174_v22 = vmul.f32 0.7978846, %v171_v19  ;;  %v163_v23 = vmul.f32 %v156_v20, %v156_v20  ;;  %v164_v24 = vmul.f32 %v159_v21, %v159_v21 }
 0x1a4   :  { %231 = vtanh.f32 %v174_v22  ;;  %v166_v25 = vmul.f32 %v163_v23, %v156_v20  ;;  %v167_v26 = vmul.f32 %v164_v24, %v159_v21 }
 0x1a6   :  { %v169_v27 = vmul.f32 0.044715, %v166_v25  ;;  %v170_v28 = vmul.f32 0.044715, %v167_v26 }
 0x1a7   :  { %v160_v29 = vpop.f32.mrf.mxu1 }
 0x1a8   :  { %v172_v30 = vadd.f32 %v169_v27, %v156_v20  ;;  %v173_v31 = vadd.f32 %v170_v28, %v159_v21 }
 0x1aa   :  { %v232_v32 = vpop.eup %231  ;;  %v175_v33 = vmul.f32 0.7978846, %v172_v30  ;;  %v176_v34 = vmul.f32 0.7978846, %v173_v31 }
 0x1ab   :  { %v180_v35 = vadd.f32 1.0, %v232_v32 }
 0x1ac   :  { %233 = vtanh.f32 %v175_v33 }
 0x1ad   :  { %v183_v36 = vmul.f32 0.5, %v180_v35  ;;  %235 = vtanh.f32 %v176_v34 }
 0x1af   :  { %v186_v37 = vmul.f32 %v183_v36, %v154_v13 }
 0x1b1   :  { %v189_v38 = vpack.c.bf16 %v186_v37, %v186_v37 }
 0x1b2   :  { %v234_v39 = vpop.eup %233 }
 0x1b3   :  { %v236_v40 = vpop.eup %235  ;;  %193 = vst.msk [vmem:[%s316_s5] sm:$0xf] %vm192_vm12, %v189_v38  ;;  %v181_v41 = vadd.f32 1.0, %v234_v39 }
 0x1b4   :  { %v182_v42 = vadd.f32 1.0, %v236_v40 }
 0x1b5   :  { %v184_v43 = vmul.f32 0.5, %v181_v41 }
 0x1b6   :  { %v185_v44 = vmul.f32 0.5, %v182_v42 }
 0x1b7   :  { %v187_v45 = vmul.f32 %v184_v43, %v156_v20 }
 0x1b8   :  { %v188_v46 = vmul.f32 %v185_v44, %v159_v21 }
 0x1b9   :  { %v190_v47 = vpack.c.bf16 %v187_v45, %v187_v45 }
 0x1ba   :  { %v191_v48 = vpack.c.bf16 %v188_v46, %v188_v46 }
 0x1bb   :  { %194 = vst.msk [vmem:[%s316_s5 + $0x4] sm:$0xf] %vm192_vm12, %v190_v47 }
 0x1bc   :  { %196 = vst.msk [vmem:[%s316_s5 + $0x8] sm:$0x1] %vm195_vm13, %v191_v48 }

// kernel: timesformer_forward.28
= control target key start
LH: loop header
LB: loop body
LE: loop exit
PB: predicated region body
PF: predicated region fallthrough
CT: control target
= control target key end

     0   :  { %vm65_vm0 = vcmask 523264   ;;  %vm102_vm1 = vcmask 257024   ;;  %vm105_vm2 = vcmask 253952   ;;  %s208_s1 = inlined_call_operand.vmem [shape: bf16[64,32], index: 1, kind: input, shape index: {}]   ;;  %s209_s2 = inlined_call_operand.vmem [shape: f32[1,32], index: 2, kind: input, shape index: {}]   ;;  %s210_s0 = inlined_call_operand.vmem [shape: bf16[18,64], index: 0, kind: input, shape index: {}]   ;;  %s211_s3 = inlined_call_operand.vmem [shape: bf16[18,32], index: 3, kind: input, shape index: {}]   ;;  %s212_s4 = inlined_call_operand.vmem [shape: bf16[18,32], index: 4, kind: output, shape index: {}]  }
   0x1   :  { %v137_v0 = vld [vmem:[%s208_s1 + $0x18] sm:$0xff]  ;;  %v136_v1 = vld [vmem:[%s208_s1 + $0x10] sm:$0xff]  ;;  %v135_v2 = vld [vmem:[%s208_s1 + $0x8] sm:$0xff] }
   0x2   :  { %76 = vmatpush.bf16.msra.mxu0 %v137_v0  ;;  %142 = vmatpush.bf16.msra.mxu1 %v137_v0  ;;  %v20_v3 = vld [vmem:[%s210_s0 + $0x8] sm:$0x1]  ;;  %v134_v5 = vld [vmem:[%s208_s1] sm:$0xff] }
   0x3   :  { %v38_v4 = vunpack.c.l.b16 %v20_v3  ;;  %v133_v6 = vld [vmem:[%s210_s0] sm:$0xff]  ;;  %v92_v9 = vld [vmem:[%s211_s3 + $0x8] sm:$0x1] }
   0x4   :  { %v139_v8 = vld [vmem:[%s211_s3] sm:$0xff]   ;;  %v95_v12 = vunpack.c.l.bf16 %v92_v9 }
   0x5   :  { %v40_v7 = vpack.c.b16 %v38_v4, %v38_v4  ;;  %v146_v10 = vld [vmem:[%s209_s2] ss:$0 sm:$0xff]  ;;  %v140_v11 = vunpack.c.l.bf16 %v139_v8  ;;  %v141_v21 = vunpack.c.h.bf16 %v139_v8 }
   0x6   :  { %77 = vmatpush.bf16.msra.mxu0 %v136_v1  ;;  %143 = vmatpush.bf16.msra.mxu1 %v136_v1 }
   0xa   :  { %78 = vmatpush.bf16.msra.mxu0 %v135_v2  ;;  %144 = vmatpush.bf16.msra.mxu1 %v135_v2 }
   0xe   :  { %79 = vmatpush.bf16.msra.mxu0 %v134_v5  ;;  %145 = vmatpush.bf16.msra.mxu1 %v134_v5 }
  0x11   :  { %131 = vmatmul.msk.bf16.vlgmr.msra.gmra.mxu0 %vm65_vm0, %v133_v6  ;;  %132 = vmatmul.msk.bf16.vlgmr.msra.gmra.mxu1 %vm65_vm0, %v40_v7 }
  0x8e   :  { %v81_v13 = vpop.f32.mrf.mxu0  ;;  %v86_v14 = vpop.f32.mrf.mxu1 }
  0x8f   :  { %v82_v15 = vadd.f32 %v146_v10, %v81_v13  ;;  %v87_v16 = vadd.f32 %v146_v10, %v86_v14 }
  0x91   :  { %v96_v17 = vadd.f32 %v140_v11, %v82_v15  ;;  %v98_v18 = vadd.f32 %v95_v12, %v87_v16 }
  0x93   :  { %v99_v19 = vpack.c.bf16 %v96_v17, %v96_v17  ;;  %v101_v20 = vpack.c.bf16 %v98_v18, %v98_v18 }
  0x95   :  { %103 = vst.msk [vmem:[%s212_s4] sm:$0xf] %vm102_vm1, %v99_v19 }
  0x96   :  { %106 = vst.msk [vmem:[%s212_s4 + $0x8] sm:$0x1] %vm105_vm2, %v101_v20  ;;  %v83_v22 = vpop.f32.mrf.mxu0  ;;  %v88_v23 = vpop.f32.mrf.mxu1 }
  0x97   :  { %v84_v24 = vadd.f32 %v146_v10, %v83_v22 }
  0x99   :  { %v97_v25 = vadd.f32 %v141_v21, %v84_v24 }
  0x9b   :  { %v100_v26 = vpack.c.bf16 %v97_v25, %v97_v25 }
  0x9d   :  { %104 = vst.msk [vmem:[%s212_s4 + $0x4] sm:$0xf] %vm102_vm1, %v100_v26 }

</bundles_post_ra>
